<compile_context>
chip_gen: v6e
topology: v6e:2x2x1
jax: 0.10.0
libtpu: 0.0.40
codegen_flags: <defaults>
</compile_context>

<pallas_src>
import numpy as np
import jax
import jax.numpy as jnp
from jax.experimental import pallas as pl
from jax.experimental.pallas import tpu as pltpu


# ----------------------------- fused Pallas kernel -------------------------- #

def _hourglass_kernel(x_ref, em1_ref, em2_ref,
                      w1_ref, t1_ref, s1_ref,
                      w2_ref, t2_ref, s2_ref,
                      w3_ref, t3_ref, s3_ref,
                      w4_ref, t4_ref, s4_ref,
                      w5_ref, t5_ref, s5_ref,
                      w6_ref, t6_ref, s6_ref,
                      o_ref):
    """Whole hourglass_3 forward; every ref is a small, fully VMEM-resident block."""

    def conv_layer(a, w_ref, t_ref, s_ref, res=None, relu=True):
        # a:     (N*Cin, Fin)        activations (f32 value, lives in vregs/VMEM)
        # w_ref: (9, N*Cout, N*Cin)  block-diagonal tap weights, BN scale folded
        # t_ref: (9, Fin, Fout)      0/1 gather/scatter tap matrices (bf16, exact)
        # s_ref: (N*Cout, 1)         BN shift column (zeros for layers without BN)
        acc = None
        for tap in range(9):
            # im2col for this tap, done on the MXU: selects the input pixel that
            # feeds each output pixel (handles stride, zero padding and the
            # transposed-conv scatter uniformly; no HBM patch slab).
            g = jnp.dot(a, t_ref[tap].astype(jnp.float32),
                        preferred_element_type=jnp.float32)            # (N*Cin, Fout)
            c = jnp.dot(w_ref[tap], g,
                        preferred_element_type=jnp.float32)            # (N*Cout, Fout)
            acc = c if acc is None else acc + c
        acc = acc + s_ref[...]                                          # fused BN shift
        if res is not None:
            acc = acc + res                                             # fused residual
        return jnp.maximum(acc, 0.0) if relu else acc

    a = conv_layer(x_ref[...], w1_ref, t1_ref, s1_ref)                  # conv1 + BN + ReLU
    a = conv_layer(a, w2_ref, t2_ref, s2_ref, res=em1_ref[...])         # conv2 + em1, ReLU
    a = conv_layer(a, w3_ref, t3_ref, s3_ref)                           # conv3 + BN + ReLU
    a = conv_layer(a, w4_ref, t4_ref, s4_ref, res=em2_ref[...])         # conv4 + em2, ReLU
    a = conv_layer(a, w5_ref, t5_ref, s5_ref)                           # deconv5 + BN + ReLU
    a = conv_layer(a, w6_ref, t6_ref, s6_ref, relu=False)               # deconv6 + BN
    o_ref[...] = a.astype(o_ref.dtype)


# ------------------- shape-only tap (gather/scatter) matrices --------------- #

def _conv_tap_mats(h, w, stride):
    """Conv2d(k=3, pad=1): T[t] maps input flat (h*w) -> output flat (ho*wo)."""
    ho = (h + 2 - 3) // stride + 1
    wo = (w + 2 - 3) // stride + 1
    mats = np.zeros((9, h * w, ho * wo), np.float32)
    for dy in range(3):
        for dx in range(3):
            t = 3 * dy + dx
            for i in range(ho):
                r = stride * i + dy - 1
                if not (0 <= r < h):
                    continue
                for j in range(wo):
                    c = stride * j + dx - 1
                    if 0 <= c < w:
                        mats[t, r * w + c, i * wo + j] = 1.0
    return mats


def _deconv_tap_mats(h, w):
    """ConvTranspose2d(k=3, s=2, p=1, out_pad=1): scatter input flat -> (2h*2w)."""
    ho, wo = 2 * h, 2 * w
    mats = np.zeros((9, h * w, ho * wo), np.float32)
    for ky in range(3):
        for kx in range(3):
            t = 3 * ky + kx
            for r in range(ho):
                ri = r + 1 - ky                      # r = 2*i + ky - 1
                if ri % 2 != 0 or not (0 <= ri // 2 < h):
                    continue
                for c in range(wo):
                    ci = c + 1 - kx                  # c = 2*j + kx - 1
                    if ci % 2 == 0 and 0 <= ci // 2 < w:
                        mats[t, (ri // 2) * w + ci // 2, r * wo + c] = 1.0
    return mats


# --------------------------- weight / BN preparation ------------------------ #

def _bn_affine(b, eps=1e-5):
    s = b['gamma'] / jnp.sqrt(b['var'] + eps)
    t = b['beta'] - b['mean'] * s
    return s, t


def _conv_w_taps(w_oihw):            # (Cout, Cin, 3, 3) -> (9, Cout, Cin)
    return jnp.transpose(w_oihw, (2, 3, 0, 1)).reshape(9, w_oihw.shape[0], w_oihw.shape[1])


def _deconv_w_taps(w_iohw):          # (Cin, Cout, 3, 3) -> (9, Cout, Cin)
    return jnp.transpose(w_iohw, (2, 3, 1, 0)).reshape(9, w_iohw.shape[1], w_iohw.shape[0])


def _pack_w(w_taps, scale, n):
    """(9, Cout, Cin) [+ BN scale] -> block-diag over batch: (9, n*Cout, n*Cin)."""
    if scale is not None:
        w_taps = w_taps * scale[None, :, None]
    cout, cin = w_taps.shape[1], w_taps.shape[2]
    eye = jnp.eye(n, dtype=w_taps.dtype)
    out = jnp.einsum('ab,tij->taibj', eye, w_taps)   # rows/cols ordered (n, channel)
    return out.reshape(9, n * cout, n * cin)


def _shift_col(shift, n):            # (Cout,) -> (n*Cout, 1), batch-major rows
    return jnp.tile(shift, n).reshape(-1, 1)


def prepare_params(params, N, H, W):
    """One-time (off the hot path) packing: fold BN scale into tap weights, build
    per-layer tap gather/scatter matrices (bf16, exactly 0/1), tile BN shifts."""
    s1, t1 = _bn_affine(params['bn1'])
    s3, t3 = _bn_affine(params['bn3'])
    s5, t5 = _bn_affine(params['bn5'])
    s6, t6 = _bn_affine(params['bn6'])

    w = (
        _pack_w(_conv_w_taps(params['conv1_w']), s1, N),
        _pack_w(_conv_w_taps(params['conv2_w']), None, N),
        _pack_w(_conv_w_taps(params['conv3_w']), s3, N),
        _pack_w(_conv_w_taps(params['conv4_w']), None, N),
        _pack_w(_deconv_w_taps(params['conv5_w']), s5, N),
        _pack_w(_deconv_w_taps(params['conv6_w']), s6, N),
    )
    sh = (
        _shift_col(t1, N),
        _shift_col(jnp.zeros((params['conv2_w'].shape[0],), jnp.float32), N),
        _shift_col(t3, N),
        _shift_col(jnp.zeros((params['conv4_w'].shape[0],), jnp.float32), N),
        _shift_col(t5, N),
        _shift_col(t6, N),
    )
    t = (
        jnp.asarray(_conv_tap_mats(H, W, 2), jnp.bfloat16),
        jnp.asarray(_conv_tap_mats(H // 2, W // 2, 1), jnp.bfloat16),
        jnp.asarray(_conv_tap_mats(H // 2, W // 2, 2), jnp.bfloat16),
        jnp.asarray(_conv_tap_mats(H // 4, W // 4, 1), jnp.bfloat16),
        jnp.asarray(_deconv_tap_mats(H // 4, W // 4), jnp.bfloat16),
        jnp.asarray(_deconv_tap_mats(H // 2, W // 2), jnp.bfloat16),
    )
    return {'w': w, 't': t, 's': sh}


# ------------------------------- forward ------------------------------------ #

@jax.jit
def hourglass3_forward(x_nchw, em1_nchw, em2_nchw, prep):
    n, c, h, w = x_nchw.shape
    # Free reshapes (no transposes): rows = (batch, channel), lanes = pixels.
    x2 = x_nchw.reshape(n * c, h * w)
    e1 = em1_nchw.reshape(n * em1_nchw.shape[1], (h // 2) * (w // 2))
    e2 = em2_nchw.reshape(n * em2_nchw.shape[1], (h // 4) * (w // 4))

    args = [x2, e1, e2]
    for i in range(6):
        args += [prep['w'][i], prep['t'][i], prep['s'][i]]

    out2 = pl.pallas_call(
        _hourglass_kernel,
        out_shape=jax.ShapeDtypeStruct((n * c, h * w), jnp.float32),
        in_specs=[pl.BlockSpec(memory_space=pltpu.MemorySpace.VMEM)] * len(args),
        out_specs=pl.BlockSpec(memory_space=pltpu.MemorySpace.VMEM),
    )(*args)
    return out2.reshape(n, c, h, w)


# ---------------------- pure-JAX reference (for checking) ------------------- #

def _ref_forward(x, em1, em2, p):
    dn = ('NCHW', 'OIHW', 'NCHW')
    P = jax.lax.Precision.HIGHEST

    def conv(v, w, stride):
        return jax.lax.conv_general_dilated(v, w, (stride, stride), ((1, 1), (1, 1)),
                                            dimension_numbers=dn, precision=P)

    def convT(v, w_iohw):
        w_conv = jnp.transpose(jnp.flip(w_iohw, (2, 3)), (1, 0, 2, 3))
        return jax.lax.conv_general_dilated(v, w_conv, (1, 1), ((1, 2), (1, 2)),
                                            lhs_dilation=(2, 2),
                                            dimension_numbers=dn, precision=P)

    def bn(v, b):
        s = b['gamma'] / jnp.sqrt(b['var'] + 1e-5)
        t = b['beta'] - b['mean'] * s
        return v * s[None, :, None, None] + t[None, :, None, None]

    v = jax.nn.relu(bn(conv(x, p['conv1_w'], 2), p['bn1']))
    v = jax.nn.relu(conv(v, p['conv2_w'], 1) + em1)
    u = jax.nn.relu(bn(conv(v, p['conv3_w'], 2), p['bn3']))
    u = jax.nn.relu(conv(u, p['conv4_w'], 1) + em2)
    o = jax.nn.relu(bn(convT(u, p['conv5_w']), p['bn5']))
    o = bn(convT(o, p['conv6_w']), p['bn6'])
    return o


# ------------------------------- params -------------------------------------- #

def init_params(key, C):
    ks = jax.random.split(key, 10)

    def w(k, co, ci):
        return 0.2 * jax.random.normal(k, (co, ci, 3, 3), jnp.float32)

    def bn(k, ch):
        k1, k2, k3, k4 = jax.random.split(k, 4)
        return dict(gamma=1.0 + 0.1 * jax.random.normal(k1, (ch,), jnp.float32),
                    beta=0.1 * jax.random.normal(k2, (ch,), jnp.float32),
                    mean=0.1 * jax.random.normal(k3, (ch,), jnp.float32),
                    var=jax.random.uniform(k4, (ch,), jnp.float32, minval=0.5, maxval=1.5))

    return dict(
        conv1_w=w(ks[0], 2 * C, C),        bn1=bn(ks[1], 2 * C),
        conv2_w=w(ks[2], 2 * C, 2 * C),
        conv3_w=w(ks[3], 2 * C, 2 * C),    bn3=bn(ks[4], 2 * C),
        conv4_w=w(ks[5], 4 * C, 2 * C),
        conv5_w=0.2 * jax.random.normal(ks[6], (4 * C, 2 * C, 3, 3), jnp.float32),  # IOHW
        bn5=bn(ks[7], 2 * C),
        conv6_w=0.2 * jax.random.normal(ks[8], (2 * C, C, 3, 3), jnp.float32),      # IOHW
        bn6=bn(ks[9], C),
    )


# --------------------------------- main --------------------------------------- #

if __name__ == "__main__":
    C, N, H, W = 4, 2, 16, 16
    key = jax.random.PRNGKey(0)
    kx, k1, k2, kp = jax.random.split(key, 4)

    x = jax.random.normal(kx, (N, C, H, W), jnp.float32)
    em1 = jax.random.normal(k1, (N, 2 * C, H // 2, W // 2), jnp.float32)
    em2 = jax.random.normal(k2, (N, 4 * C, H // 4, W // 4), jnp.float32)
    params = init_params(kp, C)

    prep = prepare_params(params, N, H, W)            # one-time weight/constant packing
    out = jax.block_until_ready(hourglass3_forward(x, em1, em2, prep))
    assert out.shape == (N, C, H, W), out.shape

    ref = jax.block_until_ready(_ref_forward(x, em1, em2, params))
    err = float(np.max(np.abs(np.asarray(out) - np.asarray(ref))))
    assert np.allclose(np.asarray(out), np.asarray(ref), rtol=5e-3, atol=5e-3), err

    print("KERNEL_OK")
</pallas_src>

<mosaic_0001>
module attributes {stable_mosaic.version = 11 : i64} {
  func.func @_hourglass_kernel(%arg0: memref<8x256xf32, #tpu.memory_space<vmem>>, %arg1: memref<16x64xf32, #tpu.memory_space<vmem>>, %arg2: memref<32x16xf32, #tpu.memory_space<vmem>>, %arg3: memref<9x16x8xf32, #tpu.memory_space<vmem>>, %arg4: memref<9x256x64xbf16, #tpu.memory_space<vmem>>, %arg5: memref<16x1xf32, #tpu.memory_space<vmem>>, %arg6: memref<9x16x16xf32, #tpu.memory_space<vmem>>, %arg7: memref<9x64x64xbf16, #tpu.memory_space<vmem>>, %arg8: memref<16x1xf32, #tpu.memory_space<vmem>>, %arg9: memref<9x16x16xf32, #tpu.memory_space<vmem>>, %arg10: memref<9x64x16xbf16, #tpu.memory_space<vmem>>, %arg11: memref<16x1xf32, #tpu.memory_space<vmem>>, %arg12: memref<9x32x16xf32, #tpu.memory_space<vmem>>, %arg13: memref<9x16x16xbf16, #tpu.memory_space<vmem>>, %arg14: memref<32x1xf32, #tpu.memory_space<vmem>>, %arg15: memref<9x16x32xf32, #tpu.memory_space<vmem>>, %arg16: memref<9x16x64xbf16, #tpu.memory_space<vmem>>, %arg17: memref<16x1xf32, #tpu.memory_space<vmem>>, %arg18: memref<9x8x16xf32, #tpu.memory_space<vmem>>, %arg19: memref<9x64x256xbf16, #tpu.memory_space<vmem>>, %arg20: memref<8x1xf32, #tpu.memory_space<vmem>>, %arg21: memref<8x256xf32, #tpu.memory_space<vmem>>) attributes {dimension_semantics = [], scalar_prefetch = 0 : i64, scratch_operands = 0 : i64, tpu.core_type = #tpu.core_type<tc>} {
    %c0 = arith.constant 0 : index
    %c0_0 = arith.constant 0 : index
    %0 = vector.load %arg0[%c0, %c0_0] : memref<8x256xf32, #tpu.memory_space<vmem>>, vector<8x256xf32>
    %c0_1 = arith.constant 0 : index
    %c0_2 = arith.constant 0 : index
    %c0_3 = arith.constant 0 : index
    %1 = vector.load %arg4[%c0_1, %c0_2, %c0_3] : memref<9x256x64xbf16, #tpu.memory_space<vmem>>, vector<1x256x64xbf16>
    %2 = vector.shape_cast %1 : vector<1x256x64xbf16> to vector<256x64xbf16>
    %3 = arith.extf %2 : vector<256x64xbf16> to vector<256x64xf32>
    %cst = arith.constant dense<0.000000e+00> : vector<8x64xf32>
    %4 = tpu.matmul %0, %3, %cst {dimension_numbers = #tpu.dot_dimension_numbers<[1], [0], [0], [1], [0, 0, 1, 1], [], []>} : vector<8x256xf32>, vector<256x64xf32>, vector<8x64xf32> -> vector<8x64xf32>
    %c0_4 = arith.constant 0 : index
    %c0_5 = arith.constant 0 : index
    %c0_6 = arith.constant 0 : index
    %5 = vector.load %arg3[%c0_4, %c0_5, %c0_6] : memref<9x16x8xf32, #tpu.memory_space<vmem>>, vector<1x16x8xf32>
    %6 = vector.shape_cast %5 : vector<1x16x8xf32> to vector<16x8xf32>
    %cst_7 = arith.constant dense<0.000000e+00> : vector<16x64xf32>
    %7 = tpu.matmul %6, %4, %cst_7 {dimension_numbers = #tpu.dot_dimension_numbers<[1], [0], [0], [1], [0, 0, 1, 1], [], []>} : vector<16x8xf32>, vector<8x64xf32>, vector<16x64xf32> -> vector<16x64xf32>
    %c1 = arith.constant 1 : index
    %c0_8 = arith.constant 0 : index
    %c0_9 = arith.constant 0 : index
    %8 = vector.load %arg4[%c1, %c0_8, %c0_9] : memref<9x256x64xbf16, #tpu.memory_space<vmem>>, vector<1x256x64xbf16>
    %9 = vector.shape_cast %8 : vector<1x256x64xbf16> to vector<256x64xbf16>
    %10 = arith.extf %9 : vector<256x64xbf16> to vector<256x64xf32>
    %cst_10 = arith.constant dense<0.000000e+00> : vector<8x64xf32>
    %11 = tpu.matmul %0, %10, %cst_10 {dimension_numbers = #tpu.dot_dimension_numbers<[1], [0], [0], [1], [0, 0, 1, 1], [], []>} : vector<8x256xf32>, vector<256x64xf32>, vector<8x64xf32> -> vector<8x64xf32>
    %c1_11 = arith.constant 1 : index
    %c0_12 = arith.constant 0 : index
    %c0_13 = arith.constant 0 : index
    %12 = vector.load %arg3[%c1_11, %c0_12, %c0_13] : memref<9x16x8xf32, #tpu.memory_space<vmem>>, vector<1x16x8xf32>
    %13 = vector.shape_cast %12 : vector<1x16x8xf32> to vector<16x8xf32>
    %cst_14 = arith.constant dense<0.000000e+00> : vector<16x64xf32>
    %14 = tpu.matmul %13, %11, %cst_14 {dimension_numbers = #tpu.dot_dimension_numbers<[1], [0], [0], [1], [0, 0, 1, 1], [], []>} : vector<16x8xf32>, vector<8x64xf32>, vector<16x64xf32> -> vector<16x64xf32>
    %15 = arith.addf %7, %14 : vector<16x64xf32>
    %c2 = arith.constant 2 : index
    %c0_15 = arith.constant 0 : index
    %c0_16 = arith.constant 0 : index
    %16 = vector.load %arg4[%c2, %c0_15, %c0_16] : memref<9x256x64xbf16, #tpu.memory_space<vmem>>, vector<1x256x64xbf16>
    %17 = vector.shape_cast %16 : vector<1x256x64xbf16> to vector<256x64xbf16>
    %18 = arith.extf %17 : vector<256x64xbf16> to vector<256x64xf32>
    %cst_17 = arith.constant dense<0.000000e+00> : vector<8x64xf32>
    %19 = tpu.matmul %0, %18, %cst_17 {dimension_numbers = #tpu.dot_dimension_numbers<[1], [0], [0], [1], [0, 0, 1, 1], [], []>} : vector<8x256xf32>, vector<256x64xf32>, vector<8x64xf32> -> vector<8x64xf32>
    %c2_18 = arith.constant 2 : index
    %c0_19 = arith.constant 0 : index
    %c0_20 = arith.constant 0 : index
    %20 = vector.load %arg3[%c2_18, %c0_19, %c0_20] : memref<9x16x8xf32, #tpu.memory_space<vmem>>, vector<1x16x8xf32>
    %21 = vector.shape_cast %20 : vector<1x16x8xf32> to vector<16x8xf32>
    %cst_21 = arith.constant dense<0.000000e+00> : vector<16x64xf32>
    %22 = tpu.matmul %21, %19, %cst_21 {dimension_numbers = #tpu.dot_dimension_numbers<[1], [0], [0], [1], [0, 0, 1, 1], [], []>} : vector<16x8xf32>, vector<8x64xf32>, vector<16x64xf32> -> vector<16x64xf32>
    %23 = arith.addf %15, %22 : vector<16x64xf32>
    %c3 = arith.constant 3 : index
    %c0_22 = arith.constant 0 : index
    %c0_23 = arith.constant 0 : index
    %24 = vector.load %arg4[%c3, %c0_22, %c0_23] : memref<9x256x64xbf16, #tpu.memory_space<vmem>>, vector<1x256x64xbf16>
    %25 = vector.shape_cast %24 : vector<1x256x64xbf16> to vector<256x64xbf16>
    %26 = arith.extf %25 : vector<256x64xbf16> to vector<256x64xf32>
    %cst_24 = arith.constant dense<0.000000e+00> : vector<8x64xf32>
    %27 = tpu.matmul %0, %26, %cst_24 {dimension_numbers = #tpu.dot_dimension_numbers<[1], [0], [0], [1], [0, 0, 1, 1], [], []>} : vector<8x256xf32>, vector<256x64xf32>, vector<8x64xf32> -> vector<8x64xf32>
    %c3_25 = arith.constant 3 : index
    %c0_26 = arith.constant 0 : index
    %c0_27 = arith.constant 0 : index
    %28 = vector.load %arg3[%c3_25, %c0_26, %c0_27] : memref<9x16x8xf32, #tpu.memory_space<vmem>>, vector<1x16x8xf32>
    %29 = vector.shape_cast %28 : vector<1x16x8xf32> to vector<16x8xf32>
    %cst_28 = arith.constant dense<0.000000e+00> : vector<16x64xf32>
    %30 = tpu.matmul %29, %27, %cst_28 {dimension_numbers = #tpu.dot_dimension_numbers<[1], [0], [0], [1], [0, 0, 1, 1], [], []>} : vector<16x8xf32>, vector<8x64xf32>, vector<16x64xf32> -> vector<16x64xf32>
    %31 = arith.addf %23, %30 : vector<16x64xf32>
    %c4 = arith.constant 4 : index
    %c0_29 = arith.constant 0 : index
    %c0_30 = arith.constant 0 : index
    %32 = vector.load %arg4[%c4, %c0_29, %c0_30] : memref<9x256x64xbf16, #tpu.memory_space<vmem>>, vector<1x256x64xbf16>
    %33 = vector.shape_cast %32 : vector<1x256x64xbf16> to vector<256x64xbf16>
    %34 = arith.extf %33 : vector<256x64xbf16> to vector<256x64xf32>
    %cst_31 = arith.constant dense<0.000000e+00> : vector<8x64xf32>
    %35 = tpu.matmul %0, %34, %cst_31 {dimension_numbers = #tpu.dot_dimension_numbers<[1], [0], [0], [1], [0, 0, 1, 1], [], []>} : vector<8x256xf32>, vector<256x64xf32>, vector<8x64xf32> -> vector<8x64xf32>
    %c4_32 = arith.constant 4 : index
    %c0_33 = arith.constant 0 : index
    %c0_34 = arith.constant 0 : index
    %36 = vector.load %arg3[%c4_32, %c0_33, %c0_34] : memref<9x16x8xf32, #tpu.memory_space<vmem>>, vector<1x16x8xf32>
    %37 = vector.shape_cast %36 : vector<1x16x8xf32> to vector<16x8xf32>
    %cst_35 = arith.constant dense<0.000000e+00> : vector<16x64xf32>
    %38 = tpu.matmul %37, %35, %cst_35 {dimension_numbers = #tpu.dot_dimension_numbers<[1], [0], [0], [1], [0, 0, 1, 1], [], []>} : vector<16x8xf32>, vector<8x64xf32>, vector<16x64xf32> -> vector<16x64xf32>
    %39 = arith.addf %31, %38 : vector<16x64xf32>
    %c5 = arith.constant 5 : index
    %c0_36 = arith.constant 0 : index
    %c0_37 = arith.constant 0 : index
    %40 = vector.load %arg4[%c5, %c0_36, %c0_37] : memref<9x256x64xbf16, #tpu.memory_space<vmem>>, vector<1x256x64xbf16>
    %41 = vector.shape_cast %40 : vector<1x256x64xbf16> to vector<256x64xbf16>
    %42 = arith.extf %41 : vector<256x64xbf16> to vector<256x64xf32>
    %cst_38 = arith.constant dense<0.000000e+00> : vector<8x64xf32>
    %43 = tpu.matmul %0, %42, %cst_38 {dimension_numbers = #tpu.dot_dimension_numbers<[1], [0], [0], [1], [0, 0, 1, 1], [], []>} : vector<8x256xf32>, vector<256x64xf32>, vector<8x64xf32> -> vector<8x64xf32>
    %c5_39 = arith.constant 5 : index
    %c0_40 = arith.constant 0 : index
    %c0_41 = arith.constant 0 : index
    %44 = vector.load %arg3[%c5_39, %c0_40, %c0_41] : memref<9x16x8xf32, #tpu.memory_space<vmem>>, vector<1x16x8xf32>
    %45 = vector.shape_cast %44 : vector<1x16x8xf32> to vector<16x8xf32>
    %cst_42 = arith.constant dense<0.000000e+00> : vector<16x64xf32>
    %46 = tpu.matmul %45, %43, %cst_42 {dimension_numbers = #tpu.dot_dimension_numbers<[1], [0], [0], [1], [0, 0, 1, 1], [], []>} : vector<16x8xf32>, vector<8x64xf32>, vector<16x64xf32> -> vector<16x64xf32>
    %47 = arith.addf %39, %46 : vector<16x64xf32>
    %c6 = arith.constant 6 : index
    %c0_43 = arith.constant 0 : index
    %c0_44 = arith.constant 0 : index
    %48 = vector.load %arg4[%c6, %c0_43, %c0_44] : memref<9x256x64xbf16, #tpu.memory_space<vmem>>, vector<1x256x64xbf16>
    %49 = vector.shape_cast %48 : vector<1x256x64xbf16> to vector<256x64xbf16>
    %50 = arith.extf %49 : vector<256x64xbf16> to vector<256x64xf32>
    %cst_45 = arith.constant dense<0.000000e+00> : vector<8x64xf32>
    %51 = tpu.matmul %0, %50, %cst_45 {dimension_numbers = #tpu.dot_dimension_numbers<[1], [0], [0], [1], [0, 0, 1, 1], [], []>} : vector<8x256xf32>, vector<256x64xf32>, vector<8x64xf32> -> vector<8x64xf32>
    %c6_46 = arith.constant 6 : index
    %c0_47 = arith.constant 0 : index
    %c0_48 = arith.constant 0 : index
    %52 = vector.load %arg3[%c6_46, %c0_47, %c0_48] : memref<9x16x8xf32, #tpu.memory_space<vmem>>, vector<1x16x8xf32>
    %53 = vector.shape_cast %52 : vector<1x16x8xf32> to vector<16x8xf32>
    %cst_49 = arith.constant dense<0.000000e+00> : vector<16x64xf32>
    %54 = tpu.matmul %53, %51, %cst_49 {dimension_numbers = #tpu.dot_dimension_numbers<[1], [0], [0], [1], [0, 0, 1, 1], [], []>} : vector<16x8xf32>, vector<8x64xf32>, vector<16x64xf32> -> vector<16x64xf32>
    %55 = arith.addf %47, %54 : vector<16x64xf32>
    %c7 = arith.constant 7 : index
    %c0_50 = arith.constant 0 : index
    %c0_51 = arith.constant 0 : index
    %56 = vector.load %arg4[%c7, %c0_50, %c0_51] : memref<9x256x64xbf16, #tpu.memory_space<vmem>>, vector<1x256x64xbf16>
    %57 = vector.shape_cast %56 : vector<1x256x64xbf16> to vector<256x64xbf16>
    %58 = arith.extf %57 : vector<256x64xbf16> to vector<256x64xf32>
    %cst_52 = arith.constant dense<0.000000e+00> : vector<8x64xf32>
    %59 = tpu.matmul %0, %58, %cst_52 {dimension_numbers = #tpu.dot_dimension_numbers<[1], [0], [0], [1], [0, 0, 1, 1], [], []>} : vector<8x256xf32>, vector<256x64xf32>, vector<8x64xf32> -> vector<8x64xf32>
    %c7_53 = arith.constant 7 : index
    %c0_54 = arith.constant 0 : index
    %c0_55 = arith.constant 0 : index
    %60 = vector.load %arg3[%c7_53, %c0_54, %c0_55] : memref<9x16x8xf32, #tpu.memory_space<vmem>>, vector<1x16x8xf32>
    %61 = vector.shape_cast %60 : vector<1x16x8xf32> to vector<16x8xf32>
    %cst_56 = arith.constant dense<0.000000e+00> : vector<16x64xf32>
    %62 = tpu.matmul %61, %59, %cst_56 {dimension_numbers = #tpu.dot_dimension_numbers<[1], [0], [0], [1], [0, 0, 1, 1], [], []>} : vector<16x8xf32>, vector<8x64xf32>, vector<16x64xf32> -> vector<16x64xf32>
    %63 = arith.addf %55, %62 : vector<16x64xf32>
    %c8 = arith.constant 8 : index
    %c0_57 = arith.constant 0 : index
    %c0_58 = arith.constant 0 : index
    %64 = vector.load %arg4[%c8, %c0_57, %c0_58] : memref<9x256x64xbf16, #tpu.memory_space<vmem>>, vector<1x256x64xbf16>
    %65 = vector.shape_cast %64 : vector<1x256x64xbf16> to vector<256x64xbf16>
    %66 = arith.extf %65 : vector<256x64xbf16> to vector<256x64xf32>
    %cst_59 = arith.constant dense<0.000000e+00> : vector<8x64xf32>
    %67 = tpu.matmul %0, %66, %cst_59 {dimension_numbers = #tpu.dot_dimension_numbers<[1], [0], [0], [1], [0, 0, 1, 1], [], []>} : vector<8x256xf32>, vector<256x64xf32>, vector<8x64xf32> -> vector<8x64xf32>
    %c8_60 = arith.constant 8 : index
    %c0_61 = arith.constant 0 : index
    %c0_62 = arith.constant 0 : index
    %68 = vector.load %arg3[%c8_60, %c0_61, %c0_62] : memref<9x16x8xf32, #tpu.memory_space<vmem>>, vector<1x16x8xf32>
    %69 = vector.shape_cast %68 : vector<1x16x8xf32> to vector<16x8xf32>
    %cst_63 = arith.constant dense<0.000000e+00> : vector<16x64xf32>
    %70 = tpu.matmul %69, %67, %cst_63 {dimension_numbers = #tpu.dot_dimension_numbers<[1], [0], [0], [1], [0, 0, 1, 1], [], []>} : vector<16x8xf32>, vector<8x64xf32>, vector<16x64xf32> -> vector<16x64xf32>
    %71 = arith.addf %63, %70 : vector<16x64xf32>
    %c0_64 = arith.constant 0 : index
    %c0_65 = arith.constant 0 : index
    %72 = vector.load %arg5[%c0_64, %c0_65] : memref<16x1xf32, #tpu.memory_space<vmem>>, vector<16x1xf32>
    %73 = vector.broadcast %72 : vector<16x1xf32> to vector<16x64xf32>
    %74 = arith.addf %71, %73 : vector<16x64xf32>
    %cst_66 = arith.constant 0.000000e+00 : f32
    %75 = vector.broadcast %cst_66 : f32 to vector<16x64xf32>
    %76 = arith.maximumf %74, %75 : vector<16x64xf32>
    %c0_67 = arith.constant 0 : index
    %c0_68 = arith.constant 0 : index
    %77 = vector.load %arg1[%c0_67, %c0_68] : memref<16x64xf32, #tpu.memory_space<vmem>>, vector<16x64xf32>
    %c0_69 = arith.constant 0 : index
    %c0_70 = arith.constant 0 : index
    %c0_71 = arith.constant 0 : index
    %78 = vector.load %arg7[%c0_69, %c0_70, %c0_71] : memref<9x64x64xbf16, #tpu.memory_space<vmem>>, vector<1x64x64xbf16>
    %79 = vector.shape_cast %78 : vector<1x64x64xbf16> to vector<64x64xbf16>
    %80 = arith.extf %79 : vector<64x64xbf16> to vector<64x64xf32>
    %cst_72 = arith.constant dense<0.000000e+00> : vector<16x64xf32>
    %81 = tpu.matmul %76, %80, %cst_72 {dimension_numbers = #tpu.dot_dimension_numbers<[1], [0], [0], [1], [0, 0, 1, 1], [], []>} : vector<16x64xf32>, vector<64x64xf32>, vector<16x64xf32> -> vector<16x64xf32>
    %c0_73 = arith.constant 0 : index
    %c0_74 = arith.constant 0 : index
    %c0_75 = arith.constant 0 : index
    %82 = vector.load %arg6[%c0_73, %c0_74, %c0_75] : memref<9x16x16xf32, #tpu.memory_space<vmem>>, vector<1x16x16xf32>
    %83 = vector.shape_cast %82 : vector<1x16x16xf32> to vector<16x16xf32>
    %cst_76 = arith.constant dense<0.000000e+00> : vector<16x64xf32>
    %84 = tpu.matmul %83, %81, %cst_76 {dimension_numbers = #tpu.dot_dimension_numbers<[1], [0], [0], [1], [0, 0, 1, 1], [], []>} : vector<16x16xf32>, vector<16x64xf32>, vector<16x64xf32> -> vector<16x64xf32>
    %c1_77 = arith.constant 1 : index
    %c0_78 = arith.constant 0 : index
    %c0_79 = arith.constant 0 : index
    %85 = vector.load %arg7[%c1_77, %c0_78, %c0_79] : memref<9x64x64xbf16, #tpu.memory_space<vmem>>, vector<1x64x64xbf16>
    %86 = vector.shape_cast %85 : vector<1x64x64xbf16> to vector<64x64xbf16>
    %87 = arith.extf %86 : vector<64x64xbf16> to vector<64x64xf32>
    %cst_80 = arith.constant dense<0.000000e+00> : vector<16x64xf32>
    %88 = tpu.matmul %76, %87, %cst_80 {dimension_numbers = #tpu.dot_dimension_numbers<[1], [0], [0], [1], [0, 0, 1, 1], [], []>} : vector<16x64xf32>, vector<64x64xf32>, vector<16x64xf32> -> vector<16x64xf32>
    %c1_81 = arith.constant 1 : index
    %c0_82 = arith.constant 0 : index
    %c0_83 = arith.constant 0 : index
    %89 = vector.load %arg6[%c1_81, %c0_82, %c0_83] : memref<9x16x16xf32, #tpu.memory_space<vmem>>, vector<1x16x16xf32>
    %90 = vector.shape_cast %89 : vector<1x16x16xf32> to vector<16x16xf32>
    %cst_84 = arith.constant dense<0.000000e+00> : vector<16x64xf32>
    %91 = tpu.matmul %90, %88, %cst_84 {dimension_numbers = #tpu.dot_dimension_numbers<[1], [0], [0], [1], [0, 0, 1, 1], [], []>} : vector<16x16xf32>, vector<16x64xf32>, vector<16x64xf32> -> vector<16x64xf32>
    %92 = arith.addf %84, %91 : vector<16x64xf32>
    %c2_85 = arith.constant 2 : index
    %c0_86 = arith.constant 0 : index
    %c0_87 = arith.constant 0 : index
    %93 = vector.load %arg7[%c2_85, %c0_86, %c0_87] : memref<9x64x64xbf16, #tpu.memory_space<vmem>>, vector<1x64x64xbf16>
    %94 = vector.shape_cast %93 : vector<1x64x64xbf16> to vector<64x64xbf16>
    %95 = arith.extf %94 : vector<64x64xbf16> to vector<64x64xf32>
    %cst_88 = arith.constant dense<0.000000e+00> : vector<16x64xf32>
    %96 = tpu.matmul %76, %95, %cst_88 {dimension_numbers = #tpu.dot_dimension_numbers<[1], [0], [0], [1], [0, 0, 1, 1], [], []>} : vector<16x64xf32>, vector<64x64xf32>, vector<16x64xf32> -> vector<16x64xf32>
    %c2_89 = arith.constant 2 : index
    %c0_90 = arith.constant 0 : index
    %c0_91 = arith.constant 0 : index
    %97 = vector.load %arg6[%c2_89, %c0_90, %c0_91] : memref<9x16x16xf32, #tpu.memory_space<vmem>>, vector<1x16x16xf32>
    %98 = vector.shape_cast %97 : vector<1x16x16xf32> to vector<16x16xf32>
    %cst_92 = arith.constant dense<0.000000e+00> : vector<16x64xf32>
    %99 = tpu.matmul %98, %96, %cst_92 {dimension_numbers = #tpu.dot_dimension_numbers<[1], [0], [0], [1], [0, 0, 1, 1], [], []>} : vector<16x16xf32>, vector<16x64xf32>, vector<16x64xf32> -> vector<16x64xf32>
    %100 = arith.addf %92, %99 : vector<16x64xf32>
    %c3_93 = arith.constant 3 : index
    %c0_94 = arith.constant 0 : index
    %c0_95 = arith.constant 0 : index
    %101 = vector.load %arg7[%c3_93, %c0_94, %c0_95] : memref<9x64x64xbf16, #tpu.memory_space<vmem>>, vector<1x64x64xbf16>
    %102 = vector.shape_cast %101 : vector<1x64x64xbf16> to vector<64x64xbf16>
    %103 = arith.extf %102 : vector<64x64xbf16> to vector<64x64xf32>
    %cst_96 = arith.constant dense<0.000000e+00> : vector<16x64xf32>
    %104 = tpu.matmul %76, %103, %cst_96 {dimension_numbers = #tpu.dot_dimension_numbers<[1], [0], [0], [1], [0, 0, 1, 1], [], []>} : vector<16x64xf32>, vector<64x64xf32>, vector<16x64xf32> -> vector<16x64xf32>
    %c3_97 = arith.constant 3 : index
    %c0_98 = arith.constant 0 : index
    %c0_99 = arith.constant 0 : index
    %105 = vector.load %arg6[%c3_97, %c0_98, %c0_99] : memref<9x16x16xf32, #tpu.memory_space<vmem>>, vector<1x16x16xf32>
    %106 = vector.shape_cast %105 : vector<1x16x16xf32> to vector<16x16xf32>
    %cst_100 = arith.constant dense<0.000000e+00> : vector<16x64xf32>
    %107 = tpu.matmul %106, %104, %cst_100 {dimension_numbers = #tpu.dot_dimension_numbers<[1], [0], [0], [1], [0, 0, 1, 1], [], []>} : vector<16x16xf32>, vector<16x64xf32>, vector<16x64xf32> -> vector<16x64xf32>
    %108 = arith.addf %100, %107 : vector<16x64xf32>
    %c4_101 = arith.constant 4 : index
    %c0_102 = arith.constant 0 : index
    %c0_103 = arith.constant 0 : index
    %109 = vector.load %arg7[%c4_101, %c0_102, %c0_103] : memref<9x64x64xbf16, #tpu.memory_space<vmem>>, vector<1x64x64xbf16>
    %110 = vector.shape_cast %109 : vector<1x64x64xbf16> to vector<64x64xbf16>
    %111 = arith.extf %110 : vector<64x64xbf16> to vector<64x64xf32>
    %cst_104 = arith.constant dense<0.000000e+00> : vector<16x64xf32>
    %112 = tpu.matmul %76, %111, %cst_104 {dimension_numbers = #tpu.dot_dimension_numbers<[1], [0], [0], [1], [0, 0, 1, 1], [], []>} : vector<16x64xf32>, vector<64x64xf32>, vector<16x64xf32> -> vector<16x64xf32>
    %c4_105 = arith.constant 4 : index
    %c0_106 = arith.constant 0 : index
    %c0_107 = arith.constant 0 : index
    %113 = vector.load %arg6[%c4_105, %c0_106, %c0_107] : memref<9x16x16xf32, #tpu.memory_space<vmem>>, vector<1x16x16xf32>
    %114 = vector.shape_cast %113 : vector<1x16x16xf32> to vector<16x16xf32>
    %cst_108 = arith.constant dense<0.000000e+00> : vector<16x64xf32>
    %115 = tpu.matmul %114, %112, %cst_108 {dimension_numbers = #tpu.dot_dimension_numbers<[1], [0], [0], [1], [0, 0, 1, 1], [], []>} : vector<16x16xf32>, vector<16x64xf32>, vector<16x64xf32> -> vector<16x64xf32>
    %116 = arith.addf %108, %115 : vector<16x64xf32>
    %c5_109 = arith.constant 5 : index
    %c0_110 = arith.constant 0 : index
    %c0_111 = arith.constant 0 : index
    %117 = vector.load %arg7[%c5_109, %c0_110, %c0_111] : memref<9x64x64xbf16, #tpu.memory_space<vmem>>, vector<1x64x64xbf16>
    %118 = vector.shape_cast %117 : vector<1x64x64xbf16> to vector<64x64xbf16>
    %119 = arith.extf %118 : vector<64x64xbf16> to vector<64x64xf32>
    %cst_112 = arith.constant dense<0.000000e+00> : vector<16x64xf32>
    %120 = tpu.matmul %76, %119, %cst_112 {dimension_numbers = #tpu.dot_dimension_numbers<[1], [0], [0], [1], [0, 0, 1, 1], [], []>} : vector<16x64xf32>, vector<64x64xf32>, vector<16x64xf32> -> vector<16x64xf32>
    %c5_113 = arith.constant 5 : index
    %c0_114 = arith.constant 0 : index
    %c0_115 = arith.constant 0 : index
    %121 = vector.load %arg6[%c5_113, %c0_114, %c0_115] : memref<9x16x16xf32, #tpu.memory_space<vmem>>, vector<1x16x16xf32>
    %122 = vector.shape_cast %121 : vector<1x16x16xf32> to vector<16x16xf32>
    %cst_116 = arith.constant dense<0.000000e+00> : vector<16x64xf32>
    %123 = tpu.matmul %122, %120, %cst_116 {dimension_numbers = #tpu.dot_dimension_numbers<[1], [0], [0], [1], [0, 0, 1, 1], [], []>} : vector<16x16xf32>, vector<16x64xf32>, vector<16x64xf32> -> vector<16x64xf32>
    %124 = arith.addf %116, %123 : vector<16x64xf32>
    %c6_117 = arith.constant 6 : index
    %c0_118 = arith.constant 0 : index
    %c0_119 = arith.constant 0 : index
    %125 = vector.load %arg7[%c6_117, %c0_118, %c0_119] : memref<9x64x64xbf16, #tpu.memory_space<vmem>>, vector<1x64x64xbf16>
    %126 = vector.shape_cast %125 : vector<1x64x64xbf16> to vector<64x64xbf16>
    %127 = arith.extf %126 : vector<64x64xbf16> to vector<64x64xf32>
    %cst_120 = arith.constant dense<0.000000e+00> : vector<16x64xf32>
    %128 = tpu.matmul %76, %127, %cst_120 {dimension_numbers = #tpu.dot_dimension_numbers<[1], [0], [0], [1], [0, 0, 1, 1], [], []>} : vector<16x64xf32>, vector<64x64xf32>, vector<16x64xf32> -> vector<16x64xf32>
    %c6_121 = arith.constant 6 : index
    %c0_122 = arith.constant 0 : index
    %c0_123 = arith.constant 0 : index
    %129 = vector.load %arg6[%c6_121, %c0_122, %c0_123] : memref<9x16x16xf32, #tpu.memory_space<vmem>>, vector<1x16x16xf32>
    %130 = vector.shape_cast %129 : vector<1x16x16xf32> to vector<16x16xf32>
    %cst_124 = arith.constant dense<0.000000e+00> : vector<16x64xf32>
    %131 = tpu.matmul %130, %128, %cst_124 {dimension_numbers = #tpu.dot_dimension_numbers<[1], [0], [0], [1], [0, 0, 1, 1], [], []>} : vector<16x16xf32>, vector<16x64xf32>, vector<16x64xf32> -> vector<16x64xf32>
    %132 = arith.addf %124, %131 : vector<16x64xf32>
    %c7_125 = arith.constant 7 : index
    %c0_126 = arith.constant 0 : index
    %c0_127 = arith.constant 0 : index
    %133 = vector.load %arg7[%c7_125, %c0_126, %c0_127] : memref<9x64x64xbf16, #tpu.memory_space<vmem>>, vector<1x64x64xbf16>
    %134 = vector.shape_cast %133 : vector<1x64x64xbf16> to vector<64x64xbf16>
    %135 = arith.extf %134 : vector<64x64xbf16> to vector<64x64xf32>
    %cst_128 = arith.constant dense<0.000000e+00> : vector<16x64xf32>
    %136 = tpu.matmul %76, %135, %cst_128 {dimension_numbers = #tpu.dot_dimension_numbers<[1], [0], [0], [1], [0, 0, 1, 1], [], []>} : vector<16x64xf32>, vector<64x64xf32>, vector<16x64xf32> -> vector<16x64xf32>
    %c7_129 = arith.constant 7 : index
    %c0_130 = arith.constant 0 : index
    %c0_131 = arith.constant 0 : index
    %137 = vector.load %arg6[%c7_129, %c0_130, %c0_131] : memref<9x16x16xf32, #tpu.memory_space<vmem>>, vector<1x16x16xf32>
    %138 = vector.shape_cast %137 : vector<1x16x16xf32> to vector<16x16xf32>
    %cst_132 = arith.constant dense<0.000000e+00> : vector<16x64xf32>
    %139 = tpu.matmul %138, %136, %cst_132 {dimension_numbers = #tpu.dot_dimension_numbers<[1], [0], [0], [1], [0, 0, 1, 1], [], []>} : vector<16x16xf32>, vector<16x64xf32>, vector<16x64xf32> -> vector<16x64xf32>
    %140 = arith.addf %132, %139 : vector<16x64xf32>
    %c8_133 = arith.constant 8 : index
    %c0_134 = arith.constant 0 : index
    %c0_135 = arith.constant 0 : index
    %141 = vector.load %arg7[%c8_133, %c0_134, %c0_135] : memref<9x64x64xbf16, #tpu.memory_space<vmem>>, vector<1x64x64xbf16>
    %142 = vector.shape_cast %141 : vector<1x64x64xbf16> to vector<64x64xbf16>
    %143 = arith.extf %142 : vector<64x64xbf16> to vector<64x64xf32>
    %cst_136 = arith.constant dense<0.000000e+00> : vector<16x64xf32>
    %144 = tpu.matmul %76, %143, %cst_136 {dimension_numbers = #tpu.dot_dimension_numbers<[1], [0], [0], [1], [0, 0, 1, 1], [], []>} : vector<16x64xf32>, vector<64x64xf32>, vector<16x64xf32> -> vector<16x64xf32>
    %c8_137 = arith.constant 8 : index
    %c0_138 = arith.constant 0 : index
    %c0_139 = arith.constant 0 : index
    %145 = vector.load %arg6[%c8_137, %c0_138, %c0_139] : memref<9x16x16xf32, #tpu.memory_space<vmem>>, vector<1x16x16xf32>
    %146 = vector.shape_cast %145 : vector<1x16x16xf32> to vector<16x16xf32>
    %cst_140 = arith.constant dense<0.000000e+00> : vector<16x64xf32>
    %147 = tpu.matmul %146, %144, %cst_140 {dimension_numbers = #tpu.dot_dimension_numbers<[1], [0], [0], [1], [0, 0, 1, 1], [], []>} : vector<16x16xf32>, vector<16x64xf32>, vector<16x64xf32> -> vector<16x64xf32>
    %148 = arith.addf %140, %147 : vector<16x64xf32>
    %c0_141 = arith.constant 0 : index
    %c0_142 = arith.constant 0 : index
    %149 = vector.load %arg8[%c0_141, %c0_142] : memref<16x1xf32, #tpu.memory_space<vmem>>, vector<16x1xf32>
    %150 = vector.broadcast %149 : vector<16x1xf32> to vector<16x64xf32>
    %151 = arith.addf %148, %150 : vector<16x64xf32>
    %152 = arith.addf %151, %77 : vector<16x64xf32>
    %cst_143 = arith.constant 0.000000e+00 : f32
    %153 = vector.broadcast %cst_143 : f32 to vector<16x64xf32>
    %154 = arith.maximumf %152, %153 : vector<16x64xf32>
    %c0_144 = arith.constant 0 : index
    %c0_145 = arith.constant 0 : index
    %c0_146 = arith.constant 0 : index
    %155 = vector.load %arg10[%c0_144, %c0_145, %c0_146] : memref<9x64x16xbf16, #tpu.memory_space<vmem>>, vector<1x64x16xbf16>
    %156 = vector.shape_cast %155 : vector<1x64x16xbf16> to vector<64x16xbf16>
    %157 = arith.extf %156 : vector<64x16xbf16> to vector<64x16xf32>
    %cst_147 = arith.constant dense<0.000000e+00> : vector<16x16xf32>
    %158 = tpu.matmul %154, %157, %cst_147 {dimension_numbers = #tpu.dot_dimension_numbers<[1], [0], [0], [1], [0, 0, 1, 1], [], []>} : vector<16x64xf32>, vector<64x16xf32>, vector<16x16xf32> -> vector<16x16xf32>
    %c0_148 = arith.constant 0 : index
    %c0_149 = arith.constant 0 : index
    %c0_150 = arith.constant 0 : index
    %159 = vector.load %arg9[%c0_148, %c0_149, %c0_150] : memref<9x16x16xf32, #tpu.memory_space<vmem>>, vector<1x16x16xf32>
    %160 = vector.shape_cast %159 : vector<1x16x16xf32> to vector<16x16xf32>
    %cst_151 = arith.constant dense<0.000000e+00> : vector<16x16xf32>
    %161 = tpu.matmul %160, %158, %cst_151 {dimension_numbers = #tpu.dot_dimension_numbers<[1], [0], [0], [1], [0, 0, 1, 1], [], []>} : vector<16x16xf32>, vector<16x16xf32>, vector<16x16xf32> -> vector<16x16xf32>
    %c1_152 = arith.constant 1 : index
    %c0_153 = arith.constant 0 : index
    %c0_154 = arith.constant 0 : index
    %162 = vector.load %arg10[%c1_152, %c0_153, %c0_154] : memref<9x64x16xbf16, #tpu.memory_space<vmem>>, vector<1x64x16xbf16>
    %163 = vector.shape_cast %162 : vector<1x64x16xbf16> to vector<64x16xbf16>
    %164 = arith.extf %163 : vector<64x16xbf16> to vector<64x16xf32>
    %cst_155 = arith.constant dense<0.000000e+00> : vector<16x16xf32>
    %165 = tpu.matmul %154, %164, %cst_155 {dimension_numbers = #tpu.dot_dimension_numbers<[1], [0], [0], [1], [0, 0, 1, 1], [], []>} : vector<16x64xf32>, vector<64x16xf32>, vector<16x16xf32> -> vector<16x16xf32>
    %c1_156 = arith.constant 1 : index
    %c0_157 = arith.constant 0 : index
    %c0_158 = arith.constant 0 : index
    %166 = vector.load %arg9[%c1_156, %c0_157, %c0_158] : memref<9x16x16xf32, #tpu.memory_space<vmem>>, vector<1x16x16xf32>
    %167 = vector.shape_cast %166 : vector<1x16x16xf32> to vector<16x16xf32>
    %cst_159 = arith.constant dense<0.000000e+00> : vector<16x16xf32>
    %168 = tpu.matmul %167, %165, %cst_159 {dimension_numbers = #tpu.dot_dimension_numbers<[1], [0], [0], [1], [0, 0, 1, 1], [], []>} : vector<16x16xf32>, vector<16x16xf32>, vector<16x16xf32> -> vector<16x16xf32>
    %169 = arith.addf %161, %168 : vector<16x16xf32>
    %c2_160 = arith.constant 2 : index
    %c0_161 = arith.constant 0 : index
    %c0_162 = arith.constant 0 : index
    %170 = vector.load %arg10[%c2_160, %c0_161, %c0_162] : memref<9x64x16xbf16, #tpu.memory_space<vmem>>, vector<1x64x16xbf16>
    %171 = vector.shape_cast %170 : vector<1x64x16xbf16> to vector<64x16xbf16>
    %172 = arith.extf %171 : vector<64x16xbf16> to vector<64x16xf32>
    %cst_163 = arith.constant dense<0.000000e+00> : vector<16x16xf32>
    %173 = tpu.matmul %154, %172, %cst_163 {dimension_numbers = #tpu.dot_dimension_numbers<[1], [0], [0], [1], [0, 0, 1, 1], [], []>} : vector<16x64xf32>, vector<64x16xf32>, vector<16x16xf32> -> vector<16x16xf32>
    %c2_164 = arith.constant 2 : index
    %c0_165 = arith.constant 0 : index
    %c0_166 = arith.constant 0 : index
    %174 = vector.load %arg9[%c2_164, %c0_165, %c0_166] : memref<9x16x16xf32, #tpu.memory_space<vmem>>, vector<1x16x16xf32>
    %175 = vector.shape_cast %174 : vector<1x16x16xf32> to vector<16x16xf32>
    %cst_167 = arith.constant dense<0.000000e+00> : vector<16x16xf32>
    %176 = tpu.matmul %175, %173, %cst_167 {dimension_numbers = #tpu.dot_dimension_numbers<[1], [0], [0], [1], [0, 0, 1, 1], [], []>} : vector<16x16xf32>, vector<16x16xf32>, vector<16x16xf32> -> vector<16x16xf32>
    %177 = arith.addf %169, %176 : vector<16x16xf32>
    %c3_168 = arith.constant 3 : index
    %c0_169 = arith.constant 0 : index
    %c0_170 = arith.constant 0 : index
    %178 = vector.load %arg10[%c3_168, %c0_169, %c0_170] : memref<9x64x16xbf16, #tpu.memory_space<vmem>>, vector<1x64x16xbf16>
    %179 = vector.shape_cast %178 : vector<1x64x16xbf16> to vector<64x16xbf16>
    %180 = arith.extf %179 : vector<64x16xbf16> to vector<64x16xf32>
    %cst_171 = arith.constant dense<0.000000e+00> : vector<16x16xf32>
    %181 = tpu.matmul %154, %180, %cst_171 {dimension_numbers = #tpu.dot_dimension_numbers<[1], [0], [0], [1], [0, 0, 1, 1], [], []>} : vector<16x64xf32>, vector<64x16xf32>, vector<16x16xf32> -> vector<16x16xf32>
    %c3_172 = arith.constant 3 : index
    %c0_173 = arith.constant 0 : index
    %c0_174 = arith.constant 0 : index
    %182 = vector.load %arg9[%c3_172, %c0_173, %c0_174] : memref<9x16x16xf32, #tpu.memory_space<vmem>>, vector<1x16x16xf32>
    %183 = vector.shape_cast %182 : vector<1x16x16xf32> to vector<16x16xf32>
    %cst_175 = arith.constant dense<0.000000e+00> : vector<16x16xf32>
    %184 = tpu.matmul %183, %181, %cst_175 {dimension_numbers = #tpu.dot_dimension_numbers<[1], [0], [0], [1], [0, 0, 1, 1], [], []>} : vector<16x16xf32>, vector<16x16xf32>, vector<16x16xf32> -> vector<16x16xf32>
    %185 = arith.addf %177, %184 : vector<16x16xf32>
    %c4_176 = arith.constant 4 : index
    %c0_177 = arith.constant 0 : index
    %c0_178 = arith.constant 0 : index
    %186 = vector.load %arg10[%c4_176, %c0_177, %c0_178] : memref<9x64x16xbf16, #tpu.memory_space<vmem>>, vector<1x64x16xbf16>
    %187 = vector.shape_cast %186 : vector<1x64x16xbf16> to vector<64x16xbf16>
    %188 = arith.extf %187 : vector<64x16xbf16> to vector<64x16xf32>
    %cst_179 = arith.constant dense<0.000000e+00> : vector<16x16xf32>
    %189 = tpu.matmul %154, %188, %cst_179 {dimension_numbers = #tpu.dot_dimension_numbers<[1], [0], [0], [1], [0, 0, 1, 1], [], []>} : vector<16x64xf32>, vector<64x16xf32>, vector<16x16xf32> -> vector<16x16xf32>
    %c4_180 = arith.constant 4 : index
    %c0_181 = arith.constant 0 : index
    %c0_182 = arith.constant 0 : index
    %190 = vector.load %arg9[%c4_180, %c0_181, %c0_182] : memref<9x16x16xf32, #tpu.memory_space<vmem>>, vector<1x16x16xf32>
    %191 = vector.shape_cast %190 : vector<1x16x16xf32> to vector<16x16xf32>
    %cst_183 = arith.constant dense<0.000000e+00> : vector<16x16xf32>
    %192 = tpu.matmul %191, %189, %cst_183 {dimension_numbers = #tpu.dot_dimension_numbers<[1], [0], [0], [1], [0, 0, 1, 1], [], []>} : vector<16x16xf32>, vector<16x16xf32>, vector<16x16xf32> -> vector<16x16xf32>
    %193 = arith.addf %185, %192 : vector<16x16xf32>
    %c5_184 = arith.constant 5 : index
    %c0_185 = arith.constant 0 : index
    %c0_186 = arith.constant 0 : index
    %194 = vector.load %arg10[%c5_184, %c0_185, %c0_186] : memref<9x64x16xbf16, #tpu.memory_space<vmem>>, vector<1x64x16xbf16>
    %195 = vector.shape_cast %194 : vector<1x64x16xbf16> to vector<64x16xbf16>
    %196 = arith.extf %195 : vector<64x16xbf16> to vector<64x16xf32>
    %cst_187 = arith.constant dense<0.000000e+00> : vector<16x16xf32>
    %197 = tpu.matmul %154, %196, %cst_187 {dimension_numbers = #tpu.dot_dimension_numbers<[1], [0], [0], [1], [0, 0, 1, 1], [], []>} : vector<16x64xf32>, vector<64x16xf32>, vector<16x16xf32> -> vector<16x16xf32>
    %c5_188 = arith.constant 5 : index
    %c0_189 = arith.constant 0 : index
    %c0_190 = arith.constant 0 : index
    %198 = vector.load %arg9[%c5_188, %c0_189, %c0_190] : memref<9x16x16xf32, #tpu.memory_space<vmem>>, vector<1x16x16xf32>
    %199 = vector.shape_cast %198 : vector<1x16x16xf32> to vector<16x16xf32>
    %cst_191 = arith.constant dense<0.000000e+00> : vector<16x16xf32>
    %200 = tpu.matmul %199, %197, %cst_191 {dimension_numbers = #tpu.dot_dimension_numbers<[1], [0], [0], [1], [0, 0, 1, 1], [], []>} : vector<16x16xf32>, vector<16x16xf32>, vector<16x16xf32> -> vector<16x16xf32>
    %201 = arith.addf %193, %200 : vector<16x16xf32>
    %c6_192 = arith.constant 6 : index
    %c0_193 = arith.constant 0 : index
    %c0_194 = arith.constant 0 : index
    %202 = vector.load %arg10[%c6_192, %c0_193, %c0_194] : memref<9x64x16xbf16, #tpu.memory_space<vmem>>, vector<1x64x16xbf16>
    %203 = vector.shape_cast %202 : vector<1x64x16xbf16> to vector<64x16xbf16>
    %204 = arith.extf %203 : vector<64x16xbf16> to vector<64x16xf32>
    %cst_195 = arith.constant dense<0.000000e+00> : vector<16x16xf32>
    %205 = tpu.matmul %154, %204, %cst_195 {dimension_numbers = #tpu.dot_dimension_numbers<[1], [0], [0], [1], [0, 0, 1, 1], [], []>} : vector<16x64xf32>, vector<64x16xf32>, vector<16x16xf32> -> vector<16x16xf32>
    %c6_196 = arith.constant 6 : index
    %c0_197 = arith.constant 0 : index
    %c0_198 = arith.constant 0 : index
    %206 = vector.load %arg9[%c6_196, %c0_197, %c0_198] : memref<9x16x16xf32, #tpu.memory_space<vmem>>, vector<1x16x16xf32>
    %207 = vector.shape_cast %206 : vector<1x16x16xf32> to vector<16x16xf32>
    %cst_199 = arith.constant dense<0.000000e+00> : vector<16x16xf32>
    %208 = tpu.matmul %207, %205, %cst_199 {dimension_numbers = #tpu.dot_dimension_numbers<[1], [0], [0], [1], [0, 0, 1, 1], [], []>} : vector<16x16xf32>, vector<16x16xf32>, vector<16x16xf32> -> vector<16x16xf32>
    %209 = arith.addf %201, %208 : vector<16x16xf32>
    %c7_200 = arith.constant 7 : index
    %c0_201 = arith.constant 0 : index
    %c0_202 = arith.constant 0 : index
    %210 = vector.load %arg10[%c7_200, %c0_201, %c0_202] : memref<9x64x16xbf16, #tpu.memory_space<vmem>>, vector<1x64x16xbf16>
    %211 = vector.shape_cast %210 : vector<1x64x16xbf16> to vector<64x16xbf16>
    %212 = arith.extf %211 : vector<64x16xbf16> to vector<64x16xf32>
    %cst_203 = arith.constant dense<0.000000e+00> : vector<16x16xf32>
    %213 = tpu.matmul %154, %212, %cst_203 {dimension_numbers = #tpu.dot_dimension_numbers<[1], [0], [0], [1], [0, 0, 1, 1], [], []>} : vector<16x64xf32>, vector<64x16xf32>, vector<16x16xf32> -> vector<16x16xf32>
    %c7_204 = arith.constant 7 : index
    %c0_205 = arith.constant 0 : index
    %c0_206 = arith.constant 0 : index
    %214 = vector.load %arg9[%c7_204, %c0_205, %c0_206] : memref<9x16x16xf32, #tpu.memory_space<vmem>>, vector<1x16x16xf32>
    %215 = vector.shape_cast %214 : vector<1x16x16xf32> to vector<16x16xf32>
    %cst_207 = arith.constant dense<0.000000e+00> : vector<16x16xf32>
    %216 = tpu.matmul %215, %213, %cst_207 {dimension_numbers = #tpu.dot_dimension_numbers<[1], [0], [0], [1], [0, 0, 1, 1], [], []>} : vector<16x16xf32>, vector<16x16xf32>, vector<16x16xf32> -> vector<16x16xf32>
    %217 = arith.addf %209, %216 : vector<16x16xf32>
    %c8_208 = arith.constant 8 : index
    %c0_209 = arith.constant 0 : index
    %c0_210 = arith.constant 0 : index
    %218 = vector.load %arg10[%c8_208, %c0_209, %c0_210] : memref<9x64x16xbf16, #tpu.memory_space<vmem>>, vector<1x64x16xbf16>
    %219 = vector.shape_cast %218 : vector<1x64x16xbf16> to vector<64x16xbf16>
    %220 = arith.extf %219 : vector<64x16xbf16> to vector<64x16xf32>
    %cst_211 = arith.constant dense<0.000000e+00> : vector<16x16xf32>
    %221 = tpu.matmul %154, %220, %cst_211 {dimension_numbers = #tpu.dot_dimension_numbers<[1], [0], [0], [1], [0, 0, 1, 1], [], []>} : vector<16x64xf32>, vector<64x16xf32>, vector<16x16xf32> -> vector<16x16xf32>
    %c8_212 = arith.constant 8 : index
    %c0_213 = arith.constant 0 : index
    %c0_214 = arith.constant 0 : index
    %222 = vector.load %arg9[%c8_212, %c0_213, %c0_214] : memref<9x16x16xf32, #tpu.memory_space<vmem>>, vector<1x16x16xf32>
    %223 = vector.shape_cast %222 : vector<1x16x16xf32> to vector<16x16xf32>
    %cst_215 = arith.constant dense<0.000000e+00> : vector<16x16xf32>
    %224 = tpu.matmul %223, %221, %cst_215 {dimension_numbers = #tpu.dot_dimension_numbers<[1], [0], [0], [1], [0, 0, 1, 1], [], []>} : vector<16x16xf32>, vector<16x16xf32>, vector<16x16xf32> -> vector<16x16xf32>
    %225 = arith.addf %217, %224 : vector<16x16xf32>
    %c0_216 = arith.constant 0 : index
    %c0_217 = arith.constant 0 : index
    %226 = vector.load %arg11[%c0_216, %c0_217] : memref<16x1xf32, #tpu.memory_space<vmem>>, vector<16x1xf32>
    %227 = vector.broadcast %226 : vector<16x1xf32> to vector<16x16xf32>
    %228 = arith.addf %225, %227 : vector<16x16xf32>
    %cst_218 = arith.constant 0.000000e+00 : f32
    %229 = vector.broadcast %cst_218 : f32 to vector<16x16xf32>
    %230 = arith.maximumf %228, %229 : vector<16x16xf32>
    %c0_219 = arith.constant 0 : index
    %c0_220 = arith.constant 0 : index
    %231 = vector.load %arg2[%c0_219, %c0_220] : memref<32x16xf32, #tpu.memory_space<vmem>>, vector<32x16xf32>
    %c0_221 = arith.constant 0 : index
    %c0_222 = arith.constant 0 : index
    %c0_223 = arith.constant 0 : index
    %232 = vector.load %arg13[%c0_221, %c0_222, %c0_223] : memref<9x16x16xbf16, #tpu.memory_space<vmem>>, vector<1x16x16xbf16>
    %233 = vector.shape_cast %232 : vector<1x16x16xbf16> to vector<16x16xbf16>
    %234 = arith.extf %233 : vector<16x16xbf16> to vector<16x16xf32>
    %cst_224 = arith.constant dense<0.000000e+00> : vector<16x16xf32>
    %235 = tpu.matmul %230, %234, %cst_224 {dimension_numbers = #tpu.dot_dimension_numbers<[1], [0], [0], [1], [0, 0, 1, 1], [], []>} : vector<16x16xf32>, vector<16x16xf32>, vector<16x16xf32> -> vector<16x16xf32>
    %c0_225 = arith.constant 0 : index
    %c0_226 = arith.constant 0 : index
    %c0_227 = arith.constant 0 : index
    %236 = vector.load %arg12[%c0_225, %c0_226, %c0_227] : memref<9x32x16xf32, #tpu.memory_space<vmem>>, vector<1x32x16xf32>
    %237 = vector.shape_cast %236 : vector<1x32x16xf32> to vector<32x16xf32>
    %cst_228 = arith.constant dense<0.000000e+00> : vector<32x16xf32>
    %238 = tpu.matmul %237, %235, %cst_228 {dimension_numbers = #tpu.dot_dimension_numbers<[1], [0], [0], [1], [0, 0, 1, 1], [], []>} : vector<32x16xf32>, vector<16x16xf32>, vector<32x16xf32> -> vector<32x16xf32>
    %c1_229 = arith.constant 1 : index
    %c0_230 = arith.constant 0 : index
    %c0_231 = arith.constant 0 : index
    %239 = vector.load %arg13[%c1_229, %c0_230, %c0_231] : memref<9x16x16xbf16, #tpu.memory_space<vmem>>, vector<1x16x16xbf16>
    %240 = vector.shape_cast %239 : vector<1x16x16xbf16> to vector<16x16xbf16>
    %241 = arith.extf %240 : vector<16x16xbf16> to vector<16x16xf32>
    %cst_232 = arith.constant dense<0.000000e+00> : vector<16x16xf32>
    %242 = tpu.matmul %230, %241, %cst_232 {dimension_numbers = #tpu.dot_dimension_numbers<[1], [0], [0], [1], [0, 0, 1, 1], [], []>} : vector<16x16xf32>, vector<16x16xf32>, vector<16x16xf32> -> vector<16x16xf32>
    %c1_233 = arith.constant 1 : index
    %c0_234 = arith.constant 0 : index
    %c0_235 = arith.constant 0 : index
    %243 = vector.load %arg12[%c1_233, %c0_234, %c0_235] : memref<9x32x16xf32, #tpu.memory_space<vmem>>, vector<1x32x16xf32>
    %244 = vector.shape_cast %243 : vector<1x32x16xf32> to vector<32x16xf32>
    %cst_236 = arith.constant dense<0.000000e+00> : vector<32x16xf32>
    %245 = tpu.matmul %244, %242, %cst_236 {dimension_numbers = #tpu.dot_dimension_numbers<[1], [0], [0], [1], [0, 0, 1, 1], [], []>} : vector<32x16xf32>, vector<16x16xf32>, vector<32x16xf32> -> vector<32x16xf32>
    %246 = arith.addf %238, %245 : vector<32x16xf32>
    %c2_237 = arith.constant 2 : index
    %c0_238 = arith.constant 0 : index
    %c0_239 = arith.constant 0 : index
    %247 = vector.load %arg13[%c2_237, %c0_238, %c0_239] : memref<9x16x16xbf16, #tpu.memory_space<vmem>>, vector<1x16x16xbf16>
    %248 = vector.shape_cast %247 : vector<1x16x16xbf16> to vector<16x16xbf16>
    %249 = arith.extf %248 : vector<16x16xbf16> to vector<16x16xf32>
    %cst_240 = arith.constant dense<0.000000e+00> : vector<16x16xf32>
    %250 = tpu.matmul %230, %249, %cst_240 {dimension_numbers = #tpu.dot_dimension_numbers<[1], [0], [0], [1], [0, 0, 1, 1], [], []>} : vector<16x16xf32>, vector<16x16xf32>, vector<16x16xf32> -> vector<16x16xf32>
    %c2_241 = arith.constant 2 : index
    %c0_242 = arith.constant 0 : index
    %c0_243 = arith.constant 0 : index
    %251 = vector.load %arg12[%c2_241, %c0_242, %c0_243] : memref<9x32x16xf32, #tpu.memory_space<vmem>>, vector<1x32x16xf32>
    %252 = vector.shape_cast %251 : vector<1x32x16xf32> to vector<32x16xf32>
    %cst_244 = arith.constant dense<0.000000e+00> : vector<32x16xf32>
    %253 = tpu.matmul %252, %250, %cst_244 {dimension_numbers = #tpu.dot_dimension_numbers<[1], [0], [0], [1], [0, 0, 1, 1], [], []>} : vector<32x16xf32>, vector<16x16xf32>, vector<32x16xf32> -> vector<32x16xf32>
    %254 = arith.addf %246, %253 : vector<32x16xf32>
    %c3_245 = arith.constant 3 : index
    %c0_246 = arith.constant 0 : index
    %c0_247 = arith.constant 0 : index
    %255 = vector.load %arg13[%c3_245, %c0_246, %c0_247] : memref<9x16x16xbf16, #tpu.memory_space<vmem>>, vector<1x16x16xbf16>
    %256 = vector.shape_cast %255 : vector<1x16x16xbf16> to vector<16x16xbf16>
    %257 = arith.extf %256 : vector<16x16xbf16> to vector<16x16xf32>
    %cst_248 = arith.constant dense<0.000000e+00> : vector<16x16xf32>
    %258 = tpu.matmul %230, %257, %cst_248 {dimension_numbers = #tpu.dot_dimension_numbers<[1], [0], [0], [1], [0, 0, 1, 1], [], []>} : vector<16x16xf32>, vector<16x16xf32>, vector<16x16xf32> -> vector<16x16xf32>
    %c3_249 = arith.constant 3 : index
    %c0_250 = arith.constant 0 : index
    %c0_251 = arith.constant 0 : index
    %259 = vector.load %arg12[%c3_249, %c0_250, %c0_251] : memref<9x32x16xf32, #tpu.memory_space<vmem>>, vector<1x32x16xf32>
    %260 = vector.shape_cast %259 : vector<1x32x16xf32> to vector<32x16xf32>
    %cst_252 = arith.constant dense<0.000000e+00> : vector<32x16xf32>
    %261 = tpu.matmul %260, %258, %cst_252 {dimension_numbers = #tpu.dot_dimension_numbers<[1], [0], [0], [1], [0, 0, 1, 1], [], []>} : vector<32x16xf32>, vector<16x16xf32>, vector<32x16xf32> -> vector<32x16xf32>
    %262 = arith.addf %254, %261 : vector<32x16xf32>
    %c4_253 = arith.constant 4 : index
    %c0_254 = arith.constant 0 : index
    %c0_255 = arith.constant 0 : index
    %263 = vector.load %arg13[%c4_253, %c0_254, %c0_255] : memref<9x16x16xbf16, #tpu.memory_space<vmem>>, vector<1x16x16xbf16>
    %264 = vector.shape_cast %263 : vector<1x16x16xbf16> to vector<16x16xbf16>
    %265 = arith.extf %264 : vector<16x16xbf16> to vector<16x16xf32>
    %cst_256 = arith.constant dense<0.000000e+00> : vector<16x16xf32>
    %266 = tpu.matmul %230, %265, %cst_256 {dimension_numbers = #tpu.dot_dimension_numbers<[1], [0], [0], [1], [0, 0, 1, 1], [], []>} : vector<16x16xf32>, vector<16x16xf32>, vector<16x16xf32> -> vector<16x16xf32>
    %c4_257 = arith.constant 4 : index
    %c0_258 = arith.constant 0 : index
    %c0_259 = arith.constant 0 : index
    %267 = vector.load %arg12[%c4_257, %c0_258, %c0_259] : memref<9x32x16xf32, #tpu.memory_space<vmem>>, vector<1x32x16xf32>
    %268 = vector.shape_cast %267 : vector<1x32x16xf32> to vector<32x16xf32>
    %cst_260 = arith.constant dense<0.000000e+00> : vector<32x16xf32>
    %269 = tpu.matmul %268, %266, %cst_260 {dimension_numbers = #tpu.dot_dimension_numbers<[1], [0], [0], [1], [0, 0, 1, 1], [], []>} : vector<32x16xf32>, vector<16x16xf32>, vector<32x16xf32> -> vector<32x16xf32>
    %270 = arith.addf %262, %269 : vector<32x16xf32>
    %c5_261 = arith.constant 5 : index
    %c0_262 = arith.constant 0 : index
    %c0_263 = arith.constant 0 : index
    %271 = vector.load %arg13[%c5_261, %c0_262, %c0_263] : memref<9x16x16xbf16, #tpu.memory_space<vmem>>, vector<1x16x16xbf16>
    %272 = vector.shape_cast %271 : vector<1x16x16xbf16> to vector<16x16xbf16>
    %273 = arith.extf %272 : vector<16x16xbf16> to vector<16x16xf32>
    %cst_264 = arith.constant dense<0.000000e+00> : vector<16x16xf32>
    %274 = tpu.matmul %230, %273, %cst_264 {dimension_numbers = #tpu.dot_dimension_numbers<[1], [0], [0], [1], [0, 0, 1, 1], [], []>} : vector<16x16xf32>, vector<16x16xf32>, vector<16x16xf32> -> vector<16x16xf32>
    %c5_265 = arith.constant 5 : index
    %c0_266 = arith.constant 0 : index
    %c0_267 = arith.constant 0 : index
    %275 = vector.load %arg12[%c5_265, %c0_266, %c0_267] : memref<9x32x16xf32, #tpu.memory_space<vmem>>, vector<1x32x16xf32>
    %276 = vector.shape_cast %275 : vector<1x32x16xf32> to vector<32x16xf32>
    %cst_268 = arith.constant dense<0.000000e+00> : vector<32x16xf32>
    %277 = tpu.matmul %276, %274, %cst_268 {dimension_numbers = #tpu.dot_dimension_numbers<[1], [0], [0], [1], [0, 0, 1, 1], [], []>} : vector<32x16xf32>, vector<16x16xf32>, vector<32x16xf32> -> vector<32x16xf32>
    %278 = arith.addf %270, %277 : vector<32x16xf32>
    %c6_269 = arith.constant 6 : index
    %c0_270 = arith.constant 0 : index
    %c0_271 = arith.constant 0 : index
    %279 = vector.load %arg13[%c6_269, %c0_270, %c0_271] : memref<9x16x16xbf16, #tpu.memory_space<vmem>>, vector<1x16x16xbf16>
    %280 = vector.shape_cast %279 : vector<1x16x16xbf16> to vector<16x16xbf16>
    %281 = arith.extf %280 : vector<16x16xbf16> to vector<16x16xf32>
    %cst_272 = arith.constant dense<0.000000e+00> : vector<16x16xf32>
    %282 = tpu.matmul %230, %281, %cst_272 {dimension_numbers = #tpu.dot_dimension_numbers<[1], [0], [0], [1], [0, 0, 1, 1], [], []>} : vector<16x16xf32>, vector<16x16xf32>, vector<16x16xf32> -> vector<16x16xf32>
    %c6_273 = arith.constant 6 : index
    %c0_274 = arith.constant 0 : index
    %c0_275 = arith.constant 0 : index
    %283 = vector.load %arg12[%c6_273, %c0_274, %c0_275] : memref<9x32x16xf32, #tpu.memory_space<vmem>>, vector<1x32x16xf32>
    %284 = vector.shape_cast %283 : vector<1x32x16xf32> to vector<32x16xf32>
    %cst_276 = arith.constant dense<0.000000e+00> : vector<32x16xf32>
    %285 = tpu.matmul %284, %282, %cst_276 {dimension_numbers = #tpu.dot_dimension_numbers<[1], [0], [0], [1], [0, 0, 1, 1], [], []>} : vector<32x16xf32>, vector<16x16xf32>, vector<32x16xf32> -> vector<32x16xf32>
    %286 = arith.addf %278, %285 : vector<32x16xf32>
    %c7_277 = arith.constant 7 : index
    %c0_278 = arith.constant 0 : index
    %c0_279 = arith.constant 0 : index
    %287 = vector.load %arg13[%c7_277, %c0_278, %c0_279] : memref<9x16x16xbf16, #tpu.memory_space<vmem>>, vector<1x16x16xbf16>
    %288 = vector.shape_cast %287 : vector<1x16x16xbf16> to vector<16x16xbf16>
    %289 = arith.extf %288 : vector<16x16xbf16> to vector<16x16xf32>
    %cst_280 = arith.constant dense<0.000000e+00> : vector<16x16xf32>
    %290 = tpu.matmul %230, %289, %cst_280 {dimension_numbers = #tpu.dot_dimension_numbers<[1], [0], [0], [1], [0, 0, 1, 1], [], []>} : vector<16x16xf32>, vector<16x16xf32>, vector<16x16xf32> -> vector<16x16xf32>
    %c7_281 = arith.constant 7 : index
    %c0_282 = arith.constant 0 : index
    %c0_283 = arith.constant 0 : index
    %291 = vector.load %arg12[%c7_281, %c0_282, %c0_283] : memref<9x32x16xf32, #tpu.memory_space<vmem>>, vector<1x32x16xf32>
    %292 = vector.shape_cast %291 : vector<1x32x16xf32> to vector<32x16xf32>
    %cst_284 = arith.constant dense<0.000000e+00> : vector<32x16xf32>
    %293 = tpu.matmul %292, %290, %cst_284 {dimension_numbers = #tpu.dot_dimension_numbers<[1], [0], [0], [1], [0, 0, 1, 1], [], []>} : vector<32x16xf32>, vector<16x16xf32>, vector<32x16xf32> -> vector<32x16xf32>
    %294 = arith.addf %286, %293 : vector<32x16xf32>
    %c8_285 = arith.constant 8 : index
    %c0_286 = arith.constant 0 : index
    %c0_287 = arith.constant 0 : index
    %295 = vector.load %arg13[%c8_285, %c0_286, %c0_287] : memref<9x16x16xbf16, #tpu.memory_space<vmem>>, vector<1x16x16xbf16>
    %296 = vector.shape_cast %295 : vector<1x16x16xbf16> to vector<16x16xbf16>
    %297 = arith.extf %296 : vector<16x16xbf16> to vector<16x16xf32>
    %cst_288 = arith.constant dense<0.000000e+00> : vector<16x16xf32>
    %298 = tpu.matmul %230, %297, %cst_288 {dimension_numbers = #tpu.dot_dimension_numbers<[1], [0], [0], [1], [0, 0, 1, 1], [], []>} : vector<16x16xf32>, vector<16x16xf32>, vector<16x16xf32> -> vector<16x16xf32>
    %c8_289 = arith.constant 8 : index
    %c0_290 = arith.constant 0 : index
    %c0_291 = arith.constant 0 : index
    %299 = vector.load %arg12[%c8_289, %c0_290, %c0_291] : memref<9x32x16xf32, #tpu.memory_space<vmem>>, vector<1x32x16xf32>
    %300 = vector.shape_cast %299 : vector<1x32x16xf32> to vector<32x16xf32>
    %cst_292 = arith.constant dense<0.000000e+00> : vector<32x16xf32>
    %301 = tpu.matmul %300, %298, %cst_292 {dimension_numbers = #tpu.dot_dimension_numbers<[1], [0], [0], [1], [0, 0, 1, 1], [], []>} : vector<32x16xf32>, vector<16x16xf32>, vector<32x16xf32> -> vector<32x16xf32>
    %302 = arith.addf %294, %301 : vector<32x16xf32>
    %c0_293 = arith.constant 0 : index
    %c0_294 = arith.constant 0 : index
    %303 = vector.load %arg14[%c0_293, %c0_294] : memref<32x1xf32, #tpu.memory_space<vmem>>, vector<32x1xf32>
    %304 = vector.broadcast %303 : vector<32x1xf32> to vector<32x16xf32>
    %305 = arith.addf %302, %304 : vector<32x16xf32>
    %306 = arith.addf %305, %231 : vector<32x16xf32>
    %cst_295 = arith.constant 0.000000e+00 : f32
    %307 = vector.broadcast %cst_295 : f32 to vector<32x16xf32>
    %308 = arith.maximumf %306, %307 : vector<32x16xf32>
    %c0_296 = arith.constant 0 : index
    %c0_297 = arith.constant 0 : index
    %c0_298 = arith.constant 0 : index
    %309 = vector.load %arg16[%c0_296, %c0_297, %c0_298] : memref<9x16x64xbf16, #tpu.memory_space<vmem>>, vector<1x16x64xbf16>
    %310 = vector.shape_cast %309 : vector<1x16x64xbf16> to vector<16x64xbf16>
    %311 = arith.extf %310 : vector<16x64xbf16> to vector<16x64xf32>
    %cst_299 = arith.constant dense<0.000000e+00> : vector<32x64xf32>
    %312 = tpu.matmul %308, %311, %cst_299 {dimension_numbers = #tpu.dot_dimension_numbers<[1], [0], [0], [1], [0, 0, 1, 1], [], []>} : vector<32x16xf32>, vector<16x64xf32>, vector<32x64xf32> -> vector<32x64xf32>
    %c0_300 = arith.constant 0 : index
    %c0_301 = arith.constant 0 : index
    %c0_302 = arith.constant 0 : index
    %313 = vector.load %arg15[%c0_300, %c0_301, %c0_302] : memref<9x16x32xf32, #tpu.memory_space<vmem>>, vector<1x16x32xf32>
    %314 = vector.shape_cast %313 : vector<1x16x32xf32> to vector<16x32xf32>
    %cst_303 = arith.constant dense<0.000000e+00> : vector<16x64xf32>
    %315 = tpu.matmul %314, %312, %cst_303 {dimension_numbers = #tpu.dot_dimension_numbers<[1], [0], [0], [1], [0, 0, 1, 1], [], []>} : vector<16x32xf32>, vector<32x64xf32>, vector<16x64xf32> -> vector<16x64xf32>
    %c1_304 = arith.constant 1 : index
    %c0_305 = arith.constant 0 : index
    %c0_306 = arith.constant 0 : index
    %316 = vector.load %arg16[%c1_304, %c0_305, %c0_306] : memref<9x16x64xbf16, #tpu.memory_space<vmem>>, vector<1x16x64xbf16>
    %317 = vector.shape_cast %316 : vector<1x16x64xbf16> to vector<16x64xbf16>
    %318 = arith.extf %317 : vector<16x64xbf16> to vector<16x64xf32>
    %cst_307 = arith.constant dense<0.000000e+00> : vector<32x64xf32>
    %319 = tpu.matmul %308, %318, %cst_307 {dimension_numbers = #tpu.dot_dimension_numbers<[1], [0], [0], [1], [0, 0, 1, 1], [], []>} : vector<32x16xf32>, vector<16x64xf32>, vector<32x64xf32> -> vector<32x64xf32>
    %c1_308 = arith.constant 1 : index
    %c0_309 = arith.constant 0 : index
    %c0_310 = arith.constant 0 : index
    %320 = vector.load %arg15[%c1_308, %c0_309, %c0_310] : memref<9x16x32xf32, #tpu.memory_space<vmem>>, vector<1x16x32xf32>
    %321 = vector.shape_cast %320 : vector<1x16x32xf32> to vector<16x32xf32>
    %cst_311 = arith.constant dense<0.000000e+00> : vector<16x64xf32>
    %322 = tpu.matmul %321, %319, %cst_311 {dimension_numbers = #tpu.dot_dimension_numbers<[1], [0], [0], [1], [0, 0, 1, 1], [], []>} : vector<16x32xf32>, vector<32x64xf32>, vector<16x64xf32> -> vector<16x64xf32>
    %323 = arith.addf %315, %322 : vector<16x64xf32>
    %c2_312 = arith.constant 2 : index
    %c0_313 = arith.constant 0 : index
    %c0_314 = arith.constant 0 : index
    %324 = vector.load %arg16[%c2_312, %c0_313, %c0_314] : memref<9x16x64xbf16, #tpu.memory_space<vmem>>, vector<1x16x64xbf16>
    %325 = vector.shape_cast %324 : vector<1x16x64xbf16> to vector<16x64xbf16>
    %326 = arith.extf %325 : vector<16x64xbf16> to vector<16x64xf32>
    %cst_315 = arith.constant dense<0.000000e+00> : vector<32x64xf32>
    %327 = tpu.matmul %308, %326, %cst_315 {dimension_numbers = #tpu.dot_dimension_numbers<[1], [0], [0], [1], [0, 0, 1, 1], [], []>} : vector<32x16xf32>, vector<16x64xf32>, vector<32x64xf32> -> vector<32x64xf32>
    %c2_316 = arith.constant 2 : index
    %c0_317 = arith.constant 0 : index
    %c0_318 = arith.constant 0 : index
    %328 = vector.load %arg15[%c2_316, %c0_317, %c0_318] : memref<9x16x32xf32, #tpu.memory_space<vmem>>, vector<1x16x32xf32>
    %329 = vector.shape_cast %328 : vector<1x16x32xf32> to vector<16x32xf32>
    %cst_319 = arith.constant dense<0.000000e+00> : vector<16x64xf32>
    %330 = tpu.matmul %329, %327, %cst_319 {dimension_numbers = #tpu.dot_dimension_numbers<[1], [0], [0], [1], [0, 0, 1, 1], [], []>} : vector<16x32xf32>, vector<32x64xf32>, vector<16x64xf32> -> vector<16x64xf32>
    %331 = arith.addf %323, %330 : vector<16x64xf32>
    %c3_320 = arith.constant 3 : index
    %c0_321 = arith.constant 0 : index
    %c0_322 = arith.constant 0 : index
    %332 = vector.load %arg16[%c3_320, %c0_321, %c0_322] : memref<9x16x64xbf16, #tpu.memory_space<vmem>>, vector<1x16x64xbf16>
    %333 = vector.shape_cast %332 : vector<1x16x64xbf16> to vector<16x64xbf16>
    %334 = arith.extf %333 : vector<16x64xbf16> to vector<16x64xf32>
    %cst_323 = arith.constant dense<0.000000e+00> : vector<32x64xf32>
    %335 = tpu.matmul %308, %334, %cst_323 {dimension_numbers = #tpu.dot_dimension_numbers<[1], [0], [0], [1], [0, 0, 1, 1], [], []>} : vector<32x16xf32>, vector<16x64xf32>, vector<32x64xf32> -> vector<32x64xf32>
    %c3_324 = arith.constant 3 : index
    %c0_325 = arith.constant 0 : index
    %c0_326 = arith.constant 0 : index
    %336 = vector.load %arg15[%c3_324, %c0_325, %c0_326] : memref<9x16x32xf32, #tpu.memory_space<vmem>>, vector<1x16x32xf32>
    %337 = vector.shape_cast %336 : vector<1x16x32xf32> to vector<16x32xf32>
    %cst_327 = arith.constant dense<0.000000e+00> : vector<16x64xf32>
    %338 = tpu.matmul %337, %335, %cst_327 {dimension_numbers = #tpu.dot_dimension_numbers<[1], [0], [0], [1], [0, 0, 1, 1], [], []>} : vector<16x32xf32>, vector<32x64xf32>, vector<16x64xf32> -> vector<16x64xf32>
    %339 = arith.addf %331, %338 : vector<16x64xf32>
    %c4_328 = arith.constant 4 : index
    %c0_329 = arith.constant 0 : index
    %c0_330 = arith.constant 0 : index
    %340 = vector.load %arg16[%c4_328, %c0_329, %c0_330] : memref<9x16x64xbf16, #tpu.memory_space<vmem>>, vector<1x16x64xbf16>
    %341 = vector.shape_cast %340 : vector<1x16x64xbf16> to vector<16x64xbf16>
    %342 = arith.extf %341 : vector<16x64xbf16> to vector<16x64xf32>
    %cst_331 = arith.constant dense<0.000000e+00> : vector<32x64xf32>
    %343 = tpu.matmul %308, %342, %cst_331 {dimension_numbers = #tpu.dot_dimension_numbers<[1], [0], [0], [1], [0, 0, 1, 1], [], []>} : vector<32x16xf32>, vector<16x64xf32>, vector<32x64xf32> -> vector<32x64xf32>
    %c4_332 = arith.constant 4 : index
    %c0_333 = arith.constant 0 : index
    %c0_334 = arith.constant 0 : index
    %344 = vector.load %arg15[%c4_332, %c0_333, %c0_334] : memref<9x16x32xf32, #tpu.memory_space<vmem>>, vector<1x16x32xf32>
    %345 = vector.shape_cast %344 : vector<1x16x32xf32> to vector<16x32xf32>
    %cst_335 = arith.constant dense<0.000000e+00> : vector<16x64xf32>
    %346 = tpu.matmul %345, %343, %cst_335 {dimension_numbers = #tpu.dot_dimension_numbers<[1], [0], [0], [1], [0, 0, 1, 1], [], []>} : vector<16x32xf32>, vector<32x64xf32>, vector<16x64xf32> -> vector<16x64xf32>
    %347 = arith.addf %339, %346 : vector<16x64xf32>
    %c5_336 = arith.constant 5 : index
    %c0_337 = arith.constant 0 : index
    %c0_338 = arith.constant 0 : index
    %348 = vector.load %arg16[%c5_336, %c0_337, %c0_338] : memref<9x16x64xbf16, #tpu.memory_space<vmem>>, vector<1x16x64xbf16>
    %349 = vector.shape_cast %348 : vector<1x16x64xbf16> to vector<16x64xbf16>
    %350 = arith.extf %349 : vector<16x64xbf16> to vector<16x64xf32>
    %cst_339 = arith.constant dense<0.000000e+00> : vector<32x64xf32>
    %351 = tpu.matmul %308, %350, %cst_339 {dimension_numbers = #tpu.dot_dimension_numbers<[1], [0], [0], [1], [0, 0, 1, 1], [], []>} : vector<32x16xf32>, vector<16x64xf32>, vector<32x64xf32> -> vector<32x64xf32>
    %c5_340 = arith.constant 5 : index
    %c0_341 = arith.constant 0 : index
    %c0_342 = arith.constant 0 : index
    %352 = vector.load %arg15[%c5_340, %c0_341, %c0_342] : memref<9x16x32xf32, #tpu.memory_space<vmem>>, vector<1x16x32xf32>
    %353 = vector.shape_cast %352 : vector<1x16x32xf32> to vector<16x32xf32>
    %cst_343 = arith.constant dense<0.000000e+00> : vector<16x64xf32>
    %354 = tpu.matmul %353, %351, %cst_343 {dimension_numbers = #tpu.dot_dimension_numbers<[1], [0], [0], [1], [0, 0, 1, 1], [], []>} : vector<16x32xf32>, vector<32x64xf32>, vector<16x64xf32> -> vector<16x64xf32>
    %355 = arith.addf %347, %354 : vector<16x64xf32>
    %c6_344 = arith.constant 6 : index
    %c0_345 = arith.constant 0 : index
    %c0_346 = arith.constant 0 : index
    %356 = vector.load %arg16[%c6_344, %c0_345, %c0_346] : memref<9x16x64xbf16, #tpu.memory_space<vmem>>, vector<1x16x64xbf16>
    %357 = vector.shape_cast %356 : vector<1x16x64xbf16> to vector<16x64xbf16>
    %358 = arith.extf %357 : vector<16x64xbf16> to vector<16x64xf32>
    %cst_347 = arith.constant dense<0.000000e+00> : vector<32x64xf32>
    %359 = tpu.matmul %308, %358, %cst_347 {dimension_numbers = #tpu.dot_dimension_numbers<[1], [0], [0], [1], [0, 0, 1, 1], [], []>} : vector<32x16xf32>, vector<16x64xf32>, vector<32x64xf32> -> vector<32x64xf32>
    %c6_348 = arith.constant 6 : index
    %c0_349 = arith.constant 0 : index
    %c0_350 = arith.constant 0 : index
    %360 = vector.load %arg15[%c6_348, %c0_349, %c0_350] : memref<9x16x32xf32, #tpu.memory_space<vmem>>, vector<1x16x32xf32>
    %361 = vector.shape_cast %360 : vector<1x16x32xf32> to vector<16x32xf32>
    %cst_351 = arith.constant dense<0.000000e+00> : vector<16x64xf32>
    %362 = tpu.matmul %361, %359, %cst_351 {dimension_numbers = #tpu.dot_dimension_numbers<[1], [0], [0], [1], [0, 0, 1, 1], [], []>} : vector<16x32xf32>, vector<32x64xf32>, vector<16x64xf32> -> vector<16x64xf32>
    %363 = arith.addf %355, %362 : vector<16x64xf32>
    %c7_352 = arith.constant 7 : index
    %c0_353 = arith.constant 0 : index
    %c0_354 = arith.constant 0 : index
    %364 = vector.load %arg16[%c7_352, %c0_353, %c0_354] : memref<9x16x64xbf16, #tpu.memory_space<vmem>>, vector<1x16x64xbf16>
    %365 = vector.shape_cast %364 : vector<1x16x64xbf16> to vector<16x64xbf16>
    %366 = arith.extf %365 : vector<16x64xbf16> to vector<16x64xf32>
    %cst_355 = arith.constant dense<0.000000e+00> : vector<32x64xf32>
    %367 = tpu.matmul %308, %366, %cst_355 {dimension_numbers = #tpu.dot_dimension_numbers<[1], [0], [0], [1], [0, 0, 1, 1], [], []>} : vector<32x16xf32>, vector<16x64xf32>, vector<32x64xf32> -> vector<32x64xf32>
    %c7_356 = arith.constant 7 : index
    %c0_357 = arith.constant 0 : index
    %c0_358 = arith.constant 0 : index
    %368 = vector.load %arg15[%c7_356, %c0_357, %c0_358] : memref<9x16x32xf32, #tpu.memory_space<vmem>>, vector<1x16x32xf32>
    %369 = vector.shape_cast %368 : vector<1x16x32xf32> to vector<16x32xf32>
    %cst_359 = arith.constant dense<0.000000e+00> : vector<16x64xf32>
    %370 = tpu.matmul %369, %367, %cst_359 {dimension_numbers = #tpu.dot_dimension_numbers<[1], [0], [0], [1], [0, 0, 1, 1], [], []>} : vector<16x32xf32>, vector<32x64xf32>, vector<16x64xf32> -> vector<16x64xf32>
    %371 = arith.addf %363, %370 : vector<16x64xf32>
    %c8_360 = arith.constant 8 : index
    %c0_361 = arith.constant 0 : index
    %c0_362 = arith.constant 0 : index
    %372 = vector.load %arg16[%c8_360, %c0_361, %c0_362] : memref<9x16x64xbf16, #tpu.memory_space<vmem>>, vector<1x16x64xbf16>
    %373 = vector.shape_cast %372 : vector<1x16x64xbf16> to vector<16x64xbf16>
    %374 = arith.extf %373 : vector<16x64xbf16> to vector<16x64xf32>
    %cst_363 = arith.constant dense<0.000000e+00> : vector<32x64xf32>
    %375 = tpu.matmul %308, %374, %cst_363 {dimension_numbers = #tpu.dot_dimension_numbers<[1], [0], [0], [1], [0, 0, 1, 1], [], []>} : vector<32x16xf32>, vector<16x64xf32>, vector<32x64xf32> -> vector<32x64xf32>
    %c8_364 = arith.constant 8 : index
    %c0_365 = arith.constant 0 : index
    %c0_366 = arith.constant 0 : index
    %376 = vector.load %arg15[%c8_364, %c0_365, %c0_366] : memref<9x16x32xf32, #tpu.memory_space<vmem>>, vector<1x16x32xf32>
    %377 = vector.shape_cast %376 : vector<1x16x32xf32> to vector<16x32xf32>
    %cst_367 = arith.constant dense<0.000000e+00> : vector<16x64xf32>
    %378 = tpu.matmul %377, %375, %cst_367 {dimension_numbers = #tpu.dot_dimension_numbers<[1], [0], [0], [1], [0, 0, 1, 1], [], []>} : vector<16x32xf32>, vector<32x64xf32>, vector<16x64xf32> -> vector<16x64xf32>
    %379 = arith.addf %371, %378 : vector<16x64xf32>
    %c0_368 = arith.constant 0 : index
    %c0_369 = arith.constant 0 : index
    %380 = vector.load %arg17[%c0_368, %c0_369] : memref<16x1xf32, #tpu.memory_space<vmem>>, vector<16x1xf32>
    %381 = vector.broadcast %380 : vector<16x1xf32> to vector<16x64xf32>
    %382 = arith.addf %379, %381 : vector<16x64xf32>
    %cst_370 = arith.constant 0.000000e+00 : f32
    %383 = vector.broadcast %cst_370 : f32 to vector<16x64xf32>
    %384 = arith.maximumf %382, %383 : vector<16x64xf32>
    %c0_371 = arith.constant 0 : index
    %c0_372 = arith.constant 0 : index
    %c0_373 = arith.constant 0 : index
    %385 = vector.load %arg19[%c0_371, %c0_372, %c0_373] : memref<9x64x256xbf16, #tpu.memory_space<vmem>>, vector<1x64x256xbf16>
    %386 = vector.shape_cast %385 : vector<1x64x256xbf16> to vector<64x256xbf16>
    %387 = arith.extf %386 : vector<64x256xbf16> to vector<64x256xf32>
    %cst_374 = arith.constant dense<0.000000e+00> : vector<16x256xf32>
    %388 = tpu.matmul %384, %387, %cst_374 {dimension_numbers = #tpu.dot_dimension_numbers<[1], [0], [0], [1], [0, 0, 1, 1], [], []>} : vector<16x64xf32>, vector<64x256xf32>, vector<16x256xf32> -> vector<16x256xf32>
    %c0_375 = arith.constant 0 : index
    %c0_376 = arith.constant 0 : index
    %c0_377 = arith.constant 0 : index
    %389 = vector.load %arg18[%c0_375, %c0_376, %c0_377] : memref<9x8x16xf32, #tpu.memory_space<vmem>>, vector<1x8x16xf32>
    %390 = vector.shape_cast %389 : vector<1x8x16xf32> to vector<8x16xf32>
    %cst_378 = arith.constant dense<0.000000e+00> : vector<8x256xf32>
    %391 = tpu.matmul %390, %388, %cst_378 {dimension_numbers = #tpu.dot_dimension_numbers<[1], [0], [0], [1], [0, 0, 1, 1], [], []>} : vector<8x16xf32>, vector<16x256xf32>, vector<8x256xf32> -> vector<8x256xf32>
    %c1_379 = arith.constant 1 : index
    %c0_380 = arith.constant 0 : index
    %c0_381 = arith.constant 0 : index
    %392 = vector.load %arg19[%c1_379, %c0_380, %c0_381] : memref<9x64x256xbf16, #tpu.memory_space<vmem>>, vector<1x64x256xbf16>
    %393 = vector.shape_cast %392 : vector<1x64x256xbf16> to vector<64x256xbf16>
    %394 = arith.extf %393 : vector<64x256xbf16> to vector<64x256xf32>
    %cst_382 = arith.constant dense<0.000000e+00> : vector<16x256xf32>
    %395 = tpu.matmul %384, %394, %cst_382 {dimension_numbers = #tpu.dot_dimension_numbers<[1], [0], [0], [1], [0, 0, 1, 1], [], []>} : vector<16x64xf32>, vector<64x256xf32>, vector<16x256xf32> -> vector<16x256xf32>
    %c1_383 = arith.constant 1 : index
    %c0_384 = arith.constant 0 : index
    %c0_385 = arith.constant 0 : index
    %396 = vector.load %arg18[%c1_383, %c0_384, %c0_385] : memref<9x8x16xf32, #tpu.memory_space<vmem>>, vector<1x8x16xf32>
    %397 = vector.shape_cast %396 : vector<1x8x16xf32> to vector<8x16xf32>
    %cst_386 = arith.constant dense<0.000000e+00> : vector<8x256xf32>
    %398 = tpu.matmul %397, %395, %cst_386 {dimension_numbers = #tpu.dot_dimension_numbers<[1], [0], [0], [1], [0, 0, 1, 1], [], []>} : vector<8x16xf32>, vector<16x256xf32>, vector<8x256xf32> -> vector<8x256xf32>
    %399 = arith.addf %391, %398 : vector<8x256xf32>
    %c2_387 = arith.constant 2 : index
    %c0_388 = arith.constant 0 : index
    %c0_389 = arith.constant 0 : index
    %400 = vector.load %arg19[%c2_387, %c0_388, %c0_389] : memref<9x64x256xbf16, #tpu.memory_space<vmem>>, vector<1x64x256xbf16>
    %401 = vector.shape_cast %400 : vector<1x64x256xbf16> to vector<64x256xbf16>
    %402 = arith.extf %401 : vector<64x256xbf16> to vector<64x256xf32>
    %cst_390 = arith.constant dense<0.000000e+00> : vector<16x256xf32>
    %403 = tpu.matmul %384, %402, %cst_390 {dimension_numbers = #tpu.dot_dimension_numbers<[1], [0], [0], [1], [0, 0, 1, 1], [], []>} : vector<16x64xf32>, vector<64x256xf32>, vector<16x256xf32> -> vector<16x256xf32>
    %c2_391 = arith.constant 2 : index
    %c0_392 = arith.constant 0 : index
    %c0_393 = arith.constant 0 : index
    %404 = vector.load %arg18[%c2_391, %c0_392, %c0_393] : memref<9x8x16xf32, #tpu.memory_space<vmem>>, vector<1x8x16xf32>
    %405 = vector.shape_cast %404 : vector<1x8x16xf32> to vector<8x16xf32>
    %cst_394 = arith.constant dense<0.000000e+00> : vector<8x256xf32>
    %406 = tpu.matmul %405, %403, %cst_394 {dimension_numbers = #tpu.dot_dimension_numbers<[1], [0], [0], [1], [0, 0, 1, 1], [], []>} : vector<8x16xf32>, vector<16x256xf32>, vector<8x256xf32> -> vector<8x256xf32>
    %407 = arith.addf %399, %406 : vector<8x256xf32>
    %c3_395 = arith.constant 3 : index
    %c0_396 = arith.constant 0 : index
    %c0_397 = arith.constant 0 : index
    %408 = vector.load %arg19[%c3_395, %c0_396, %c0_397] : memref<9x64x256xbf16, #tpu.memory_space<vmem>>, vector<1x64x256xbf16>
    %409 = vector.shape_cast %408 : vector<1x64x256xbf16> to vector<64x256xbf16>
    %410 = arith.extf %409 : vector<64x256xbf16> to vector<64x256xf32>
    %cst_398 = arith.constant dense<0.000000e+00> : vector<16x256xf32>
    %411 = tpu.matmul %384, %410, %cst_398 {dimension_numbers = #tpu.dot_dimension_numbers<[1], [0], [0], [1], [0, 0, 1, 1], [], []>} : vector<16x64xf32>, vector<64x256xf32>, vector<16x256xf32> -> vector<16x256xf32>
    %c3_399 = arith.constant 3 : index
    %c0_400 = arith.constant 0 : index
    %c0_401 = arith.constant 0 : index
    %412 = vector.load %arg18[%c3_399, %c0_400, %c0_401] : memref<9x8x16xf32, #tpu.memory_space<vmem>>, vector<1x8x16xf32>
    %413 = vector.shape_cast %412 : vector<1x8x16xf32> to vector<8x16xf32>
    %cst_402 = arith.constant dense<0.000000e+00> : vector<8x256xf32>
    %414 = tpu.matmul %413, %411, %cst_402 {dimension_numbers = #tpu.dot_dimension_numbers<[1], [0], [0], [1], [0, 0, 1, 1], [], []>} : vector<8x16xf32>, vector<16x256xf32>, vector<8x256xf32> -> vector<8x256xf32>
    %415 = arith.addf %407, %414 : vector<8x256xf32>
    %c4_403 = arith.constant 4 : index
    %c0_404 = arith.constant 0 : index
    %c0_405 = arith.constant 0 : index
    %416 = vector.load %arg19[%c4_403, %c0_404, %c0_405] : memref<9x64x256xbf16, #tpu.memory_space<vmem>>, vector<1x64x256xbf16>
    %417 = vector.shape_cast %416 : vector<1x64x256xbf16> to vector<64x256xbf16>
    %418 = arith.extf %417 : vector<64x256xbf16> to vector<64x256xf32>
    %cst_406 = arith.constant dense<0.000000e+00> : vector<16x256xf32>
    %419 = tpu.matmul %384, %418, %cst_406 {dimension_numbers = #tpu.dot_dimension_numbers<[1], [0], [0], [1], [0, 0, 1, 1], [], []>} : vector<16x64xf32>, vector<64x256xf32>, vector<16x256xf32> -> vector<16x256xf32>
    %c4_407 = arith.constant 4 : index
    %c0_408 = arith.constant 0 : index
    %c0_409 = arith.constant 0 : index
    %420 = vector.load %arg18[%c4_407, %c0_408, %c0_409] : memref<9x8x16xf32, #tpu.memory_space<vmem>>, vector<1x8x16xf32>
    %421 = vector.shape_cast %420 : vector<1x8x16xf32> to vector<8x16xf32>
    %cst_410 = arith.constant dense<0.000000e+00> : vector<8x256xf32>
    %422 = tpu.matmul %421, %419, %cst_410 {dimension_numbers = #tpu.dot_dimension_numbers<[1], [0], [0], [1], [0, 0, 1, 1], [], []>} : vector<8x16xf32>, vector<16x256xf32>, vector<8x256xf32> -> vector<8x256xf32>
    %423 = arith.addf %415, %422 : vector<8x256xf32>
    %c5_411 = arith.constant 5 : index
    %c0_412 = arith.constant 0 : index
    %c0_413 = arith.constant 0 : index
    %424 = vector.load %arg19[%c5_411, %c0_412, %c0_413] : memref<9x64x256xbf16, #tpu.memory_space<vmem>>, vector<1x64x256xbf16>
    %425 = vector.shape_cast %424 : vector<1x64x256xbf16> to vector<64x256xbf16>
    %426 = arith.extf %425 : vector<64x256xbf16> to vector<64x256xf32>
    %cst_414 = arith.constant dense<0.000000e+00> : vector<16x256xf32>
    %427 = tpu.matmul %384, %426, %cst_414 {dimension_numbers = #tpu.dot_dimension_numbers<[1], [0], [0], [1], [0, 0, 1, 1], [], []>} : vector<16x64xf32>, vector<64x256xf32>, vector<16x256xf32> -> vector<16x256xf32>
    %c5_415 = arith.constant 5 : index
    %c0_416 = arith.constant 0 : index
    %c0_417 = arith.constant 0 : index
    %428 = vector.load %arg18[%c5_415, %c0_416, %c0_417] : memref<9x8x16xf32, #tpu.memory_space<vmem>>, vector<1x8x16xf32>
    %429 = vector.shape_cast %428 : vector<1x8x16xf32> to vector<8x16xf32>
    %cst_418 = arith.constant dense<0.000000e+00> : vector<8x256xf32>
    %430 = tpu.matmul %429, %427, %cst_418 {dimension_numbers = #tpu.dot_dimension_numbers<[1], [0], [0], [1], [0, 0, 1, 1], [], []>} : vector<8x16xf32>, vector<16x256xf32>, vector<8x256xf32> -> vector<8x256xf32>
    %431 = arith.addf %423, %430 : vector<8x256xf32>
    %c6_419 = arith.constant 6 : index
    %c0_420 = arith.constant 0 : index
    %c0_421 = arith.constant 0 : index
    %432 = vector.load %arg19[%c6_419, %c0_420, %c0_421] : memref<9x64x256xbf16, #tpu.memory_space<vmem>>, vector<1x64x256xbf16>
    %433 = vector.shape_cast %432 : vector<1x64x256xbf16> to vector<64x256xbf16>
    %434 = arith.extf %433 : vector<64x256xbf16> to vector<64x256xf32>
    %cst_422 = arith.constant dense<0.000000e+00> : vector<16x256xf32>
    %435 = tpu.matmul %384, %434, %cst_422 {dimension_numbers = #tpu.dot_dimension_numbers<[1], [0], [0], [1], [0, 0, 1, 1], [], []>} : vector<16x64xf32>, vector<64x256xf32>, vector<16x256xf32> -> vector<16x256xf32>
    %c6_423 = arith.constant 6 : index
    %c0_424 = arith.constant 0 : index
    %c0_425 = arith.constant 0 : index
    %436 = vector.load %arg18[%c6_423, %c0_424, %c0_425] : memref<9x8x16xf32, #tpu.memory_space<vmem>>, vector<1x8x16xf32>
    %437 = vector.shape_cast %436 : vector<1x8x16xf32> to vector<8x16xf32>
    %cst_426 = arith.constant dense<0.000000e+00> : vector<8x256xf32>
    %438 = tpu.matmul %437, %435, %cst_426 {dimension_numbers = #tpu.dot_dimension_numbers<[1], [0], [0], [1], [0, 0, 1, 1], [], []>} : vector<8x16xf32>, vector<16x256xf32>, vector<8x256xf32> -> vector<8x256xf32>
    %439 = arith.addf %431, %438 : vector<8x256xf32>
    %c7_427 = arith.constant 7 : index
    %c0_428 = arith.constant 0 : index
    %c0_429 = arith.constant 0 : index
    %440 = vector.load %arg19[%c7_427, %c0_428, %c0_429] : memref<9x64x256xbf16, #tpu.memory_space<vmem>>, vector<1x64x256xbf16>
    %441 = vector.shape_cast %440 : vector<1x64x256xbf16> to vector<64x256xbf16>
    %442 = arith.extf %441 : vector<64x256xbf16> to vector<64x256xf32>
    %cst_430 = arith.constant dense<0.000000e+00> : vector<16x256xf32>
    %443 = tpu.matmul %384, %442, %cst_430 {dimension_numbers = #tpu.dot_dimension_numbers<[1], [0], [0], [1], [0, 0, 1, 1], [], []>} : vector<16x64xf32>, vector<64x256xf32>, vector<16x256xf32> -> vector<16x256xf32>
    %c7_431 = arith.constant 7 : index
    %c0_432 = arith.constant 0 : index
    %c0_433 = arith.constant 0 : index
    %444 = vector.load %arg18[%c7_431, %c0_432, %c0_433] : memref<9x8x16xf32, #tpu.memory_space<vmem>>, vector<1x8x16xf32>
    %445 = vector.shape_cast %444 : vector<1x8x16xf32> to vector<8x16xf32>
    %cst_434 = arith.constant dense<0.000000e+00> : vector<8x256xf32>
    %446 = tpu.matmul %445, %443, %cst_434 {dimension_numbers = #tpu.dot_dimension_numbers<[1], [0], [0], [1], [0, 0, 1, 1], [], []>} : vector<8x16xf32>, vector<16x256xf32>, vector<8x256xf32> -> vector<8x256xf32>
    %447 = arith.addf %439, %446 : vector<8x256xf32>
    %c8_435 = arith.constant 8 : index
    %c0_436 = arith.constant 0 : index
    %c0_437 = arith.constant 0 : index
    %448 = vector.load %arg19[%c8_435, %c0_436, %c0_437] : memref<9x64x256xbf16, #tpu.memory_space<vmem>>, vector<1x64x256xbf16>
    %449 = vector.shape_cast %448 : vector<1x64x256xbf16> to vector<64x256xbf16>
    %450 = arith.extf %449 : vector<64x256xbf16> to vector<64x256xf32>
    %cst_438 = arith.constant dense<0.000000e+00> : vector<16x256xf32>
    %451 = tpu.matmul %384, %450, %cst_438 {dimension_numbers = #tpu.dot_dimension_numbers<[1], [0], [0], [1], [0, 0, 1, 1], [], []>} : vector<16x64xf32>, vector<64x256xf32>, vector<16x256xf32> -> vector<16x256xf32>
    %c8_439 = arith.constant 8 : index
    %c0_440 = arith.constant 0 : index
    %c0_441 = arith.constant 0 : index
    %452 = vector.load %arg18[%c8_439, %c0_440, %c0_441] : memref<9x8x16xf32, #tpu.memory_space<vmem>>, vector<1x8x16xf32>
    %453 = vector.shape_cast %452 : vector<1x8x16xf32> to vector<8x16xf32>
    %cst_442 = arith.constant dense<0.000000e+00> : vector<8x256xf32>
    %454 = tpu.matmul %453, %451, %cst_442 {dimension_numbers = #tpu.dot_dimension_numbers<[1], [0], [0], [1], [0, 0, 1, 1], [], []>} : vector<8x16xf32>, vector<16x256xf32>, vector<8x256xf32> -> vector<8x256xf32>
    %455 = arith.addf %447, %454 : vector<8x256xf32>
    %c0_443 = arith.constant 0 : index
    %c0_444 = arith.constant 0 : index
    %456 = vector.load %arg20[%c0_443, %c0_444] : memref<8x1xf32, #tpu.memory_space<vmem>>, vector<8x1xf32>
    %457 = vector.broadcast %456 : vector<8x1xf32> to vector<8x256xf32>
    %458 = arith.addf %455, %457 : vector<8x256xf32>
    %c0_445 = arith.constant 0 : index
    %c0_446 = arith.constant 0 : index
    %459 = vector.load %arg21[%c0_445, %c0_446] : memref<8x256xf32, #tpu.memory_space<vmem>>, vector<8x256xf32>
    tpu.vector_store %arg21[%c0_445, %c0_446], %458 {strides = array<i32>} : memref<8x256xf32, #tpu.memory_space<vmem>>, vector<8x256xf32>,
    return
  }
}

</mosaic_0001>

<bundles_post_ra>
// kernel: hourglass3_forward.1
= control target key start
LH: loop header
LB: loop body
LE: loop exit
PB: predicated region body
PF: predicated region fallthrough
CT: control target
= control target key end

     0   :  { %vm344_vm0 = vcmask 64512   ;;  %vm2088_vm1 = vcmask 523264   ;;  %vm2267_vm2 = vcmask 130048   ;;  %vm7218_vm3 = vcmask 261120   ;;  %s15819_s4 = inlined_call_operand.vmem [shape: bf16[9,256,64], index: 4, kind: input, shape index: {}]   ;;  %s15820_s0 = inlined_call_operand.vmem [shape: f32[8,256], index: 0, kind: input, shape index: {}]   ;;  %s15821_s3 = inlined_call_operand.vmem [shape: f32[9,16,8], index: 3, kind: input, shape index: {}]   ;;  %s15822_s5 = inlined_call_operand.vmem [shape: f32[16,1], index: 5, kind: input, shape index: {}]   ;;  %s15823_s11 = inlined_call_operand.vmem [shape: f32[16,1], index: 11, kind: input, shape index: {}]   ;;  %s15824_s14 = inlined_call_operand.vmem [shape: f32[32,1], index: 14, kind: input, shape index: {}]   ;;  %s15825_s17 = inlined_call_operand.vmem [shape: f32[16,1], index: 17, kind: input, shape index: {}]   ;;  %s15826_s20 = inlined_call_operand.vmem [shape: f32[8,1], index: 20, kind: input, shape index: {}]   ;;  %s15827_s7 = inlined_call_operand.vmem [shape: bf16[9,64,64], index: 7, kind: input, shape index: {}]   ;;  %s15828_s6 = inlined_call_operand.vmem [shape: f32[9,16,16], index: 6, kind: input, shape index: {}]   ;;  %s15829_s8 = inlined_call_operand.vmem [shape: f32[16,1], index: 8, kind: input, shape index: {}]   ;;  %s15830_s10 = inlined_call_operand.vmem [shape: bf16[9,64,16], index: 10, kind: input, shape index: {}]   ;;  %s15831_s1 = inlined_call_operand.vmem [shape: f32[16,64], index: 1, kind: input, shape index: {}]   ;;  %s15832_s9 = inlined_call_operand.vmem [shape: f32[9,16,16], index: 9, kind: input, shape index: {}]   ;;  %s15833_s13 = inlined_call_operand.vmem [shape: bf16[9,16,16], index: 13, kind: input, shape index: {}]   ;;  %s15834_s12 = inlined_call_operand.vmem [shape: f32[9,32,16], index: 12, kind: input, shape index: {}]   ;;  %s15835_s16 = inlined_call_operand.vmem [shape: bf16[9,16,64], index: 16, kind: input, shape index: {}]   ;;  %s15836_s2 = inlined_call_operand.vmem [shape: f32[32,16], index: 2, kind: input, shape index: {}]   ;;  %s15837_s15 = inlined_call_operand.vmem [shape: f32[9,16,32], index: 15, kind: input, shape index: {}]   ;;  %s15838_s19 = inlined_call_operand.vmem [shape: bf16[9,64,256], index: 19, kind: input, shape index: {}]   ;;  %s15839_s18 = inlined_call_operand.vmem [shape: f32[9,8,16], index: 18, kind: input, shape index: {}]   ;;  %s15840_s21 = inlined_call_operand.vmem [shape: f32[8,256], index: 21, kind: output, shape index: {}]  }
   0x1   :  { %15847 = sst [smem:[#allocation2_spill]] %s15819_s4 }
   0x2   :  { %15848 = sst [smem:[#allocation3_spill]] %s15820_s0 }
   0x3   :  { %15849 = sst [smem:[#allocation4_spill]] %s15821_s3 }
   0x4   :  { %15850 = sst [smem:[#allocation5_spill]] %s15822_s5 }
   0x5   :  { %15851 = sst [smem:[#allocation6_spill]] %s15823_s11 }
   0x6   :  { %15852 = sst [smem:[#allocation7_spill]] %s15824_s14 }
   0x7   :  { %s15853_s26 = sld [smem:[#allocation2_spill]] }
   0x8   :  { %s15854_s22 = sld [smem:[#allocation3_spill]] }
   0x9   :  { %s15855_s25 = sld [smem:[#allocation4_spill]] }
   0xa   :  { %s15856_s30 = sld [smem:[#allocation5_spill]] }
   0xb   :  { %s15857_s24 = sld [smem:[#allocation6_spill]] }
   0xc   :  { %s15858_s5 = sld [smem:[#allocation7_spill]] }
   0xd   :  { %v12038_v0 = vld [vmem:[%s15853_s26 + $0xf8] sm:$0xff]   ;;  %v12037_v8 = vld [vmem:[%s15853_s26 + $0xf0] sm:$0xff]   ;;  %v12036_v20 = vld [vmem:[%s15853_s26 + $0xe8] sm:$0xff]  }
   0xe   :  { %v12022_v1 = vld [vmem:[%s15853_s26 + $0x78] sm:$0xff]   ;;  %v11198_v3 = vunpack.c.l.bf16 %v12038_v0  ;;  %v11199_v4 = vunpack.c.h.bf16 %v12038_v0  ;;  %v12021_v9 = vld [vmem:[%s15853_s26 + $0x70] sm:$0xff]   ;;  %v11195_v16 = vunpack.c.h.bf16 %v12037_v8  ;;  %v12020_v21 = vld [vmem:[%s15853_s26 + $0x68] sm:$0xff]   ;;  %v11194_v22 = vunpack.c.l.bf16 %v12037_v8 }
   0xf   :  { %v12030_v2 = vld [vmem:[%s15853_s26 + $0xb8] sm:$0xff]   ;;  %v11134_v5 = vunpack.c.l.bf16 %v12022_v1  ;;  %v11135_v6 = vunpack.c.h.bf16 %v12022_v1  ;;  %v12029_v14 = vld [vmem:[%s15853_s26 + $0xb0] sm:$0xff]   ;;  %v11131_v17 = vunpack.c.h.bf16 %v12021_v9  ;;  %v11130_v23 = vunpack.c.l.bf16 %v12021_v9  ;;  %v12028_v24 = vld [vmem:[%s15853_s26 + $0xa8] sm:$0xff]  }
  0x10   :  { %v12014_v7 = vld [vmem:[%s15853_s26 + $0x38] sm:$0xff]   ;;  %v11166_v10 = vunpack.c.l.bf16 %v12030_v2  ;;  %v11167_v11 = vunpack.c.h.bf16 %v12030_v2  ;;  %v12013_v15 = vld [vmem:[%s15853_s26 + $0x30] sm:$0xff]   ;;  %12272 = vmatprep.subr.mxu1 %v11199_v4  ;;  %v11163_v18 = vunpack.c.h.bf16 %v12029_v14  ;;  %v12012_v25 = vld [vmem:[%s15853_s26 + $0x28] sm:$0xff]   ;;  %v11162_v26 = vunpack.c.l.bf16 %v12029_v14 }
  0x11   :  { %v11102_v12 = vunpack.c.l.bf16 %v12014_v7  ;;  %v11103_v13 = vunpack.c.h.bf16 %v12014_v7  ;;  %12237 = vmatprep.subr.mxu0 %v11135_v6  ;;  %v11099_v19 = vunpack.c.h.bf16 %v12013_v15  ;;  %v11098_v27 = vunpack.c.l.bf16 %v12013_v15  ;;  %v12035_v32 = vld [vmem:[%s15853_s26 + $0xe0] sm:$0xff]   ;;  %v12034_v44 = vld [vmem:[%s15853_s26 + $0xd8] sm:$0xff]   ;;  %v12033_v56 = vld [vmem:[%s15853_s26 + $0xd0] sm:$0xff]  }
  0x12   :  { %12273 = vmatpush3.msra.mxu1 %v11167_v11  ;;  %v11191_v28 = vunpack.c.h.bf16 %v12036_v20  ;;  %v11127_v29 = vunpack.c.h.bf16 %v12020_v21  ;;  %v11159_v30 = vunpack.c.h.bf16 %v12028_v24  ;;  %v11095_v31 = vunpack.c.h.bf16 %v12012_v25  ;;  %v12019_v33 = vld [vmem:[%s15853_s26 + $0x60] sm:$0xff]   ;;  %v12018_v45 = vld [vmem:[%s15853_s26 + $0x58] sm:$0xff]   ;;  %v12017_v57 = vld [vmem:[%s15853_s26 + $0x50] sm:$0xff]  }
  0x13   :  { %12238 = vmatpush3.msra.mxu0 %v11103_v13  ;;  %12274 = vmatprep.subr.mxu1 %v11198_v3  ;;  %v11190_v34 = vunpack.c.l.bf16 %v12036_v20  ;;  %v11126_v35 = vunpack.c.l.bf16 %v12020_v21  ;;  %v12027_v36 = vld [vmem:[%s15853_s26 + $0xa0] sm:$0xff]   ;;  %v11158_v38 = vunpack.c.l.bf16 %v12028_v24  ;;  %v11094_v39 = vunpack.c.l.bf16 %v12012_v25  ;;  %v12026_v48 = vld [vmem:[%s15853_s26 + $0x98] sm:$0xff]   ;;  %v12025_v60 = vld [vmem:[%s15853_s26 + $0x90] sm:$0xff]  }
  0x14   :  { %12239 = vmatprep.subr.mxu0 %v11134_v5  ;;  %12275 = vmatpush3.msra.mxu1 %v11166_v10  ;;  %v12011_v37 = vld [vmem:[%s15853_s26 + $0x20] sm:$0xff]   ;;  %v11187_v40 = vunpack.c.h.bf16 %v12035_v32  ;;  %v11123_v41 = vunpack.c.h.bf16 %v12019_v33  ;;  %v11155_v42 = vunpack.c.h.bf16 %v12027_v36  ;;  %v11186_v46 = vunpack.c.l.bf16 %v12035_v32  ;;  %v12010_v49 = vld [vmem:[%s15853_s26 + $0x18] sm:$0xff]   ;;  %v12009_v61 = vld [vmem:[%s15853_s26 + $0x10] sm:$0xff]  }
  0x15   :  { %12240 = vmatpush3.msra.mxu0 %v11102_v12  ;;  %12276 = vmatprep.subr.mxu1 %v11195_v16  ;;  %v11091_v43 = vunpack.c.h.bf16 %v12011_v37  ;;  %v11122_v47 = vunpack.c.l.bf16 %v12019_v33  ;;  %v11154_v50 = vunpack.c.l.bf16 %v12027_v36  ;;  %v11090_v51 = vunpack.c.l.bf16 %v12011_v37  ;;  %v12032_v4 = vld [vmem:[%s15853_s26 + $0xc8] sm:$0xff]   ;;  %v12031_v16 = vld [vmem:[%s15853_s26 + $0xc0] sm:$0xff]  }
  0x16   :  { %12241 = vmatprep.subr.mxu0 %v11131_v17  ;;  %12277 = vmatpush3.msra.mxu1 %v11163_v18  ;;  %v11183_v52 = vunpack.c.h.bf16 %v12034_v44  ;;  %v11119_v53 = vunpack.c.h.bf16 %v12018_v45  ;;  %v11151_v54 = vunpack.c.h.bf16 %v12026_v48  ;;  %v11087_v55 = vunpack.c.h.bf16 %v12010_v49  ;;  %v12016_v5 = vld [vmem:[%s15853_s26 + $0x48] sm:$0xff]   ;;  %v12015_v17 = vld [vmem:[%s15853_s26 + $0x40] sm:$0xff]  }
  0x17   :  { %12242 = vmatpush3.msra.mxu0 %v11099_v19  ;;  %12278 = vmatprep.subr.mxu1 %v11194_v22  ;;  %v11182_v58 = vunpack.c.l.bf16 %v12034_v44  ;;  %v11118_v59 = vunpack.c.l.bf16 %v12018_v45  ;;  %v11150_v62 = vunpack.c.l.bf16 %v12026_v48  ;;  %v11086_v63 = vunpack.c.l.bf16 %v12010_v49  ;;  %v12024_v8 = vld [vmem:[%s15853_s26 + $0x88] sm:$0xff]   ;;  %v12023_v20 = vld [vmem:[%s15853_s26 + $0x80] sm:$0xff]   ;;  %v12046_v45 = vld [vmem:[%s15853_s26 + $0x138] sm:$0xff]  }
  0x18   :  { %12243 = vmatprep.subr.mxu0 %v11130_v23  ;;  %12279 = vmatpush3.msra.mxu1 %v11162_v26  ;;  %v11179_v0 = vunpack.c.h.bf16 %v12033_v56  ;;  %v11115_v1 = vunpack.c.h.bf16 %v12017_v57  ;;  %v11147_v2 = vunpack.c.h.bf16 %v12025_v60  ;;  %v11083_v3 = vunpack.c.h.bf16 %v12009_v61  ;;  %v12008_v9 = vld [vmem:[%s15853_s26 + $0x8] sm:$0xff]   ;;  %v11073_v21 = vld [vmem:[%s15853_s26] sm:$0xff]   ;;  %v12053_v48 = vld [vmem:[%s15853_s26 + $0x170] sm:$0xff]  }
  0x19   :  { %12244 = vmatpush3.msra.mxu0 %v11098_v27  ;;  %12280 = vmatprep.subr.mxu1 %v11191_v28  ;;  %v11178_v6 = vunpack.c.l.bf16 %v12033_v56  ;;  %v11114_v7 = vunpack.c.l.bf16 %v12017_v57  ;;  %v11146_v10 = vunpack.c.l.bf16 %v12025_v60  ;;  %v11082_v11 = vunpack.c.l.bf16 %v12009_v61  ;;  %v14106_v33 = vld [vmem:[%s15854_s22] sm:$0xff]  ;;  %v12044_v56 = vld [vmem:[%s15853_s26 + $0x128] sm:$0xff]  }
  0x1a   :  { %12245 = vmatprep.subr.mxu0 %v11127_v29  ;;  %12281 = vmatpush3.msra.mxu1 %v11159_v30  ;;  %v11175_v12 = vunpack.c.h.bf16 %v12032_v4  ;;  %v11111_v13 = vunpack.c.h.bf16 %v12016_v5  ;;  %v11143_v14 = vunpack.c.h.bf16 %v12024_v8  ;;  %v11079_v15 = vunpack.c.h.bf16 %v12008_v9  ;;  %v12051_v60 = vld [vmem:[%s15853_s26 + $0x160] sm:$0xff]  }
  0x1b   :  { %12246 = vmatpush3.msra.mxu0 %v11095_v31  ;;  %12282 = vmatprep.subr.mxu1 %v11190_v34  ;;  %v11174_v18 = vunpack.c.l.bf16 %v12032_v4  ;;  %v11110_v19 = vunpack.c.l.bf16 %v12016_v5  ;;  %v11142_v22 = vunpack.c.l.bf16 %v12024_v8  ;;  %v11078_v23 = vunpack.c.l.bf16 %v12008_v9  ;;  %v14101_v31 = vld [vmem:[%s15854_s22 + $0x8] sm:$0xff]  ;;  %v10295_v34 = vld [vmem:[%s15855_s25 + $0x10] sm:$0xff]  ;;  %v12042_v4 = vld [vmem:[%s15853_s26 + $0x118] sm:$0xff]  }
  0x1c   :  { %12247 = vmatprep.subr.mxu0 %v11126_v35  ;;  %12283 = vmatpush3.msra.mxu1 %v11158_v38  ;;  %v11171_v24 = vunpack.c.h.bf16 %v12031_v16  ;;  %v11107_v25 = vunpack.c.h.bf16 %v12015_v17  ;;  %v11139_v26 = vunpack.c.h.bf16 %v12023_v20  ;;  %v11075_v27 = vunpack.c.h.bf16 %v11073_v21  ;;  %v12049_v8 = vld [vmem:[%s15853_s26 + $0x150] sm:$0xff]  }
  0x1d   :  { %12248 = vmatpush3.msra.mxu0 %v11094_v39  ;;  %12284 = vmatprep.subr.mxu1 %v11187_v40  ;;  %v11170_v28 = vunpack.c.l.bf16 %v12031_v16  ;;  %v11106_v29 = vunpack.c.l.bf16 %v12015_v17  ;;  %v11138_v30 = vunpack.c.l.bf16 %v12023_v20  ;;  %v11074_v32 = vunpack.c.l.bf16 %v11073_v21  ;;  %v12054_v39 = vld [vmem:[%s15853_s26 + $0x178] sm:$0xff]   ;;  %v12040_v16 = vld [vmem:[%s15853_s26 + $0x108] sm:$0xff]   ;;  %v12047_v20 = vld [vmem:[%s15853_s26 + $0x140] sm:$0xff]  }
  0x1e   :  { %12249 = vmatprep.subr.mxu0 %v11123_v41  ;;  %12285 = vmatpush3.msra.mxu1 %v11155_v42  ;;  %v10296_v42 = vld [vmem:[%s15855_s25 + $0x18] sm:$0xff]  ;;  %v11263_v44 = vunpack.c.h.bf16 %v12054_v39  ;;  %v11262_v49 = vunpack.c.l.bf16 %v12054_v39 }
  0x1f   :  { %12250 = vmatpush3.msra.mxu0 %v11091_v43  ;;  %12286 = vmatprep.subr.mxu1 %v11186_v46  ;;  %v204_v43 = vld [vmem:[%s15855_s25] sm:$0xff]  ;;  %v205_v46 = vld [vmem:[%s15855_s25 + $0x8] sm:$0xff] }
  0x20   :  { %12251 = vmatprep.subr.mxu0 %v11122_v47  ;;  %12287 = vmatpush3.msra.mxu1 %v11154_v50  ;;  %v11231_v47 = vunpack.c.h.bf16 %v12046_v45  ;;  %v12045_v50 = vld [vmem:[%s15853_s26 + $0x130] sm:$0xff]  }
  0x21   :  { %12252 = vmatpush3.msra.mxu0 %v11090_v51  ;;  %12288 = vmatprep.subr.mxu1 %v11183_v52  ;;  %v11230_v51 = vunpack.c.l.bf16 %v12046_v45  ;;  %v11259_v52 = vunpack.c.h.bf16 %v12053_v48  ;;  %v11226_v57 = vunpack.c.l.bf16 %v12045_v50 }
  0x22   :  { %12253 = vmatprep.subr.mxu0 %v11119_v53  ;;  %12289 = vmatpush3.msra.mxu1 %v11151_v54  ;;  %v11227_v53 = vunpack.c.h.bf16 %v12045_v50  ;;  %v12052_v54 = vld [vmem:[%s15853_s26 + $0x168] sm:$0xff]  }
  0x23   :  { %12254 = vmatpush3.msra.mxu0 %v11087_v55  ;;  %12290 = vmatprep.subr.mxu1 %v11182_v58  ;;  %v11258_v55 = vunpack.c.l.bf16 %v12053_v48  ;;  %v11255_v58 = vunpack.c.h.bf16 %v12052_v54  ;;  %v11254_v61 = vunpack.c.l.bf16 %v12052_v54  ;;  %v12068_v50 = vld [vmem:[%s15853_s26 + $0x1e8] sm:$0xff]  }
  0x24   :  { %12255 = vmatprep.subr.mxu0 %v11118_v59  ;;  %12291 = vmatpush3.msra.mxu1 %v11150_v62  ;;  %v11223_v59 = vunpack.c.h.bf16 %v12044_v56  ;;  %v12043_v62 = vld [vmem:[%s15853_s26 + $0x120] sm:$0xff]   ;;  %v11319_v54 = vunpack.c.h.bf16 %v12068_v50 }
  0x25   :  { %12256 = vmatpush3.msra.mxu0 %v11086_v63  ;;  %12292 = vmatprep.subr.mxu1 %v11179_v0  ;;  %v11222_v63 = vunpack.c.l.bf16 %v12044_v56  ;;  %v11251_v0 = vunpack.c.h.bf16 %v12051_v60  ;;  %v11218_v5 = vunpack.c.l.bf16 %v12043_v62  ;;  %v12067_v56 = vld [vmem:[%s15853_s26 + $0x1e0] sm:$0xff]  }
  0x26   :  { %12257 = vmatprep.subr.mxu0 %v11115_v1  ;;  %12293 = vmatpush3.msra.mxu1 %v11147_v2  ;;  %v11219_v1 = vunpack.c.h.bf16 %v12043_v62  ;;  %v12050_v2 = vld [vmem:[%s15853_s26 + $0x158] sm:$0xff]  }
  0x27   :  { %12258 = vmatpush3.msra.mxu0 %v11083_v3  ;;  %12294 = vmatprep.subr.mxu1 %v11178_v6  ;;  %v11250_v3 = vunpack.c.l.bf16 %v12051_v60  ;;  %v11247_v6 = vunpack.c.h.bf16 %v12050_v2  ;;  %v11246_v9 = vunpack.c.l.bf16 %v12050_v2  ;;  %v11315_v60 = vunpack.c.h.bf16 %v12067_v56  ;;  %v12066_v62 = vld [vmem:[%s15853_s26 + $0x1d8] sm:$0xff]  }
  0x28   :  { %12259 = vmatprep.subr.mxu0 %v11114_v7  ;;  %12295 = vmatpush3.msra.mxu1 %v11146_v10  ;;  %v11215_v7 = vunpack.c.h.bf16 %v12042_v4  ;;  %v12041_v10 = vld [vmem:[%s15853_s26 + $0x110] sm:$0xff]   ;;  %v11311_v2 = vunpack.c.h.bf16 %v12066_v62 }
  0x29   :  { %12260 = vmatpush3.msra.mxu0 %v11082_v11  ;;  %12296 = vmatprep.subr.mxu1 %v11175_v12  ;;  %v11214_v11 = vunpack.c.l.bf16 %v12042_v4  ;;  %v11243_v12 = vunpack.c.h.bf16 %v12049_v8  ;;  %v11210_v17 = vunpack.c.l.bf16 %v12041_v10  ;;  %v12065_v4 = vld [vmem:[%s15853_s26 + $0x1d0] sm:$0xff]  }
  0x2a   :  { %12261 = vmatprep.subr.mxu0 %v11111_v13  ;;  %12297 = vmatpush3.msra.mxu1 %v11143_v14  ;;  %v11211_v13 = vunpack.c.h.bf16 %v12041_v10  ;;  %v12048_v14 = vld [vmem:[%s15853_s26 + $0x148] sm:$0xff]  }
  0x2b   :  { %12262 = vmatpush3.msra.mxu0 %v11079_v15  ;;  %12298 = vmatprep.subr.mxu1 %v11174_v18  ;;  %v11242_v15 = vunpack.c.l.bf16 %v12049_v8  ;;  %v11239_v18 = vunpack.c.h.bf16 %v12048_v14  ;;  %v11238_v21 = vunpack.c.l.bf16 %v12048_v14  ;;  %v11307_v8 = vunpack.c.h.bf16 %v12065_v4  ;;  %v12064_v10 = vld [vmem:[%s15853_s26 + $0x1c8] sm:$0xff]  }
  0x2c   :  { %12263 = vmatprep.subr.mxu0 %v11110_v19  ;;  %12299 = vmatpush3.msra.mxu1 %v11142_v22  ;;  %v11207_v19 = vunpack.c.h.bf16 %v12040_v16  ;;  %v12039_v22 = vld [vmem:[%s15853_s26 + $0x100] sm:$0xff]   ;;  %v11303_v14 = vunpack.c.h.bf16 %v12064_v10 }
  0x2d   :  { %12264 = vmatpush3.msra.mxu0 %v11078_v23  ;;  %12300 = vmatprep.subr.mxu1 %v11171_v24  ;;  %v11206_v23 = vunpack.c.l.bf16 %v12040_v16  ;;  %v11235_v24 = vunpack.c.h.bf16 %v12047_v20  ;;  %v12063_v16 = vld [vmem:[%s15853_s26 + $0x1c0] sm:$0xff]  }
  0x2e   :  { %12265 = vmatprep.subr.mxu0 %v11107_v25  ;;  %12301 = vmatpush3.msra.mxu1 %v11139_v26  ;;  %v11203_v25 = vunpack.c.h.bf16 %v12039_v22  ;;  %v11234_v26 = vunpack.c.l.bf16 %v12047_v20  ;;  %v11299_v20 = vunpack.c.h.bf16 %v12063_v16 }
  0x2f   :  { %12266 = vmatpush3.msra.mxu0 %v11075_v27  ;;  %12302 = vmatprep.subr.mxu1 %v11170_v28  ;;  %v11202_v27 = vunpack.c.l.bf16 %v12039_v22  ;;  %v10333_v28 = vld [vmem:[%s15855_s25 + $0x20] sm:$0xff]  ;;  %v11298_v22 = vunpack.c.l.bf16 %v12063_v16 }
  0x30   :  { %12267 = vmatprep.subr.mxu0 %v11106_v29  ;;  %12303 = vmatpush3.msra.mxu1 %v11138_v30 }
  0x31   :  { %335 = vmatprep.mubr.f32.mxu1 %v14101_v31  ;;  %12268 = vmatpush3.msra.mxu0 %v11074_v32 }
  0x32   :  { %198 = vmatprep.mubr.f32.mxu0 %v14101_v31  ;;  %336 = vmatmul.mubr.f32.vlgmr.msra.gmra.mxu1 %v14106_v33 }
  0x33   :  { %199 = vmatmul.mubr.f32.vlgmr.msra.gmra.mxu0 %v14106_v33  ;;  %13041 = vmatprep.mubr.msk.f32.mxu1 %vm344_vm0, %v10333_v28 }
  0x34   :  { %13031 = vmatprep.mubr.msk.f32.mxu0 %vm344_vm0, %v10295_v34 }
  0xf2   :  { %v12304_v35 = vpop.f32.mrf.mxu1 }
  0xf3   :  { %v12269_v36 = vpop.f32.mrf.mxu0 }
  0xf4   :  { %v12305_v37 = vpop.f32.mrf.mxu1 }
  0xf5   :  { %v12270_v38 = vpop.f32.mrf.mxu0  ;;  %v12306_v40 = vadd.f32 %v12305_v37, %v12304_v35  ;;  %v12070_v37 = vld [vmem:[%s15853_s26 + $0x1f8] sm:$0xff]  }
  0xf6   :  { %v12271_v41 = vadd.f32 %v12270_v38, %v12269_v36  ;;  %v12062_v38 = vld [vmem:[%s15853_s26 + $0x1b8] sm:$0xff]   ;;  %v11326_v45 = vunpack.c.l.bf16 %v12070_v37 }
  0xf7   :  { %13029 = vmatprep.subr.mxu0 %v12306_v40 }
  0xf8   :  { %13030 = vmatpush3.msra.mxu0 %v12306_v40 }
  0xf9   :  { %13032 = vmatmul.mubr.msk.f32.vlgmr.msra.gmra.mxu0 %vm344_vm0, %v10296_v42  ;;  %13034 = vmatprep.subr.mxu0 %v12271_v41  ;;  %v10334_v42 = vld [vmem:[%s15855_s25 + $0x28] sm:$0xff] }
  0xfa   :  { %13035 = vmatpush3.msra.mxu0 %v12271_v41  ;;  %13036 = vmatprep.mubr.msk.f32.mxu0 %vm344_vm0, %v204_v43  ;;  %v11327_v41 = vunpack.c.h.bf16 %v12070_v37  ;;  %v11295_v43 = vunpack.c.h.bf16 %v12062_v38 }
  0xfb   :  { %12313 = vmatprep.subr.mxu0 %v11263_v44  ;;  %v12069_v44 = vld [vmem:[%s15853_s26 + $0x1f0] sm:$0xff]  }
  0xfc   :  { %v11323_v48 = vunpack.c.h.bf16 %v12069_v44 }
  0xfd   :  { %13037 = vmatmul.mubr.msk.f32.vlgmr.msra.gmra.mxu0 %vm344_vm0, %v205_v46  ;;  %v12061_v46 = vld [vmem:[%s15853_s26 + $0x1b0] sm:$0xff]  }
  0xfe   :  { %12314 = vmatpush3.msra.mxu0 %v11231_v47  ;;  %636 = vmatprep.mubr.f32.mxu0 %v14101_v31  ;;  %v11294_v47 = vunpack.c.l.bf16 %v12062_v38 }
  0xff   :  { %12315 = vmatprep.subr.mxu0 %v11262_v49  ;;  %v11291_v49 = vunpack.c.h.bf16 %v12061_v46 }
 0x100   :  { %12316 = vmatpush3.msra.mxu0 %v11230_v51  ;;  %v11322_v51 = vunpack.c.l.bf16 %v12069_v44 }
 0x101   :  { %12317 = vmatprep.subr.mxu0 %v11259_v52  ;;  %v12060_v52 = vld [vmem:[%s15853_s26 + $0x1a8] sm:$0xff]  }
 0x102   :  { %12318 = vmatpush3.msra.mxu0 %v11227_v53  ;;  %v11290_v53 = vunpack.c.l.bf16 %v12061_v46  ;;  %v12084_v46 = vld [vmem:[%s15853_s26 + $0x268] sm:$0xff]  }
 0x103   :  { %12319 = vmatprep.subr.mxu0 %v11258_v55  ;;  %v11287_v55 = vunpack.c.h.bf16 %v12060_v52 }
 0x104   :  { %12320 = vmatpush3.msra.mxu0 %v11226_v57  ;;  %v11318_v57 = vunpack.c.l.bf16 %v12068_v50  ;;  %v11383_v50 = vunpack.c.h.bf16 %v12084_v46 }
 0x105   :  { %12321 = vmatprep.subr.mxu0 %v11255_v58  ;;  %v12059_v58 = vld [vmem:[%s15853_s26 + $0x1a0] sm:$0xff]  }
 0x106   :  { %12322 = vmatpush3.msra.mxu0 %v11223_v59  ;;  %v11286_v59 = vunpack.c.l.bf16 %v12060_v52  ;;  %v12083_v52 = vld [vmem:[%s15853_s26 + $0x260] sm:$0xff]  }
 0x107   :  { %12323 = vmatprep.subr.mxu0 %v11254_v61  ;;  %v11283_v61 = vunpack.c.h.bf16 %v12059_v58 }
 0x108   :  { %12324 = vmatpush3.msra.mxu0 %v11222_v63  ;;  %v11314_v63 = vunpack.c.l.bf16 %v12067_v56  ;;  %v11379_v56 = vunpack.c.h.bf16 %v12083_v52 }
 0x109   :  { %12325 = vmatprep.subr.mxu0 %v11251_v0  ;;  %v12058_v0 = vld [vmem:[%s15853_s26 + $0x198] sm:$0xff]  }
 0x10a   :  { %12326 = vmatpush3.msra.mxu0 %v11219_v1  ;;  %v11282_v1 = vunpack.c.l.bf16 %v12059_v58  ;;  %v12082_v58 = vld [vmem:[%s15853_s26 + $0x258] sm:$0xff]  }
 0x10b   :  { %12327 = vmatprep.subr.mxu0 %v11250_v3  ;;  %v11279_v3 = vunpack.c.h.bf16 %v12058_v0 }
 0x10c   :  { %12328 = vmatpush3.msra.mxu0 %v11218_v5  ;;  %v11310_v5 = vunpack.c.l.bf16 %v12066_v62  ;;  %v11375_v62 = vunpack.c.h.bf16 %v12082_v58 }
 0x10d   :  { %12329 = vmatprep.subr.mxu0 %v11247_v6  ;;  %v12057_v6 = vld [vmem:[%s15853_s26 + $0x190] sm:$0xff]  }
 0x10e   :  { %12330 = vmatpush3.msra.mxu0 %v11215_v7  ;;  %v11278_v7 = vunpack.c.l.bf16 %v12058_v0  ;;  %v12081_v0 = vld [vmem:[%s15853_s26 + $0x250] sm:$0xff]  }
 0x10f   :  { %12331 = vmatprep.subr.mxu0 %v11246_v9  ;;  %v11275_v9 = vunpack.c.h.bf16 %v12057_v6 }
 0x110   :  { %12332 = vmatpush3.msra.mxu0 %v11214_v11  ;;  %v11306_v11 = vunpack.c.l.bf16 %v12065_v4  ;;  %v11371_v4 = vunpack.c.h.bf16 %v12081_v0 }
 0x111   :  { %12333 = vmatprep.subr.mxu0 %v11243_v12  ;;  %v12056_v12 = vld [vmem:[%s15853_s26 + $0x188] sm:$0xff]  }
 0x112   :  { %12334 = vmatpush3.msra.mxu0 %v11211_v13  ;;  %v11274_v13 = vunpack.c.l.bf16 %v12057_v6  ;;  %v12080_v6 = vld [vmem:[%s15853_s26 + $0x248] sm:$0xff]  }
 0x113   :  { %12335 = vmatprep.subr.mxu0 %v11242_v15  ;;  %v11271_v15 = vunpack.c.h.bf16 %v12056_v12 }
 0x114   :  { %12336 = vmatpush3.msra.mxu0 %v11210_v17  ;;  %v11302_v17 = vunpack.c.l.bf16 %v12064_v10  ;;  %v11367_v10 = vunpack.c.h.bf16 %v12080_v6 }
 0x115   :  { %12337 = vmatprep.subr.mxu0 %v11239_v18  ;;  %v12055_v18 = vld [vmem:[%s15853_s26 + $0x180] sm:$0xff]  }
 0x116   :  { %12338 = vmatpush3.msra.mxu0 %v11207_v19  ;;  %v11270_v19 = vunpack.c.l.bf16 %v12056_v12  ;;  %v12079_v12 = vld [vmem:[%s15853_s26 + $0x240] sm:$0xff]  }
 0x117   :  { %12339 = vmatprep.subr.mxu0 %v11238_v21  ;;  %v11267_v21 = vunpack.c.h.bf16 %v12055_v18  ;;  %v11363_v16 = vunpack.c.h.bf16 %v12079_v12 }
 0x118   :  { %12340 = vmatpush3.msra.mxu0 %v11206_v23  ;;  %v11266_v23 = vunpack.c.l.bf16 %v12055_v18  ;;  %v11362_v18 = vunpack.c.l.bf16 %v12079_v12 }
 0x119   :  { %12341 = vmatprep.subr.mxu0 %v11235_v24  ;;  %v10369_v24 = vld [vmem:[%s15855_s25 + $0x30] sm:$0xff] }
 0x11a   :  { %12342 = vmatpush3.msra.mxu0 %v11203_v25 }
 0x11b   :  { %12343 = vmatprep.subr.mxu0 %v11234_v26 }
 0x11c   :  { %12344 = vmatpush3.msra.mxu0 %v11202_v27 }
 0x11d   :  { %637 = vmatmul.mubr.f32.vlgmr.msra.gmra.mxu0 %v14106_v33 }
 0x11e   :  { %13046 = vmatprep.mubr.msk.f32.mxu0 %vm344_vm0, %v10369_v24 }
 0x1b9   :  { %v13033_v29 = vpop.f32.mrf.mxu0 }
 0x1bb   :  { %v14182_v30 = vpop.f32.mrf.mxu0 }
 0x1bd   :  { %v13038_v32 = vpop.f32.mrf.mxu0 }
 0x1be   :  { %v14184_v34 = vadd.f32 %v13038_v32, %v13033_v29  ;;  %v12086_v29 = vld [vmem:[%s15853_s26 + $0x278] sm:$0xff]  }
 0x1bf   :  { %v14186_v35 = vpop.f32.mrf.mxu0  ;;  %v12078_v32 = vld [vmem:[%s15853_s26 + $0x238] sm:$0xff]   ;;  %v11391_v38 = vunpack.c.h.bf16 %v12086_v29 }
 0x1dd   :  { %v12345_v36 = vpop.f32.mrf.mxu0 }
 0x1df   :  { %v12346_v39 = vpop.f32.mrf.mxu0 }
 0x1e0   :  { %v12347_v40 = vadd.f32 %v12346_v39, %v12345_v36  ;;  %v10370_v39 = vld [vmem:[%s15855_s25 + $0x38] sm:$0xff] }
 0x1e2   :  { %13039 = vmatprep.subr.mxu1 %v12347_v40 }
 0x1e3   :  { %13040 = vmatpush3.msra.mxu1 %v12347_v40  ;;  %v12085_v40 = vld [vmem:[%s15853_s26 + $0x270] sm:$0xff]  }
 0x1e4   :  { %13042 = vmatmul.mubr.msk.f32.vlgmr.msra.gmra.mxu1 %vm344_vm0, %v10334_v42  ;;  %12351 = vmatprep.subr.mxu1 %v11327_v41  ;;  %v11390_v41 = vunpack.c.l.bf16 %v12086_v29  ;;  %v12077_v42 = vld [vmem:[%s15853_s26 + $0x230] sm:$0xff]   ;;  %v11387_v44 = vunpack.c.h.bf16 %v12085_v40 }
 0x1e5   :  { %12352 = vmatpush3.msra.mxu1 %v11295_v43  ;;  %857 = vmatprep.mubr.f32.mxu1 %v14101_v31  ;;  %v11358_v43 = vunpack.c.l.bf16 %v12078_v32 }
 0x1e6   :  { %12353 = vmatprep.subr.mxu1 %v11326_v45  ;;  %v11355_v45 = vunpack.c.h.bf16 %v12077_v42 }
 0x1e7   :  { %12354 = vmatpush3.msra.mxu1 %v11294_v47  ;;  %v11386_v47 = vunpack.c.l.bf16 %v12085_v40 }
 0x1e8   :  { %12355 = vmatprep.subr.mxu1 %v11323_v48  ;;  %v12076_v48 = vld [vmem:[%s15853_s26 + $0x228] sm:$0xff]  }
 0x1e9   :  { %12356 = vmatpush3.msra.mxu1 %v11291_v49  ;;  %v11354_v49 = vunpack.c.l.bf16 %v12077_v42 }
 0x1ea   :  { %12357 = vmatprep.subr.mxu1 %v11322_v51  ;;  %v11351_v51 = vunpack.c.h.bf16 %v12076_v48 }
 0x1eb   :  { %12358 = vmatpush3.msra.mxu1 %v11290_v53  ;;  %v11382_v53 = vunpack.c.l.bf16 %v12084_v46 }
 0x1ec   :  { %12359 = vmatprep.subr.mxu1 %v11319_v54  ;;  %v12075_v54 = vld [vmem:[%s15853_s26 + $0x220] sm:$0xff]  }
 0x1ed   :  { %12360 = vmatpush3.msra.mxu1 %v11287_v55  ;;  %v11350_v55 = vunpack.c.l.bf16 %v12076_v48 }
 0x1ee   :  { %12361 = vmatprep.subr.mxu1 %v11318_v57  ;;  %v11347_v57 = vunpack.c.h.bf16 %v12075_v54 }
 0x1ef   :  { %12362 = vmatpush3.msra.mxu1 %v11286_v59  ;;  %v11378_v59 = vunpack.c.l.bf16 %v12083_v52 }
 0x1f0   :  { %12363 = vmatprep.subr.mxu1 %v11315_v60  ;;  %v12074_v60 = vld [vmem:[%s15853_s26 + $0x218] sm:$0xff]  }
 0x1f1   :  { %12364 = vmatpush3.msra.mxu1 %v11283_v61  ;;  %v11346_v61 = vunpack.c.l.bf16 %v12075_v54 }
 0x1f2   :  { %12365 = vmatprep.subr.mxu1 %v11314_v63  ;;  %v11343_v63 = vunpack.c.h.bf16 %v12074_v60 }
 0x1f3   :  { %12366 = vmatpush3.msra.mxu1 %v11282_v1  ;;  %v11374_v1 = vunpack.c.l.bf16 %v12082_v58 }
 0x1f4   :  { %12367 = vmatprep.subr.mxu1 %v11311_v2  ;;  %v12073_v2 = vld [vmem:[%s15853_s26 + $0x210] sm:$0xff]  }
 0x1f5   :  { %12368 = vmatpush3.msra.mxu1 %v11279_v3  ;;  %v11342_v3 = vunpack.c.l.bf16 %v12074_v60 }
 0x1f6   :  { %12369 = vmatprep.subr.mxu1 %v11310_v5  ;;  %v11339_v5 = vunpack.c.h.bf16 %v12073_v2 }
 0x1f7   :  { %12370 = vmatpush3.msra.mxu1 %v11278_v7  ;;  %v11370_v7 = vunpack.c.l.bf16 %v12081_v0 }
 0x1f8   :  { %12371 = vmatprep.subr.mxu1 %v11307_v8  ;;  %v12072_v8 = vld [vmem:[%s15853_s26 + $0x208] sm:$0xff]  }
 0x1f9   :  { %12372 = vmatpush3.msra.mxu1 %v11275_v9  ;;  %v11338_v9 = vunpack.c.l.bf16 %v12073_v2 }
 0x1fa   :  { %12373 = vmatprep.subr.mxu1 %v11306_v11  ;;  %v11335_v11 = vunpack.c.h.bf16 %v12072_v8 }
 0x1fb   :  { %12374 = vmatpush3.msra.mxu1 %v11274_v13  ;;  %v11366_v13 = vunpack.c.l.bf16 %v12080_v6 }
 0x1fc   :  { %12375 = vmatprep.subr.mxu1 %v11303_v14  ;;  %v12071_v14 = vld [vmem:[%s15853_s26 + $0x200] sm:$0xff]  }
 0x1fd   :  { %12376 = vmatpush3.msra.mxu1 %v11271_v15  ;;  %v11334_v15 = vunpack.c.l.bf16 %v12072_v8 }
 0x1fe   :  { %12377 = vmatprep.subr.mxu1 %v11302_v17  ;;  %v11331_v17 = vunpack.c.h.bf16 %v12071_v14 }
 0x1ff   :  { %12378 = vmatpush3.msra.mxu1 %v11270_v19  ;;  %v11330_v19 = vunpack.c.l.bf16 %v12071_v14 }
 0x200   :  { %12379 = vmatprep.subr.mxu1 %v11299_v20  ;;  %v10405_v20 = vld [vmem:[%s15855_s25 + $0x40] sm:$0xff] }
 0x201   :  { %12380 = vmatpush3.msra.mxu1 %v11267_v21 }
 0x202   :  { %12381 = vmatprep.subr.mxu1 %v11298_v22 }
 0x203   :  { %12382 = vmatpush3.msra.mxu1 %v11266_v23 }
 0x204   :  { %858 = vmatmul.mubr.f32.vlgmr.msra.gmra.mxu1 %v14106_v33 }
 0x205   :  { %13051 = vmatprep.mubr.msk.f32.mxu1 %vm344_vm0, %v10405_v20 }
 0x2a4   :  { %v13043_v25 = vpop.f32.mrf.mxu1 }
 0x2a5   :  { %v14247_v26 = vadd.f32 %v13043_v25, %v14184_v34  ;;  %v11359_v34 = vunpack.c.h.bf16 %v12078_v32  ;;  %v12102_v25 = vld [vmem:[%s15853_s26 + $0x2f8] sm:$0xff]  }
 0x2a6   :  { %v14249_v27 = vpop.f32.mrf.mxu1 }
 0x2c4   :  { %v12383_v28 = vpop.f32.mrf.mxu1 }
 0x2c6   :  { %v12384_v36 = vpop.f32.mrf.mxu1 }
 0x2c7   :  { %v12385_v37 = vadd.f32 %v12384_v36, %v12383_v28  ;;  %v12094_v28 = vld [vmem:[%s15853_s26 + $0x2b8] sm:$0xff]   ;;  %v11455_v36 = vunpack.c.h.bf16 %v12102_v25 }
 0x2c8   :  { %v11422_v40 = vunpack.c.l.bf16 %v12094_v28 }
 0x2c9   :  { %13044 = vmatprep.subr.mxu0 %v12385_v37 }
 0x2ca   :  { %13045 = vmatpush3.msra.mxu0 %v12385_v37  ;;  %v10406_v37 = vld [vmem:[%s15855_s25 + $0x48] sm:$0xff] }
 0x2cb   :  { %13047 = vmatmul.mubr.msk.f32.vlgmr.msra.gmra.mxu0 %vm344_vm0, %v10370_v39  ;;  %12389 = vmatprep.subr.mxu0 %v11391_v38  ;;  %v12101_v38 = vld [vmem:[%s15853_s26 + $0x2f0] sm:$0xff]   ;;  %v11454_v39 = vunpack.c.l.bf16 %v12102_v25  ;;  %v12110_v25 = vld [vmem:[%s15853_s26 + $0x338] sm:$0xff]  }
 0x2cc   :  { %12390 = vmatpush3.msra.mxu0 %v11359_v34  ;;  %1078 = vmatprep.mubr.f32.mxu0 %v14101_v31  ;;  %v12093_v34 = vld [vmem:[%s15853_s26 + $0x2b0] sm:$0xff]  }
 0x2cd   :  { %12391 = vmatprep.subr.mxu0 %v11390_v41  ;;  %v11451_v41 = vunpack.c.h.bf16 %v12101_v38  ;;  %v11419_v42 = vunpack.c.h.bf16 %v12093_v34  ;;  %v11418_v46 = vunpack.c.l.bf16 %v12093_v34 }
 0x2ce   :  { %12392 = vmatpush3.msra.mxu0 %v11358_v43  ;;  %v12100_v43 = vld [vmem:[%s15853_s26 + $0x2e8] sm:$0xff]  }
 0x2cf   :  { %12393 = vmatprep.subr.mxu0 %v11387_v44  ;;  %v11450_v44 = vunpack.c.l.bf16 %v12101_v38  ;;  %v12109_v38 = vld [vmem:[%s15853_s26 + $0x330] sm:$0xff]  }
 0x2d0   :  { %12394 = vmatpush3.msra.mxu0 %v11355_v45  ;;  %v12092_v45 = vld [vmem:[%s15853_s26 + $0x2a8] sm:$0xff]  }
 0x2d1   :  { %12395 = vmatprep.subr.mxu0 %v11386_v47  ;;  %v11447_v47 = vunpack.c.h.bf16 %v12100_v43  ;;  %v11415_v48 = vunpack.c.h.bf16 %v12092_v45  ;;  %v11414_v52 = vunpack.c.l.bf16 %v12092_v45 }
 0x2d2   :  { %12396 = vmatpush3.msra.mxu0 %v11354_v49  ;;  %v12099_v49 = vld [vmem:[%s15853_s26 + $0x2e0] sm:$0xff]  }
 0x2d3   :  { %12397 = vmatprep.subr.mxu0 %v11383_v50  ;;  %v11446_v50 = vunpack.c.l.bf16 %v12100_v43  ;;  %v12108_v43 = vld [vmem:[%s15853_s26 + $0x328] sm:$0xff]  }
 0x2d4   :  { %12398 = vmatpush3.msra.mxu0 %v11351_v51  ;;  %v12091_v51 = vld [vmem:[%s15853_s26 + $0x2a0] sm:$0xff]  }
 0x2d5   :  { %12399 = vmatprep.subr.mxu0 %v11382_v53  ;;  %v11443_v53 = vunpack.c.h.bf16 %v12099_v49  ;;  %v11411_v54 = vunpack.c.h.bf16 %v12091_v51  ;;  %v11410_v58 = vunpack.c.l.bf16 %v12091_v51 }
 0x2d6   :  { %12400 = vmatpush3.msra.mxu0 %v11350_v55  ;;  %v12098_v55 = vld [vmem:[%s15853_s26 + $0x2d8] sm:$0xff]  }
 0x2d7   :  { %12401 = vmatprep.subr.mxu0 %v11379_v56  ;;  %v11442_v56 = vunpack.c.l.bf16 %v12099_v49  ;;  %v11478_v49 = vunpack.c.l.bf16 %v12108_v43 }
 0x2d8   :  { %12402 = vmatpush3.msra.mxu0 %v11347_v57  ;;  %v12090_v57 = vld [vmem:[%s15853_s26 + $0x298] sm:$0xff]  }
 0x2d9   :  { %12403 = vmatprep.subr.mxu0 %v11378_v59  ;;  %v11439_v59 = vunpack.c.h.bf16 %v12098_v55  ;;  %v11407_v60 = vunpack.c.h.bf16 %v12090_v57  ;;  %v11406_v0 = vunpack.c.l.bf16 %v12090_v57 }
 0x2da   :  { %12404 = vmatpush3.msra.mxu0 %v11346_v61  ;;  %v12097_v61 = vld [vmem:[%s15853_s26 + $0x2d0] sm:$0xff]  }
 0x2db   :  { %12405 = vmatprep.subr.mxu0 %v11375_v62  ;;  %v11438_v62 = vunpack.c.l.bf16 %v12098_v55 }
 0x2dc   :  { %12406 = vmatpush3.msra.mxu0 %v11343_v63  ;;  %v12089_v63 = vld [vmem:[%s15853_s26 + $0x290] sm:$0xff]  }
 0x2dd   :  { %12407 = vmatprep.subr.mxu0 %v11374_v1  ;;  %v11435_v1 = vunpack.c.h.bf16 %v12097_v61  ;;  %v11403_v2 = vunpack.c.h.bf16 %v12089_v63  ;;  %v11402_v6 = vunpack.c.l.bf16 %v12089_v63 }
 0x2de   :  { %12408 = vmatpush3.msra.mxu0 %v11342_v3  ;;  %v12096_v3 = vld [vmem:[%s15853_s26 + $0x2c8] sm:$0xff]  }
 0x2df   :  { %12409 = vmatprep.subr.mxu0 %v11371_v4  ;;  %v11434_v4 = vunpack.c.l.bf16 %v12097_v61 }
 0x2e0   :  { %12410 = vmatpush3.msra.mxu0 %v11339_v5  ;;  %v12088_v5 = vld [vmem:[%s15853_s26 + $0x288] sm:$0xff]  }
 0x2e1   :  { %12411 = vmatprep.subr.mxu0 %v11370_v7  ;;  %v11431_v7 = vunpack.c.h.bf16 %v12096_v3  ;;  %v11399_v8 = vunpack.c.h.bf16 %v12088_v5  ;;  %v11398_v12 = vunpack.c.l.bf16 %v12088_v5 }
 0x2e2   :  { %12412 = vmatpush3.msra.mxu0 %v11338_v9  ;;  %v12095_v9 = vld [vmem:[%s15853_s26 + $0x2c0] sm:$0xff]  }
 0x2e3   :  { %12413 = vmatprep.subr.mxu0 %v11367_v10  ;;  %v11430_v10 = vunpack.c.l.bf16 %v12096_v3 }
 0x2e4   :  { %12414 = vmatpush3.msra.mxu0 %v11335_v11  ;;  %v12087_v11 = vld [vmem:[%s15853_s26 + $0x280] sm:$0xff]  }
 0x2e5   :  { %12415 = vmatprep.subr.mxu0 %v11366_v13  ;;  %v11427_v13 = vunpack.c.h.bf16 %v12095_v9  ;;  %v11395_v14 = vunpack.c.h.bf16 %v12087_v11 }
 0x2e6   :  { %12416 = vmatpush3.msra.mxu0 %v11334_v15  ;;  %v11426_v15 = vunpack.c.l.bf16 %v12095_v9 }
 0x2e7   :  { %12417 = vmatprep.subr.mxu0 %v11363_v16  ;;  %v11394_v16 = vunpack.c.l.bf16 %v12087_v11 }
 0x2e8   :  { %12418 = vmatpush3.msra.mxu0 %v11331_v17  ;;  %v10441_v17 = vld [vmem:[%s15855_s25 + $0x50] sm:$0xff] }
 0x2e9   :  { %12419 = vmatprep.subr.mxu0 %v11362_v18 }
 0x2ea   :  { %12420 = vmatpush3.msra.mxu0 %v11330_v19 }
 0x2eb   :  { %1079 = vmatmul.mubr.f32.vlgmr.msra.gmra.mxu0 %v14106_v33 }
 0x2ec   :  { %13056 = vmatprep.mubr.msk.f32.mxu0 %vm344_vm0, %v10441_v17 }
 0x38b   :  { %v13048_v21 = vpop.f32.mrf.mxu0 }
 0x38c   :  { %v14310_v22 = vadd.f32 %v13048_v21, %v14247_v26  ;;  %v11423_v26 = vunpack.c.h.bf16 %v12094_v28 }
 0x38d   :  { %v14312_v23 = vpop.f32.mrf.mxu0 }
 0x3ab   :  { %v12421_v24 = vpop.f32.mrf.mxu0 }
 0x3ad   :  { %v12422_v29 = vpop.f32.mrf.mxu0 }
 0x3ae   :  { %v12423_v32 = vadd.f32 %v12422_v29, %v12421_v24  ;;  %v12118_v24 = vld [vmem:[%s15853_s26 + $0x378] sm:$0xff]  }
 0x3b0   :  { %13049 = vmatprep.subr.mxu1 %v12423_v32 }
 0x3b1   :  { %13050 = vmatpush3.msra.mxu1 %v12423_v32  ;;  %v11519_v32 = vunpack.c.h.bf16 %v12118_v24 }
 0x3b2   :  { %13052 = vmatmul.mubr.msk.f32.vlgmr.msra.gmra.mxu1 %vm344_vm0, %v10406_v37  ;;  %12427 = vmatprep.subr.mxu1 %v11455_v36  ;;  %v10442_v36 = vld [vmem:[%s15855_s25 + $0x58] sm:$0xff]  ;;  %v12117_v37 = vld [vmem:[%s15853_s26 + $0x370] sm:$0xff]  }
 0x3b3   :  { %12428 = vmatpush3.msra.mxu1 %v11423_v26  ;;  %1299 = vmatprep.mubr.f32.mxu1 %v14101_v31  ;;  %v11518_v26 = vunpack.c.l.bf16 %v12118_v24  ;;  %v11515_v34 = vunpack.c.h.bf16 %v12117_v37 }
 0x3b4   :  { %12429 = vmatprep.subr.mxu1 %v11454_v39  ;;  %v11486_v39 = vunpack.c.l.bf16 %v12110_v25 }
 0x3b5   :  { %12430 = vmatpush3.msra.mxu1 %v11422_v40  ;;  %v11483_v40 = vunpack.c.h.bf16 %v12109_v38 }
 0x3b6   :  { %12431 = vmatprep.subr.mxu1 %v11451_v41  ;;  %v12116_v41 = vld [vmem:[%s15853_s26 + $0x368] sm:$0xff]  }
 0x3b7   :  { %12432 = vmatpush3.msra.mxu1 %v11419_v42  ;;  %v11514_v42 = vunpack.c.l.bf16 %v12117_v37  ;;  %v11511_v45 = vunpack.c.h.bf16 %v12116_v41 }
 0x3b8   :  { %12433 = vmatprep.subr.mxu1 %v11450_v44  ;;  %v11482_v44 = vunpack.c.l.bf16 %v12109_v38 }
 0x3b9   :  { %12434 = vmatpush3.msra.mxu1 %v11418_v46  ;;  %v11479_v46 = vunpack.c.h.bf16 %v12108_v43 }
 0x3ba   :  { %12435 = vmatprep.subr.mxu1 %v11447_v47  ;;  %v12115_v47 = vld [vmem:[%s15853_s26 + $0x360] sm:$0xff]  }
 0x3bb   :  { %12436 = vmatpush3.msra.mxu1 %v11415_v48  ;;  %v11510_v48 = vunpack.c.l.bf16 %v12116_v41  ;;  %v12124_v41 = vld [vmem:[%s15853_s26 + $0x3a8] sm:$0xff]  }
 0x3bc   :  { %12437 = vmatprep.subr.mxu1 %v11446_v50  ;;  %v11507_v50 = vunpack.c.h.bf16 %v12115_v47 }
 0x3bd   :  { %12438 = vmatpush3.msra.mxu1 %v11414_v52  ;;  %v12114_v52 = vld [vmem:[%s15853_s26 + $0x358] sm:$0xff]  }
 0x3be   :  { %12439 = vmatprep.subr.mxu1 %v11443_v53  ;;  %v11506_v53 = vunpack.c.l.bf16 %v12115_v47  ;;  %v12123_v47 = vld [vmem:[%s15853_s26 + $0x3a0] sm:$0xff]  }
 0x3bf   :  { %12440 = vmatpush3.msra.mxu1 %v11411_v54  ;;  %v12106_v54 = vld [vmem:[%s15853_s26 + $0x318] sm:$0xff]  }
 0x3c0   :  { %12441 = vmatprep.subr.mxu1 %v11442_v56  ;;  %v11503_v56 = vunpack.c.h.bf16 %v12114_v52  ;;  %v11471_v57 = vunpack.c.h.bf16 %v12106_v54  ;;  %v11470_v61 = vunpack.c.l.bf16 %v12106_v54 }
 0x3c1   :  { %12442 = vmatpush3.msra.mxu1 %v11410_v58  ;;  %v12113_v58 = vld [vmem:[%s15853_s26 + $0x350] sm:$0xff]  }
 0x3c2   :  { %12443 = vmatprep.subr.mxu1 %v11439_v59  ;;  %v11502_v59 = vunpack.c.l.bf16 %v12114_v52  ;;  %v12122_v52 = vld [vmem:[%s15853_s26 + $0x398] sm:$0xff]  }
 0x3c3   :  { %12444 = vmatpush3.msra.mxu1 %v11407_v60  ;;  %v12105_v60 = vld [vmem:[%s15853_s26 + $0x310] sm:$0xff]  }
 0x3c4   :  { %12445 = vmatprep.subr.mxu1 %v11438_v62  ;;  %v11499_v62 = vunpack.c.h.bf16 %v12113_v58  ;;  %v11467_v63 = vunpack.c.h.bf16 %v12105_v60  ;;  %v11466_v3 = vunpack.c.l.bf16 %v12105_v60 }
 0x3c5   :  { %12446 = vmatpush3.msra.mxu1 %v11406_v0  ;;  %v12112_v0 = vld [vmem:[%s15853_s26 + $0x348] sm:$0xff]  }
 0x3c6   :  { %12447 = vmatprep.subr.mxu1 %v11435_v1  ;;  %v11498_v1 = vunpack.c.l.bf16 %v12113_v58  ;;  %v12121_v58 = vld [vmem:[%s15853_s26 + $0x390] sm:$0xff]  }
 0x3c7   :  { %12448 = vmatpush3.msra.mxu1 %v11403_v2  ;;  %v12104_v2 = vld [vmem:[%s15853_s26 + $0x308] sm:$0xff]  }
 0x3c8   :  { %12449 = vmatprep.subr.mxu1 %v11434_v4  ;;  %v11495_v4 = vunpack.c.h.bf16 %v12112_v0  ;;  %v11463_v5 = vunpack.c.h.bf16 %v12104_v2  ;;  %v11462_v9 = vunpack.c.l.bf16 %v12104_v2 }
 0x3c9   :  { %12450 = vmatpush3.msra.mxu1 %v11402_v6  ;;  %v12111_v6 = vld [vmem:[%s15853_s26 + $0x340] sm:$0xff]  }
 0x3ca   :  { %12451 = vmatprep.subr.mxu1 %v11431_v7  ;;  %v11494_v7 = vunpack.c.l.bf16 %v12112_v0  ;;  %v12120_v0 = vld [vmem:[%s15853_s26 + $0x388] sm:$0xff]  }
 0x3cb   :  { %12452 = vmatpush3.msra.mxu1 %v11399_v8  ;;  %v12103_v8 = vld [vmem:[%s15853_s26 + $0x300] sm:$0xff]  }
 0x3cc   :  { %12453 = vmatprep.subr.mxu1 %v11430_v10  ;;  %v11491_v10 = vunpack.c.h.bf16 %v12111_v6  ;;  %v11459_v11 = vunpack.c.h.bf16 %v12103_v8 }
 0x3cd   :  { %12454 = vmatpush3.msra.mxu1 %v11398_v12  ;;  %v11490_v12 = vunpack.c.l.bf16 %v12111_v6  ;;  %v12119_v6 = vld [vmem:[%s15853_s26 + $0x380] sm:$0xff]  }
 0x3ce   :  { %12455 = vmatprep.subr.mxu1 %v11427_v13  ;;  %v11458_v13 = vunpack.c.l.bf16 %v12103_v8 }
 0x3cf   :  { %12456 = vmatpush3.msra.mxu1 %v11395_v14  ;;  %v10477_v14 = vld [vmem:[%s15855_s25 + $0x60] sm:$0xff] }
 0x3d0   :  { %12457 = vmatprep.subr.mxu1 %v11426_v15 }
 0x3d1   :  { %12458 = vmatpush3.msra.mxu1 %v11394_v16 }
 0x3d2   :  { %1300 = vmatmul.mubr.f32.vlgmr.msra.gmra.mxu1 %v14106_v33 }
 0x3d3   :  { %13061 = vmatprep.mubr.msk.f32.mxu1 %vm344_vm0, %v10477_v14 }
 0x472   :  { %v13053_v18 = vpop.f32.mrf.mxu1 }
 0x473   :  { %v14373_v19 = vadd.f32 %v13053_v18, %v14310_v22  ;;  %v11487_v22 = vunpack.c.h.bf16 %v12110_v25 }
 0x474   :  { %v14375_v20 = vpop.f32.mrf.mxu1 }
 0x492   :  { %v12459_v21 = vpop.f32.mrf.mxu1 }
 0x494   :  { %v12460_v28 = vpop.f32.mrf.mxu1 }
 0x495   :  { %v12461_v29 = vadd.f32 %v12460_v28, %v12459_v21  ;;  %v12134_v21 = vld [vmem:[%s15853_s26 + $0x3f8] sm:$0xff]  }
 0x496   :  { %v11583_v28 = vunpack.c.h.bf16 %v12134_v21 }
 0x497   :  { %13054 = vmatprep.subr.mxu0 %v12461_v29 }
 0x498   :  { %13055 = vmatpush3.msra.mxu0 %v12461_v29  ;;  %v10478_v29 = vld [vmem:[%s15855_s25 + $0x68] sm:$0xff] }
 0x499   :  { %13057 = vmatmul.mubr.msk.f32.vlgmr.msra.gmra.mxu0 %vm344_vm0, %v10442_v36  ;;  %12465 = vmatprep.subr.mxu0 %v11519_v32  ;;  %v12133_v32 = vld [vmem:[%s15853_s26 + $0x3f0] sm:$0xff]   ;;  %v11582_v36 = vunpack.c.l.bf16 %v12134_v21 }
 0x49a   :  { %12466 = vmatpush3.msra.mxu0 %v11487_v22  ;;  %1520 = vmatprep.mubr.f32.mxu0 %v14101_v31  ;;  %v12107_v31 = vld [vmem:[%s15853_s26 + $0x320] sm:$0xff]   ;;  %v12125_v22 = vld [vmem:[%s15853_s26 + $0x3b0] sm:$0xff]  }
 0x49b   :  { %12467 = vmatprep.subr.mxu0 %v11518_v26  ;;  %v11475_v51 = vunpack.c.h.bf16 %v12107_v31  ;;  %v11474_v55 = vunpack.c.l.bf16 %v12107_v31  ;;  %v11579_v26 = vunpack.c.h.bf16 %v12133_v32  ;;  %v11547_v38 = vunpack.c.h.bf16 %v12125_v22 }
 0x49c   :  { %12468 = vmatpush3.msra.mxu0 %v11486_v39  ;;  %v12132_v39 = vld [vmem:[%s15853_s26 + $0x3e8] sm:$0xff]  }
 0x49d   :  { %12469 = vmatprep.subr.mxu0 %v11515_v34  ;;  %v14462_v34 = vld [vmem:[%s15854_s22 + $0x8] sm:$0xff]  ;;  %v11575_v43 = vunpack.c.h.bf16 %v12132_v39 }
 0x49e   :  { %12470 = vmatpush3.msra.mxu0 %v11483_v40  ;;  %v11578_v40 = vunpack.c.l.bf16 %v12133_v32  ;;  %v12149_v32 = vld [vmem:[%s15853_s26 + $0x470] sm:$0xff]  }
 0x49f   :  { %12471 = vmatprep.subr.mxu0 %v11514_v42  ;;  %v11546_v42 = vunpack.c.l.bf16 %v12125_v22  ;;  %v12141_v22 = vld [vmem:[%s15853_s26 + $0x430] sm:$0xff]  }
 0x4a0   :  { %12472 = vmatpush3.msra.mxu0 %v11482_v44  ;;  %v11543_v44 = vunpack.c.h.bf16 %v12124_v41 }
 0x4a1   :  { %12473 = vmatprep.subr.mxu0 %v11511_v45  ;;  %v12131_v45 = vld [vmem:[%s15853_s26 + $0x3e0] sm:$0xff]  }
 0x4a2   :  { %12474 = vmatpush3.msra.mxu0 %v11479_v46  ;;  %v11574_v46 = vunpack.c.l.bf16 %v12132_v39  ;;  %v11571_v31 = vunpack.c.h.bf16 %v12131_v45  ;;  %v12148_v39 = vld [vmem:[%s15853_s26 + $0x468] sm:$0xff]  }
 0x4a3   :  { %12475 = vmatprep.subr.mxu0 %v11510_v48  ;;  %v11542_v48 = vunpack.c.l.bf16 %v12124_v41  ;;  %v12140_v41 = vld [vmem:[%s15853_s26 + $0x428] sm:$0xff]  }
 0x4a4   :  { %12476 = vmatpush3.msra.mxu0 %v11478_v49  ;;  %v11539_v49 = vunpack.c.h.bf16 %v12123_v47 }
 0x4a5   :  { %12477 = vmatprep.subr.mxu0 %v11507_v50  ;;  %v12130_v50 = vld [vmem:[%s15853_s26 + $0x3d8] sm:$0xff]  }
 0x4a6   :  { %12478 = vmatpush3.msra.mxu0 %v11475_v51  ;;  %v11570_v51 = vunpack.c.l.bf16 %v12131_v45  ;;  %v11567_v54 = vunpack.c.h.bf16 %v12130_v50  ;;  %v12147_v45 = vld [vmem:[%s15853_s26 + $0x460] sm:$0xff]  }
 0x4a7   :  { %12479 = vmatprep.subr.mxu0 %v11506_v53  ;;  %v11538_v53 = vunpack.c.l.bf16 %v12123_v47  ;;  %v11606_v47 = vunpack.c.l.bf16 %v12140_v41 }
 0x4a8   :  { %12480 = vmatpush3.msra.mxu0 %v11474_v55  ;;  %v11535_v55 = vunpack.c.h.bf16 %v12122_v52 }
 0x4a9   :  { %12481 = vmatprep.subr.mxu0 %v11503_v56  ;;  %v12129_v56 = vld [vmem:[%s15853_s26 + $0x3d0] sm:$0xff]  }
 0x4aa   :  { %12482 = vmatpush3.msra.mxu0 %v11471_v57  ;;  %v11566_v57 = vunpack.c.l.bf16 %v12130_v50  ;;  %v11563_v60 = vunpack.c.h.bf16 %v12129_v56  ;;  %v11634_v50 = vunpack.c.l.bf16 %v12147_v45 }
 0x4ab   :  { %12483 = vmatprep.subr.mxu0 %v11502_v59  ;;  %v11534_v59 = vunpack.c.l.bf16 %v12122_v52 }
 0x4ac   :  { %12484 = vmatpush3.msra.mxu0 %v11470_v61  ;;  %v11531_v61 = vunpack.c.h.bf16 %v12121_v58 }
 0x4ad   :  { %12485 = vmatprep.subr.mxu0 %v11499_v62  ;;  %v12128_v62 = vld [vmem:[%s15853_s26 + $0x3c8] sm:$0xff]  }
 0x4ae   :  { %12486 = vmatpush3.msra.mxu0 %v11467_v63  ;;  %v11562_v63 = vunpack.c.l.bf16 %v12129_v56  ;;  %v11559_v2 = vunpack.c.h.bf16 %v12128_v62 }
 0x4af   :  { %12487 = vmatprep.subr.mxu0 %v11498_v1  ;;  %v11530_v1 = vunpack.c.l.bf16 %v12121_v58 }
 0x4b0   :  { %12488 = vmatpush3.msra.mxu0 %v11466_v3  ;;  %v11527_v3 = vunpack.c.h.bf16 %v12120_v0 }
 0x4b1   :  { %12489 = vmatprep.subr.mxu0 %v11495_v4  ;;  %v12127_v4 = vld [vmem:[%s15853_s26 + $0x3c0] sm:$0xff]  }
 0x4b2   :  { %12490 = vmatpush3.msra.mxu0 %v11463_v5  ;;  %v11558_v5 = vunpack.c.l.bf16 %v12128_v62  ;;  %v11555_v8 = vunpack.c.h.bf16 %v12127_v4 }
 0x4b3   :  { %12491 = vmatprep.subr.mxu0 %v11494_v7  ;;  %v11526_v7 = vunpack.c.l.bf16 %v12120_v0 }
 0x4b4   :  { %12492 = vmatpush3.msra.mxu0 %v11462_v9  ;;  %v11523_v9 = vunpack.c.h.bf16 %v12119_v6 }
 0x4b5   :  { %12493 = vmatprep.subr.mxu0 %v11491_v10  ;;  %v11554_v10 = vunpack.c.l.bf16 %v12127_v4 }
 0x4b6   :  { %12494 = vmatpush3.msra.mxu0 %v11459_v11  ;;  %v11522_v11 = vunpack.c.l.bf16 %v12119_v6 }
 0x4b7   :  { %12495 = vmatprep.subr.mxu0 %v11490_v12  ;;  %v14501_v12 = vld [vmem:[%s15854_s22] sm:$0xff] }
 0x4b8   :  { %12496 = vmatpush3.msra.mxu0 %v11458_v13  ;;  %v10513_v13 = vld [vmem:[%s15855_s25 + $0x70] sm:$0xff] }
 0x4b9   :  { %1521 = vmatmul.mubr.f32.vlgmr.msra.gmra.mxu0 %v14106_v33  ;;  %v12126_v33 = vld [vmem:[%s15853_s26 + $0x3b8] sm:$0xff]  }
 0x4ba   :  { %v11550_v37 = vunpack.c.l.bf16 %v12126_v33  ;;  %13066 = vmatprep.mubr.msk.f32.mxu0 %vm344_vm0, %v10513_v13  ;;  %v13890_v13 = vmov 0  }
 0x4bb   :  { %13886 = vset.pattern.permute.xlu0 %v13890_v13  ;;  %13887 = vset.pattern.permute.xlu1 %v13890_v13  ;;  %v12158_v13 = vld [vmem:[%s15827_s7 + $0x40] sm:$0xff]  }
 0x559   :  { %v13058_v15 = vpop.f32.mrf.mxu0 }
 0x55a   :  { %v14436_v16 = vadd.f32 %v13058_v15, %v14373_v19  ;;  %v11551_v19 = vunpack.c.h.bf16 %v12126_v33  ;;  %v12150_v33 = vld [vmem:[%s15853_s26 + $0x478] sm:$0xff]  }
 0x55b   :  { %v14438_v17 = vpop.f32.mrf.mxu0 }
 0x579   :  { %v12497_v18 = vpop.f32.mrf.mxu0 }
 0x57b   :  { %v12498_v24 = vpop.f32.mrf.mxu0 }
 0x57c   :  { %v12499_v25 = vadd.f32 %v12498_v24, %v12497_v18  ;;  %v12142_v24 = vld [vmem:[%s15853_s26 + $0x438] sm:$0xff]  }
 0x57e   :  { %13059 = vmatprep.subr.mxu1 %v12499_v25 }
 0x57f   :  { %13060 = vmatpush3.msra.mxu1 %v12499_v25 }
 0x580   :  { %13062 = vmatmul.mubr.msk.f32.vlgmr.msra.gmra.mxu1 %vm344_vm0, %v10478_v29  ;;  %12503 = vmatprep.subr.mxu1 %v11583_v28  ;;  %v11647_v29 = vunpack.c.h.bf16 %v12150_v33 }
 0x581   :  { %12504 = vmatpush3.msra.mxu1 %v11551_v19  ;;  %1741 = vmatprep.mubr.f32.mxu1 %v14462_v34  ;;  %v10514_v19 = vld [vmem:[%s15855_s25 + $0x78] sm:$0xff] }
 0x582   :  { %12505 = vmatprep.subr.mxu1 %v11582_v36  ;;  %v11646_v36 = vunpack.c.l.bf16 %v12150_v33  ;;  %v6986_v33 = vld [vmem:[%s15858_s5] sm:$0xff] }
 0x583   :  { %12506 = vmatpush3.msra.mxu1 %v11550_v37  ;;  %v11614_v37 = vunpack.c.l.bf16 %v12142_v24 }
 0x584   :  { %12507 = vmatprep.subr.mxu1 %v11579_v26  ;;  %v11643_v26 = vunpack.c.h.bf16 %v12149_v32 }
 0x585   :  { %12508 = vmatpush3.msra.mxu1 %v11547_v38  ;;  %v11611_v38 = vunpack.c.h.bf16 %v12141_v22 }
 0x586   :  { %12509 = vmatprep.subr.mxu1 %v11578_v40  ;;  %v11642_v40 = vunpack.c.l.bf16 %v12149_v32 }
 0x587   :  { %12510 = vmatpush3.msra.mxu1 %v11546_v42  ;;  %v11610_v42 = vunpack.c.l.bf16 %v12141_v22 }
 0x588   :  { %12511 = vmatprep.subr.mxu1 %v11575_v43  ;;  %v11639_v43 = vunpack.c.h.bf16 %v12148_v39 }
 0x589   :  { %12512 = vmatpush3.msra.mxu1 %v11543_v44  ;;  %v11607_v44 = vunpack.c.h.bf16 %v12140_v41 }
 0x58a   :  { %12513 = vmatprep.subr.mxu1 %v11574_v46  ;;  %v11638_v46 = vunpack.c.l.bf16 %v12148_v39  ;;  %v12152_v39 = vld [vmem:[%s15827_s7 + $0x10] sm:$0xff]  }
 0x58b   :  { %12514 = vmatpush3.msra.mxu1 %v11542_v48  ;;  %v11635_v48 = vunpack.c.h.bf16 %v12147_v45  ;;  %v11658_v41 = vunpack.c.l.bf16 %v12152_v39  ;;  %v11649_v45 = vld [vmem:[%s15827_s7] sm:$0xff]  }
 0x58c   :  { %12515 = vmatprep.subr.mxu1 %v11571_v31 }
 0x58d   :  { %12516 = vmatpush3.msra.mxu1 %v11539_v49  ;;  %v12146_v49 = vld [vmem:[%s15853_s26 + $0x458] sm:$0xff]  }
 0x58e   :  { %12517 = vmatprep.subr.mxu1 %v11570_v51  ;;  %v12138_v51 = vld [vmem:[%s15853_s26 + $0x418] sm:$0xff]   ;;  %v11630_v56 = vunpack.c.l.bf16 %v12146_v49 }
 0x58f   :  { %12518 = vmatpush3.msra.mxu1 %v11538_v53  ;;  %v11631_v53 = vunpack.c.h.bf16 %v12146_v49  ;;  %v11598_v58 = vunpack.c.l.bf16 %v12138_v51 }
 0x590   :  { %12519 = vmatprep.subr.mxu1 %v11567_v54  ;;  %v11599_v54 = vunpack.c.h.bf16 %v12138_v51 }
 0x591   :  { %12520 = vmatpush3.msra.mxu1 %v11535_v55  ;;  %v12145_v55 = vld [vmem:[%s15853_s26 + $0x450] sm:$0xff]  }
 0x592   :  { %12521 = vmatprep.subr.mxu1 %v11566_v57  ;;  %v12137_v57 = vld [vmem:[%s15853_s26 + $0x410] sm:$0xff]   ;;  %v11626_v62 = vunpack.c.l.bf16 %v12145_v55 }
 0x593   :  { %12522 = vmatpush3.msra.mxu1 %v11534_v59  ;;  %v11627_v59 = vunpack.c.h.bf16 %v12145_v55  ;;  %v11594_v0 = vunpack.c.l.bf16 %v12137_v57 }
 0x594   :  { %12523 = vmatprep.subr.mxu1 %v11563_v60  ;;  %v11595_v60 = vunpack.c.h.bf16 %v12137_v57 }
 0x595   :  { %12524 = vmatpush3.msra.mxu1 %v11531_v61  ;;  %v12144_v61 = vld [vmem:[%s15853_s26 + $0x448] sm:$0xff]  }
 0x596   :  { %12525 = vmatprep.subr.mxu1 %v11562_v63  ;;  %v12136_v63 = vld [vmem:[%s15853_s26 + $0x408] sm:$0xff]   ;;  %v11622_v4 = vunpack.c.l.bf16 %v12144_v61 }
 0x597   :  { %12526 = vmatpush3.msra.mxu1 %v11530_v1  ;;  %v11623_v1 = vunpack.c.h.bf16 %v12144_v61  ;;  %v11590_v6 = vunpack.c.l.bf16 %v12136_v63 }
 0x598   :  { %12527 = vmatprep.subr.mxu1 %v11559_v2  ;;  %v11591_v2 = vunpack.c.h.bf16 %v12136_v63 }
 0x599   :  { %12528 = vmatpush3.msra.mxu1 %v11527_v3  ;;  %v12143_v3 = vld [vmem:[%s15853_s26 + $0x440] sm:$0xff]  }
 0x59a   :  { %12529 = vmatprep.subr.mxu1 %v11558_v5  ;;  %v12135_v5 = vld [vmem:[%s15853_s26 + $0x400] sm:$0xff]  }
 0x59b   :  { %12530 = vmatpush3.msra.mxu1 %v11526_v7  ;;  %v11619_v7 = vunpack.c.h.bf16 %v12143_v3 }
 0x59c   :  { %12531 = vmatprep.subr.mxu1 %v11555_v8  ;;  %v11587_v8 = vunpack.c.h.bf16 %v12135_v5 }
 0x59d   :  { %12532 = vmatpush3.msra.mxu1 %v11523_v9  ;;  %v11618_v9 = vunpack.c.l.bf16 %v12143_v3  ;;  %v12161_v3 = vld [vmem:[%s15827_s7 + $0x58] sm:$0xff]  }
 0x59e   :  { %12533 = vmatprep.subr.mxu1 %v11554_v10  ;;  %v11586_v10 = vunpack.c.l.bf16 %v12135_v5  ;;  %v11695_v5 = vunpack.c.h.bf16 %v12161_v3 }
 0x59f   :  { %12534 = vmatpush3.msra.mxu1 %v11522_v11  ;;  %v10549_v11 = vld [vmem:[%s15855_s25 + $0x80] sm:$0xff] }
 0x5a0   :  { %1742 = vmatmul.mubr.f32.vlgmr.msra.gmra.mxu1 %v14501_v12 }
 0x5a1   :  { %13071 = vmatprep.mubr.msk.f32.mxu1 %vm344_vm0, %v10549_v11 }
 0x640   :  { %v13063_v14 = vpop.f32.mrf.mxu1 }
 0x641   :  { %v14509_v15 = vadd.f32 %v13063_v14, %v14436_v16  ;;  %v11615_v16 = vunpack.c.h.bf16 %v12142_v24  ;;  %v2054_v14 = vld [vmem:[%s15856_s30] sm:$0xff]  ;;  %v6988_v24 = vld [vmem:[%s15858_s5 + $0x10] sm:$0xff] }
 0x642   :  { %v14511_v18 = vpop.f32.mrf.mxu1  ;;  %2058 = vperm.xlu0 %13886, %v2054_v14  }
 0x660   :  { %v12535_v21 = vpop.f32.mrf.mxu1 }
 0x662   :  { %v12536_v25 = vpop.f32.mrf.mxu1 }
 0x663   :  { %v12537_v28 = vadd.f32 %v12536_v25, %v12535_v21  ;;  %v2055_v21 = vld [vmem:[%s15856_s30 + $0x8] sm:$0xff]  ;;  %v8613_v25 = vld [vmem:[%s15825_s17] sm:$0xff] }
 0x664   :  { %2063 = vperm.xlu0 %13886, %v2055_v21   ;;  %v11683_v21 = vunpack.c.h.bf16 %v12158_v13 }
 0x665   :  { %13064 = vmatprep.subr.mxu0 %v12537_v28 }
 0x666   :  { %13065 = vmatpush3.msra.mxu0 %v12537_v28  ;;  %v10249_v28 = vld [vmem:[%s15826_s20] sm:$0xff] }
 0x667   :  { %13067 = vmatmul.mubr.msk.f32.vlgmr.msra.gmra.mxu0 %vm344_vm0, %v10514_v19  ;;  %12541 = vmatprep.subr.mxu0 %v11647_v29 }
 0x668   :  { %12542 = vmatpush3.msra.mxu0 %v11615_v16  ;;  %1962 = vmatprep.mubr.f32.mxu0 %v14462_v34  ;;  %v12139_v34 = vld [vmem:[%s15853_s26 + $0x420] sm:$0xff]  }
 0x669   :  { %12543 = vmatprep.subr.mxu0 %v11646_v36  ;;  %v11603_v31 = vunpack.c.h.bf16 %v12139_v34  ;;  %v11602_v52 = vunpack.c.l.bf16 %v12139_v34  ;;  %v12153_v36 = vld [vmem:[%s15827_s7 + $0x18] sm:$0xff]   ;;  %v11650_v34 = vunpack.c.l.bf16 %v11649_v45 }
 0x66a   :  { %12544 = vmatpush3.msra.mxu0 %v11614_v37 }
 0x66b   :  { %12545 = vmatprep.subr.mxu0 %v11643_v26  ;;  %v11663_v26 = vunpack.c.h.bf16 %v12153_v36 }
 0x66c   :  { %12546 = vmatpush3.msra.mxu0 %v11611_v38  ;;  %v10550_v38 = vld [vmem:[%s15855_s25 + $0x88] sm:$0xff] }
 0x66d   :  { %12547 = vmatprep.subr.mxu0 %v11642_v40  ;;  %v11662_v40 = vunpack.c.l.bf16 %v12153_v36  ;;  %v10581_v36 = vld [vmem:[%s15828_s6 + $0x20] sm:$0xff] }
 0x66e   :  { %12548 = vmatpush3.msra.mxu0 %v11610_v42  ;;  %v12151_v42 = vld [vmem:[%s15827_s7 + $0x8] sm:$0xff]  }
 0x66f   :  { %12549 = vmatprep.subr.mxu0 %v11639_v43  ;;  %v11655_v43 = vunpack.c.h.bf16 %v12151_v42 }
 0x670   :  { %12550 = vmatpush3.msra.mxu0 %v11607_v44  ;;  %v11654_v44 = vunpack.c.l.bf16 %v12151_v42  ;;  %v12163_v42 = vld [vmem:[%s15827_s7 + $0x68] sm:$0xff]  }
 0x671   :  { %12551 = vmatprep.subr.mxu0 %v11638_v46  ;;  %v11651_v46 = vunpack.c.h.bf16 %v11649_v45  ;;  %v12162_v45 = vld [vmem:[%s15827_s7 + $0x60] sm:$0xff]  }
 0x672   :  { %12552 = vmatpush3.msra.mxu0 %v11606_v47  ;;  %v12157_v47 = vld [vmem:[%s15827_s7 + $0x38] sm:$0xff]  }
 0x673   :  { %12553 = vmatprep.subr.mxu0 %v11635_v48  ;;  %v11679_v48 = vunpack.c.h.bf16 %v12157_v47 }
 0x674   :  { %12554 = vmatpush3.msra.mxu0 %v11603_v31  ;;  %v499_v31 = vadd.f32 %v14186_v35, %v14182_v30  ;;  %v12156_v35 = vld [vmem:[%s15827_s7 + $0x30] sm:$0xff]  }
 0x675   :  { %12555 = vmatprep.subr.mxu0 %v11634_v50 }
 0x676   :  { %12556 = vmatpush3.msra.mxu0 %v11602_v52  ;;  %v726_v49 = vadd.f32 %v14249_v27, %v499_v31 }
 0x677   :  { %12557 = vmatprep.subr.mxu0 %v11631_v53 }
 0x678   :  { %12558 = vmatpush3.msra.mxu0 %v11599_v54  ;;  %v947_v50 = vadd.f32 %v14312_v23, %v726_v49  ;;  %v11678_v23 = vunpack.c.l.bf16 %v12157_v47  ;;  %v11698_v47 = vunpack.c.l.bf16 %v12162_v45 }
 0x679   :  { %12559 = vmatprep.subr.mxu0 %v11630_v56 }
 0x67a   :  { %12560 = vmatpush3.msra.mxu0 %v11598_v58  ;;  %v1168_v51 = vadd.f32 %v14375_v20, %v947_v50  ;;  %v11675_v20 = vunpack.c.h.bf16 %v12156_v35 }
 0x67b   :  { %12561 = vmatprep.subr.mxu0 %v11627_v59 }
 0x67c   :  { %12562 = vmatpush3.msra.mxu0 %v11595_v60  ;;  %v1389_v52 = vadd.f32 %v14438_v17, %v1168_v51  ;;  %v12155_v17 = vld [vmem:[%s15827_s7 + $0x28] sm:$0xff]  }
 0x67d   :  { %12563 = vmatprep.subr.mxu0 %v11626_v62  ;;  %v11671_v63 = vunpack.c.h.bf16 %v12155_v17 }
 0x67e   :  { %12564 = vmatpush3.msra.mxu0 %v11594_v0  ;;  %v1610_v54 = vadd.f32 %v14511_v18, %v1389_v52  ;;  %v11674_v18 = vunpack.c.l.bf16 %v12156_v35  ;;  %v12154_v0 = vld [vmem:[%s15827_s7 + $0x20] sm:$0xff]  }
 0x67f   :  { %12565 = vmatprep.subr.mxu0 %v11623_v1  ;;  %v11670_v1 = vunpack.c.l.bf16 %v12155_v17 }
 0x680   :  { %12566 = vmatpush3.msra.mxu0 %v11591_v2  ;;  %v11667_v2 = vunpack.c.h.bf16 %v12154_v0 }
 0x681   :  { %12567 = vmatprep.subr.mxu0 %v11622_v4  ;;  %v11666_v4 = vunpack.c.l.bf16 %v12154_v0 }
 0x682   :  { %12568 = vmatpush3.msra.mxu0 %v11590_v6  ;;  %v12160_v6 = vld [vmem:[%s15827_s7 + $0x50] sm:$0xff]  }
 0x683   :  { %12569 = vmatprep.subr.mxu0 %v11619_v7  ;;  %v11694_v7 = vunpack.c.l.bf16 %v12161_v3 }
 0x684   :  { %12570 = vmatpush3.msra.mxu0 %v11587_v8  ;;  %v11691_v8 = vunpack.c.h.bf16 %v12160_v6 }
 0x685   :  { %12571 = vmatprep.subr.mxu0 %v11618_v9  ;;  %v12159_v9 = vld [vmem:[%s15827_s7 + $0x48] sm:$0xff]  }
 0x686   :  { %12572 = vmatpush3.msra.mxu0 %v11586_v10  ;;  %v11690_v10 = vunpack.c.l.bf16 %v12160_v6  ;;  %v11687_v11 = vunpack.c.h.bf16 %v12159_v9  ;;  %v11686_v14 = vunpack.c.l.bf16 %v12159_v9  ;;  %v12173_v9 = vld [vmem:[%s15827_s7 + $0xb8] sm:$0xff]  }
 0x687   :  { %1963 = vmatmul.mubr.f32.vlgmr.msra.gmra.mxu0 %v14501_v12  ;;  %v5296_v12 = vld [vmem:[%s15857_s24] sm:$0xff] }
 0x688   :  { %5300 = vperm.xlu0 %13886, %v5296_v12   ;;  %v11682_v12 = vunpack.c.l.bf16 %v12158_v13 }
 0x68c   :  { %6992 = vperm.xlu0 %13886, %v6986_v33   ;;  %v10565_v33 = vld [vmem:[%s15828_s6 + $0x10] sm:$0xff] }
 0x68d   :  { %13116 = vmatprep.mubr.msk.f32.mxu0 %vm2267_vm2, %v10565_v33 }
 0x690   :  { %7002 = vperm.xlu0 %13886, %v6988_v24  }
 0x694   :  { %8617 = vperm.xlu0 %13886, %v8613_v25  }
 0x698   :  { %10252 = vperm.xlu0 %13886, %v10249_v28  }
 0x6bd   :  { %v2059_v53 = vpop.permute.xlu0 %2058 }
 0x6df   :  { %v2064_v59 = vpop.permute.xlu0 %2063 }
 0x727   :  { %v13068_v29 = vpop.f32.mrf.mxu0 }
 0x728   :  { %v1832_v19 = vadd.f32 %v13068_v29, %v14509_v15  ;;  %v11659_v15 = vunpack.c.h.bf16 %v12152_v39  ;;  %v10582_v39 = vld [vmem:[%s15828_s6 + $0x28] sm:$0xff] }
 0x729   :  { %v1822_v16 = vpop.f32.mrf.mxu0 }
 0x72a   :  { %v1831_v56 = vadd.f32 %v1822_v16, %v1610_v54  ;;  %v2170_v16 = vld [vmem:[%s15828_s6] sm:$0xff] }
 0x747   :  { %v12573_v32 = vpop.f32.mrf.mxu0 }
 0x749   :  { %v12574_v22 = vpop.f32.mrf.mxu0 }
 0x74a   :  { %v12575_v37 = vadd.f32 %v12574_v22, %v12573_v32  ;;  %v2171_v32 = vld [vmem:[%s15828_s6 + $0x8] sm:$0xff]  ;;  %v12165_v22 = vld [vmem:[%s15827_s7 + $0x78] sm:$0xff]  }
 0x74c   :  { %13069 = vmatprep.subr.mxu1 %v12575_v37 }
 0x74d   :  { %13070 = vmatpush3.msra.mxu1 %v12575_v37 }
 0x74e   :  { %13072 = vmatmul.mubr.msk.f32.vlgmr.msra.gmra.mxu1 %vm344_vm0, %v10550_v38  ;;  %13074 = vmatprep.subr.mxu1 %v11663_v26 }
 0x74f   :  { %13075 = vmatpush3.msra.mxu1 %v11663_v26  ;;  %v11711_v26 = vunpack.c.h.bf16 %v12165_v22 }
 0x750   :  { %13076 = vmatprep.subr.mxu1 %v11662_v40 }
 0x751   :  { %13077 = vmatpush3.msra.mxu1 %v11662_v40  ;;  %v12164_v40 = vld [vmem:[%s15827_s7 + $0x70] sm:$0xff]  }
 0x752   :  { %13078 = vmatprep.subr.mxu1 %v11659_v15 }
 0x753   :  { %13079 = vmatpush3.msra.mxu1 %v11659_v15  ;;  %v11710_v15 = vunpack.c.l.bf16 %v12165_v22 }
 0x754   :  { %13080 = vmatprep.subr.mxu1 %v11658_v41 }
 0x755   :  { %13081 = vmatpush3.msra.mxu1 %v11658_v41  ;;  %v11707_v41 = vunpack.c.h.bf16 %v12164_v40 }
 0x756   :  { %13082 = vmatprep.subr.mxu1 %v11655_v43 }
 0x757   :  { %13083 = vmatpush3.msra.mxu1 %v11655_v43  ;;  %v11706_v43 = vunpack.c.l.bf16 %v12164_v40 }
 0x758   :  { %13084 = vmatprep.subr.mxu1 %v11654_v44 }
 0x759   :  { %13085 = vmatpush3.msra.mxu1 %v11654_v44  ;;  %v11703_v44 = vunpack.c.h.bf16 %v12163_v42 }
 0x75a   :  { %13086 = vmatprep.subr.mxu1 %v11651_v46 }
 0x75b   :  { %13087 = vmatpush3.msra.mxu1 %v11651_v46  ;;  %v11702_v46 = vunpack.c.l.bf16 %v12163_v42  ;;  %v10624_v42 = vld [vmem:[%s15828_s6 + $0x58] sm:$0xff] }
 0x75c   :  { %13088 = vmatprep.subr.mxu1 %v11650_v34 }
 0x75d   :  { %13089 = vmatpush3.msra.mxu1 %v11650_v34  ;;  %v11699_v34 = vunpack.c.h.bf16 %v12162_v45 }
 0x75e   :  { %13093 = vmatprep.subr.mxu1 %v11679_v48 }
 0x80e   :  { %v13073_v55 = vpop.f32.mrf.mxu1 }
 0x80f   :  { %v2053_v57 = vadd.f32 %v13073_v55, %v1832_v19  ;;  %v10566_v19 = vld [vmem:[%s15828_s6 + $0x18] sm:$0xff] }
 0x810   :  { %v2043_v58 = vpop.f32.mrf.mxu1 }
 0x811   :  { %v2052_v60 = vadd.f32 %v2043_v58, %v1831_v56  ;;  %v2067_v61 = vadd.f32 %v2064_v59, %v2053_v57  ;;  %v12169_v56 = vld [vmem:[%s15827_s7 + $0x98] sm:$0xff]  }
 0x812   :  { %v11727_v58 = vunpack.c.h.bf16 %v12169_v56 }
 0x813   :  { %v2066_v62 = vadd.f32 %v2059_v53, %v2052_v60  ;;  %v14624_v27 = vmax.f32 %v2067_v61, 0.0  ;;  %v10596_v60 = vld [vmem:[%s15828_s6 + $0x38] sm:$0xff]  ;;  %v12168_v61 = vld [vmem:[%s15827_s7 + $0x90] sm:$0xff]  }
 0x814   :  { %v11723_v35 = vunpack.c.h.bf16 %v12168_v61 }
 0x815   :  { %v14619_v30 = vmax.f32 %v2066_v62, 0.0  ;;  %v11726_v62 = vunpack.c.l.bf16 %v12169_v56  ;;  %v12181_v56 = vld [vmem:[%s15827_s7 + $0xf8] sm:$0xff]  }
 0x817   :  { %13090 = vmatprep.mubr.msk.f32.mxu1 %vm2088_vm1, %v14619_v30 }
 0x818   :  { %13091 = vmatmul.mubr.msk.f32.vlgmr.msra.gmra.mxu1 %vm2088_vm1, %v14624_v27 }
 0x819   :  { %13094 = vmatpush3.msra.mxu1 %v11679_v48  ;;  %13109 = vmatprep.mubr.msk.f32.mxu1 %vm2088_vm1, %v14619_v30  ;;  %v10595_v48 = vld [vmem:[%s15828_s6 + $0x30] sm:$0xff] }
 0x81a   :  { %13095 = vmatprep.subr.mxu1 %v11678_v23 }
 0x81b   :  { %13096 = vmatpush3.msra.mxu1 %v11678_v23  ;;  %v12167_v23 = vld [vmem:[%s15827_s7 + $0x88] sm:$0xff]  }
 0x81c   :  { %13097 = vmatprep.subr.mxu1 %v11675_v20  ;;  %v11719_v17 = vunpack.c.h.bf16 %v12167_v23 }
 0x81d   :  { %13098 = vmatpush3.msra.mxu1 %v11675_v20  ;;  %v11722_v20 = vunpack.c.l.bf16 %v12168_v61  ;;  %v12180_v61 = vld [vmem:[%s15827_s7 + $0xf0] sm:$0xff]  }
 0x81e   :  { %13099 = vmatprep.subr.mxu1 %v11674_v18 }
 0x81f   :  { %13100 = vmatpush3.msra.mxu1 %v11674_v18  ;;  %v12166_v18 = vld [vmem:[%s15827_s7 + $0x80] sm:$0xff]  }
 0x820   :  { %13101 = vmatprep.subr.mxu1 %v11671_v63  ;;  %v11715_v0 = vunpack.c.h.bf16 %v12166_v18 }
 0x821   :  { %13102 = vmatpush3.msra.mxu1 %v11671_v63  ;;  %v11718_v63 = vunpack.c.l.bf16 %v12167_v23  ;;  %v12179_v23 = vld [vmem:[%s15827_s7 + $0xe8] sm:$0xff]  }
 0x822   :  { %13103 = vmatprep.subr.mxu1 %v11670_v1 }
 0x823   :  { %13104 = vmatpush3.msra.mxu1 %v11670_v1  ;;  %v11714_v1 = vunpack.c.l.bf16 %v12166_v18  ;;  %v12178_v18 = vld [vmem:[%s15827_s7 + $0xe0] sm:$0xff]  }
 0x824   :  { %13105 = vmatprep.subr.mxu1 %v11667_v2 }
 0x825   :  { %13106 = vmatpush3.msra.mxu1 %v11667_v2  ;;  %v10609_v2 = vld [vmem:[%s15828_s6 + $0x40] sm:$0xff] }
 0x826   :  { %13107 = vmatprep.subr.mxu1 %v11666_v4 }
 0x827   :  { %13108 = vmatpush3.msra.mxu1 %v11666_v4 }
 0x828   :  { %13110 = vmatmul.mubr.msk.f32.vlgmr.msra.gmra.mxu1 %vm2088_vm1, %v14624_v27  ;;  %13126 = vmatprep.subr.mxu1 %v11695_v5 }
 0x829   :  { %13127 = vmatpush3.msra.mxu1 %v11695_v5  ;;  %13142 = vmatprep.mubr.msk.f32.mxu1 %vm2088_vm1, %v14619_v30 }
 0x82a   :  { %13128 = vmatprep.subr.mxu1 %v11694_v7 }
 0x82b   :  { %13129 = vmatpush3.msra.mxu1 %v11694_v7 }
 0x82c   :  { %13130 = vmatprep.subr.mxu1 %v11691_v8 }
 0x82d   :  { %13131 = vmatpush3.msra.mxu1 %v11691_v8 }
 0x82e   :  { %13132 = vmatprep.subr.mxu1 %v11690_v10 }
 0x82f   :  { %13133 = vmatpush3.msra.mxu1 %v11690_v10 }
 0x830   :  { %13134 = vmatprep.subr.mxu1 %v11687_v11 }
 0x831   :  { %13135 = vmatpush3.msra.mxu1 %v11687_v11  ;;  %v11743_v11 = vunpack.c.h.bf16 %v12173_v9 }
 0x832   :  { %13136 = vmatprep.subr.mxu1 %v11686_v14 }
 0x833   :  { %13137 = vmatpush3.msra.mxu1 %v11686_v14  ;;  %v10610_v14 = vld [vmem:[%s15828_s6 + $0x48] sm:$0xff] }
 0x834   :  { %13138 = vmatprep.subr.mxu1 %v11683_v21 }
 0x835   :  { %13139 = vmatpush3.msra.mxu1 %v11683_v21  ;;  %v12172_v21 = vld [vmem:[%s15827_s7 + $0xb0] sm:$0xff]  }
 0x836   :  { %13140 = vmatprep.subr.mxu1 %v11682_v12  ;;  %v11739_v33 = vunpack.c.h.bf16 %v12172_v21 }
 0x837   :  { %13141 = vmatpush3.msra.mxu1 %v11682_v12  ;;  %v11742_v12 = vunpack.c.l.bf16 %v12173_v9 }
 0x838   :  { %13143 = vmatmul.mubr.msk.f32.vlgmr.msra.gmra.mxu1 %vm2088_vm1, %v14624_v27 }
 0x839   :  { %13175 = vmatprep.mubr.msk.f32.mxu1 %vm2267_vm2, %v10595_v48  ;;  %v12174_v48 = vld [vmem:[%s15827_s7 + $0xc0] sm:$0xff]  }
 0x8d8   :  { %v13092_v24 = vpop.f32.mrf.mxu1 }
 0x8da   :  { %v2161_v25 = vpop.f32.mrf.mxu1 }
 0x8e8   :  { %v13111_v28 = vpop.f32.mrf.mxu1 }
 0x8e9   :  { %13112 = vmatprep.subr.mxu0 %v13111_v28 }
 0x8ea   :  { %v2255_v29 = vpop.f32.mrf.mxu1  ;;  %13113 = vmatpush3.msra.mxu0 %v13111_v28 }
 0x8eb   :  { %13114 = vmatprep.subr.mxu0 %v2255_v29 }
 0x8ec   :  { %13115 = vmatpush3.msra.mxu0 %v2255_v29  ;;  %v12170_v29 = vld [vmem:[%s15827_s7 + $0xa0] sm:$0xff]  }
 0x8ed   :  { %13119 = vmatprep.subr.mxu0 %v13092_v24  ;;  %13117 = vmatmul.mubr.msk.f32.vlgmr.msra.gmra.mxu0 %vm2267_vm2, %v10566_v19 }
 0x8ee   :  { %13120 = vmatpush3.msra.mxu0 %v13092_v24  ;;  %13123 = vmatprep.mubr.msk.f32.mxu0 %vm2267_vm2, %v2170_v16  ;;  %v12171_v24 = vld [vmem:[%s15827_s7 + $0xa8] sm:$0xff]   ;;  %v11731_v16 = vunpack.c.h.bf16 %v12170_v29 }
 0x8ef   :  { %13121 = vmatprep.subr.mxu0 %v2161_v25  ;;  %v11735_v28 = vunpack.c.h.bf16 %v12171_v24  ;;  %v11734_v19 = vunpack.c.l.bf16 %v12171_v24 }
 0x8f0   :  { %13122 = vmatpush3.msra.mxu0 %v2161_v25  ;;  %v11738_v25 = vunpack.c.l.bf16 %v12172_v21 }
 0x8f1   :  { %13124 = vmatmul.mubr.msk.f32.vlgmr.msra.gmra.mxu0 %vm2267_vm2, %v2171_v32  ;;  %v11730_v32 = vunpack.c.l.bf16 %v12170_v29 }
 0x8f2   :  { %13149 = vmatprep.mubr.msk.f32.mxu0 %vm2267_vm2, %v10581_v36  ;;  %v10623_v36 = vld [vmem:[%s15828_s6 + $0x50] sm:$0xff] }
 0x8f8   :  { %v13144_v37 = vpop.f32.mrf.mxu1 }
 0x8f9   :  { %13145 = vmatprep.subr.mxu0 %v13144_v37 }
 0x8fa   :  { %v2513_v38 = vpop.f32.mrf.mxu1  ;;  %13146 = vmatpush3.msra.mxu0 %v13144_v37 }
 0x8fb   :  { %13147 = vmatprep.subr.mxu0 %v2513_v38 }
 0x8fc   :  { %13148 = vmatpush3.msra.mxu0 %v2513_v38 }
 0x8fd   :  { %13150 = vmatmul.mubr.msk.f32.vlgmr.msra.gmra.mxu0 %vm2267_vm2, %v10582_v39  ;;  %13152 = vmatprep.subr.mxu0 %v11711_v26  ;;  %v12177_v39 = vld [vmem:[%s15827_s7 + $0xd8] sm:$0xff]  }
 0x8fe   :  { %13153 = vmatpush3.msra.mxu0 %v11711_v26  ;;  %13168 = vmatprep.mubr.msk.f32.mxu0 %vm2088_vm1, %v14619_v30 }
 0x8ff   :  { %13154 = vmatprep.subr.mxu0 %v11710_v15 }
 0x900   :  { %13155 = vmatpush3.msra.mxu0 %v11710_v15  ;;  %v11759_v15 = vunpack.c.h.bf16 %v12177_v39 }
 0x901   :  { %13156 = vmatprep.subr.mxu0 %v11707_v41 }
 0x902   :  { %13157 = vmatpush3.msra.mxu0 %v11707_v41 }
 0x903   :  { %13158 = vmatprep.subr.mxu0 %v11706_v43 }
 0x904   :  { %13159 = vmatpush3.msra.mxu0 %v11706_v43  ;;  %v12176_v43 = vld [vmem:[%s15827_s7 + $0xd0] sm:$0xff]  }
 0x905   :  { %13160 = vmatprep.subr.mxu0 %v11703_v44  ;;  %v11755_v45 = vunpack.c.h.bf16 %v12176_v43 }
 0x906   :  { %13161 = vmatpush3.msra.mxu0 %v11703_v44  ;;  %v11758_v44 = vunpack.c.l.bf16 %v12177_v39  ;;  %v8614_v39 = vld [vmem:[%s15825_s17 + $0x8] sm:$0xff] }
 0x907   :  { %13162 = vmatprep.subr.mxu0 %v11702_v46 }
 0x908   :  { %13163 = vmatpush3.msra.mxu0 %v11702_v46  ;;  %v12175_v46 = vld [vmem:[%s15827_s7 + $0xc8] sm:$0xff]  }
 0x909   :  { %13164 = vmatprep.subr.mxu0 %v11699_v34 }
 0x90a   :  { %13165 = vmatpush3.msra.mxu0 %v11699_v34  ;;  %v11754_v34 = vunpack.c.l.bf16 %v12176_v43  ;;  %v12188_v43 = vld [vmem:[%s15830_s10 + $0x18] sm:$0xff]  }
 0x90b   :  { %13166 = vmatprep.subr.mxu0 %v11698_v47 }
 0x90c   :  { %13167 = vmatpush3.msra.mxu0 %v11698_v47  ;;  %v11751_v47 = vunpack.c.h.bf16 %v12175_v46 }
 0x90d   :  { %13169 = vmatmul.mubr.msk.f32.vlgmr.msra.gmra.mxu0 %vm2088_vm1, %v14624_v27 }
 0x90e   :  { %13201 = vmatprep.mubr.msk.f32.mxu0 %vm2267_vm2, %v10609_v2  ;;  %v10651_v2 = vld [vmem:[%s15828_s6 + $0x70] sm:$0xff] }
 0x9ad   :  { %v13118_v31 = vpop.f32.mrf.mxu0 }
 0x9af   :  { %v2340_v49 = vpop.f32.mrf.mxu0 }
 0x9b1   :  { %v13125_v50 = vpop.f32.mrf.mxu0 }
 0x9b2   :  { %v2427_v51 = vadd.f32 %v13125_v50, %v13118_v31  ;;  %v11750_v31 = vunpack.c.l.bf16 %v12175_v46  ;;  %v11746_v50 = vunpack.c.l.bf16 %v12174_v48 }
 0x9b3   :  { %v2421_v52 = vpop.f32.mrf.mxu0 }
 0x9b4   :  { %v2422_v3 = vadd.f32 %v2421_v52, %v2340_v49  ;;  %v11747_v49 = vunpack.c.h.bf16 %v12174_v48  ;;  %v12187_v48 = vld [vmem:[%s15830_s10 + $0x10] sm:$0xff]  }
 0x9bd   :  { %v13151_v53 = vpop.f32.mrf.mxu0 }
 0x9be   :  { %v2607_v54 = vadd.f32 %v13151_v53, %v2427_v51  ;;  %v10637_v51 = vld [vmem:[%s15828_s6 + $0x60] sm:$0xff] }
 0x9bf   :  { %v2597_v55 = vpop.f32.mrf.mxu0 }
 0x9c0   :  { %v2606_v5 = vadd.f32 %v2597_v55, %v2422_v3 }
 0x9cd   :  { %v13170_v57 = vpop.f32.mrf.mxu0 }
 0x9ce   :  { %13171 = vmatprep.subr.mxu1 %v13170_v57 }
 0x9cf   :  { %v2691_v59 = vpop.f32.mrf.mxu0  ;;  %13172 = vmatpush3.msra.mxu1 %v13170_v57 }
 0x9d0   :  { %13173 = vmatprep.subr.mxu1 %v2691_v59 }
 0x9d1   :  { %13174 = vmatpush3.msra.mxu1 %v2691_v59 }
 0x9d2   :  { %13176 = vmatmul.mubr.msk.f32.vlgmr.msra.gmra.mxu1 %vm2267_vm2, %v10596_v60  ;;  %13178 = vmatprep.subr.mxu1 %v11727_v58  ;;  %v10638_v60 = vld [vmem:[%s15828_s6 + $0x68] sm:$0xff] }
 0x9d3   :  { %13179 = vmatpush3.msra.mxu1 %v11727_v58  ;;  %13194 = vmatprep.mubr.msk.f32.mxu1 %vm2088_vm1, %v14619_v30  ;;  %v11775_v58 = vunpack.c.h.bf16 %v12181_v56 }
 0x9d4   :  { %13180 = vmatprep.subr.mxu1 %v11726_v62 }
 0x9d5   :  { %13181 = vmatpush3.msra.mxu1 %v11726_v62  ;;  %v11774_v62 = vunpack.c.l.bf16 %v12181_v56 }
 0x9d6   :  { %13182 = vmatprep.subr.mxu1 %v11723_v35 }
 0x9d7   :  { %13183 = vmatpush3.msra.mxu1 %v11723_v35  ;;  %v11771_v35 = vunpack.c.h.bf16 %v12180_v61 }
 0x9d8   :  { %13184 = vmatprep.subr.mxu1 %v11722_v20 }
 0x9d9   :  { %13185 = vmatpush3.msra.mxu1 %v11722_v20  ;;  %v11770_v20 = vunpack.c.l.bf16 %v12180_v61 }
 0x9da   :  { %13186 = vmatprep.subr.mxu1 %v11719_v17 }
 0x9db   :  { %13187 = vmatpush3.msra.mxu1 %v11719_v17  ;;  %v11767_v17 = vunpack.c.h.bf16 %v12179_v23 }
 0x9dc   :  { %13188 = vmatprep.subr.mxu1 %v11718_v63 }
 0x9dd   :  { %13189 = vmatpush3.msra.mxu1 %v11718_v63  ;;  %v11766_v63 = vunpack.c.l.bf16 %v12179_v23 }
 0x9de   :  { %13190 = vmatprep.subr.mxu1 %v11715_v0 }
 0x9df   :  { %13191 = vmatpush3.msra.mxu1 %v11715_v0  ;;  %v11763_v0 = vunpack.c.h.bf16 %v12178_v18 }
 0x9e0   :  { %13192 = vmatprep.subr.mxu1 %v11714_v1 }
 0x9e1   :  { %13193 = vmatpush3.msra.mxu1 %v11714_v1  ;;  %v11762_v1 = vunpack.c.l.bf16 %v12178_v18 }
 0x9e2   :  { %13195 = vmatmul.mubr.msk.f32.vlgmr.msra.gmra.mxu1 %vm2088_vm1, %v14624_v27 }
 0x9e3   :  { %13227 = vmatprep.mubr.msk.f32.mxu1 %vm2267_vm2, %v10623_v36  ;;  %v12192_v36 = vld [vmem:[%s15830_s10 + $0x38] sm:$0xff]  }
 0xa92   :  { %v13177_v4 = vpop.f32.mrf.mxu1 }
 0xa93   :  { %v2785_v6 = vadd.f32 %v13177_v4, %v2607_v54 }
 0xa94   :  { %v2775_v7 = vpop.f32.mrf.mxu1 }
 0xa95   :  { %v2784_v8 = vadd.f32 %v2775_v7, %v2606_v5  ;;  %v12185_v7 = vld [vmem:[%s15827_s7 + $0x118] sm:$0xff]  }
 0xa96   :  { %v11791_v9 = vunpack.c.h.bf16 %v12185_v7 }
 0xaa2   :  { %v13196_v10 = vpop.f32.mrf.mxu1 }
 0xaa3   :  { %13197 = vmatprep.subr.mxu0 %v13196_v10 }
 0xaa4   :  { %v2869_v13 = vpop.f32.mrf.mxu1  ;;  %13198 = vmatpush3.msra.mxu0 %v13196_v10 }
 0xaa5   :  { %13199 = vmatprep.subr.mxu0 %v2869_v13 }
 0xaa6   :  { %13200 = vmatpush3.msra.mxu0 %v2869_v13  ;;  %v12184_v13 = vld [vmem:[%s15827_s7 + $0x110] sm:$0xff]  }
 0xaa7   :  { %13202 = vmatmul.mubr.msk.f32.vlgmr.msra.gmra.mxu0 %vm2267_vm2, %v10610_v14  ;;  %13204 = vmatprep.subr.mxu0 %v11743_v11  ;;  %v11790_v14 = vunpack.c.l.bf16 %v12185_v7  ;;  %v11787_v21 = vunpack.c.h.bf16 %v12184_v13 }
 0xaa8   :  { %13205 = vmatpush3.msra.mxu0 %v11743_v11  ;;  %13220 = vmatprep.mubr.msk.f32.mxu0 %vm2088_vm1, %v14619_v30  ;;  %v10652_v11 = vld [vmem:[%s15828_s6 + $0x78] sm:$0xff] }
 0xaa9   :  { %13206 = vmatprep.subr.mxu0 %v11742_v12 }
 0xaaa   :  { %13207 = vmatpush3.msra.mxu0 %v11742_v12  ;;  %v12183_v12 = vld [vmem:[%s15827_s7 + $0x108] sm:$0xff]  }
 0xaab   :  { %13208 = vmatprep.subr.mxu0 %v11739_v33  ;;  %v11783_v24 = vunpack.c.h.bf16 %v12183_v12 }
 0xaac   :  { %13209 = vmatpush3.msra.mxu0 %v11739_v33  ;;  %v11786_v33 = vunpack.c.l.bf16 %v12184_v13 }
 0xaad   :  { %13210 = vmatprep.subr.mxu0 %v11738_v25 }
 0xaae   :  { %13211 = vmatpush3.msra.mxu0 %v11738_v25  ;;  %v12182_v25 = vld [vmem:[%s15827_s7 + $0x100] sm:$0xff]  }
 0xaaf   :  { %13212 = vmatprep.subr.mxu0 %v11735_v28  ;;  %v11779_v29 = vunpack.c.h.bf16 %v12182_v25 }
 0xab0   :  { %13213 = vmatpush3.msra.mxu0 %v11735_v28  ;;  %v11782_v28 = vunpack.c.l.bf16 %v12183_v12  ;;  %v12196_v12 = vld [vmem:[%s15830_s10 + $0x58] sm:$0xff]  }
 0xab1   :  { %13214 = vmatprep.subr.mxu0 %v11734_v19 }
 0xab2   :  { %13215 = vmatpush3.msra.mxu0 %v11734_v19  ;;  %v10665_v19 = vld [vmem:[%s15828_s6 + $0x80] sm:$0xff] }
 0xab3   :  { %13216 = vmatprep.subr.mxu0 %v11731_v16 }
 0xab4   :  { %13217 = vmatpush3.msra.mxu0 %v11731_v16  ;;  %v3676_v16 = vld [vmem:[%s15829_s8] sm:$0xff] }
 0xab5   :  { %13218 = vmatprep.subr.mxu0 %v11730_v32  ;;  %3680 = vperm.xlu1 %13887, %v3676_v16   ;;  %v12194_v16 = vld [vmem:[%s15830_s10 + $0x48] sm:$0xff]  }
 0xab6   :  { %13219 = vmatpush3.msra.mxu0 %v11730_v32  ;;  %v3677_v32 = vld [vmem:[%s15829_s8 + $0x8] sm:$0xff] }
 0xab7   :  { %13221 = vmatmul.mubr.msk.f32.vlgmr.msra.gmra.mxu0 %vm2088_vm1, %v14624_v27 }
 0xab8   :  { %13253 = vmatprep.mubr.msk.f32.mxu0 %vm2267_vm2, %v10637_v51  ;;  %v11802_v51 = vunpack.c.l.bf16 %v12187_v48 }
 0xab9   :  { %3685 = vperm.xlu1 %13887, %v3677_v32  }
 0xb67   :  { %v13203_v22 = vpop.f32.mrf.mxu0 }
 0xb68   :  { %v2963_v37 = vadd.f32 %v13203_v22, %v2785_v6  ;;  %v6987_v22 = vld [vmem:[%s15858_s5 + $0x8] sm:$0xff] }
 0xb69   :  { %v2953_v26 = vpop.f32.mrf.mxu0 }
 0xb6a   :  { %v2962_v38 = vadd.f32 %v2953_v26, %v2784_v8  ;;  %v11822_v26 = vunpack.c.l.bf16 %v12192_v36 }
 0xb77   :  { %v13222_v40 = vpop.f32.mrf.mxu0 }
 0xb78   :  { %13223 = vmatprep.subr.mxu1 %v13222_v40 }
 0xb79   :  { %v3047_v41 = vpop.f32.mrf.mxu0  ;;  %13224 = vmatpush3.msra.mxu1 %v13222_v40 }
 0xb7a   :  { %13225 = vmatprep.subr.mxu1 %v3047_v41 }
 0xb7b   :  { %13226 = vmatpush3.msra.mxu1 %v3047_v41 }
 0xb7c   :  { %13228 = vmatmul.mubr.msk.f32.vlgmr.msra.gmra.mxu1 %vm2267_vm2, %v10624_v42  ;;  %13230 = vmatprep.subr.mxu1 %v11759_v15 }
 0xb7d   :  { %13231 = vmatpush3.msra.mxu1 %v11759_v15  ;;  %13246 = vmatprep.mubr.msk.f32.mxu1 %vm2088_vm1, %v14619_v30 }
 0xb7e   :  { %13232 = vmatprep.subr.mxu1 %v11758_v44 }
 0xb7f   :  { %13233 = vmatpush3.msra.mxu1 %v11758_v44 }
 0xb80   :  { %13234 = vmatprep.subr.mxu1 %v11755_v45 }
 0xb81   :  { %13235 = vmatpush3.msra.mxu1 %v11755_v45  ;;  %v11807_v45 = vunpack.c.h.bf16 %v12188_v43 }
 0xb82   :  { %13236 = vmatprep.subr.mxu1 %v11754_v34 }
 0xb83   :  { %13237 = vmatpush3.msra.mxu1 %v11754_v34  ;;  %v10666_v34 = vld [vmem:[%s15828_s6 + $0x88] sm:$0xff] }
 0xb84   :  { %13238 = vmatprep.subr.mxu1 %v11751_v47 }
 0xb85   :  { %13239 = vmatpush3.msra.mxu1 %v11751_v47  ;;  %v11806_v47 = vunpack.c.l.bf16 %v12188_v43 }
 0xb86   :  { %13240 = vmatprep.subr.mxu1 %v11750_v31 }
 0xb87   :  { %13241 = vmatpush3.msra.mxu1 %v11750_v31  ;;  %v12191_v31 = vld [vmem:[%s15830_s10 + $0x30] sm:$0xff]  }
 0xb88   :  { %13242 = vmatprep.subr.mxu1 %v11747_v49 }
 0xb89   :  { %13243 = vmatpush3.msra.mxu1 %v11747_v49  ;;  %v11803_v49 = vunpack.c.h.bf16 %v12187_v48  ;;  %v12199_v48 = vld [vmem:[%s15830_s10 + $0x70] sm:$0xff]  }
 0xb8a   :  { %13244 = vmatprep.subr.mxu1 %v11746_v50 }
 0xb8b   :  { %13245 = vmatpush3.msra.mxu1 %v11746_v50  ;;  %v11819_v50 = vunpack.c.h.bf16 %v12191_v31 }
 0xb8c   :  { %13247 = vmatmul.mubr.msk.f32.vlgmr.msra.gmra.mxu1 %vm2088_vm1, %v14624_v27 }
 0xb8d   :  { %13279 = vmatprep.mubr.msk.f32.mxu1 %vm2267_vm2, %v10651_v2 }
 0xc3c   :  { %v13229_v52 = vpop.f32.mrf.mxu1 }
 0xc3d   :  { %v3141_v53 = vadd.f32 %v13229_v52, %v2963_v37  ;;  %v11823_v37 = vunpack.c.h.bf16 %v12192_v36  ;;  %v11818_v52 = vunpack.c.l.bf16 %v12191_v31  ;;  %v12193_v36 = vld [vmem:[%s15830_s10 + $0x40] sm:$0xff]  }
 0xc3e   :  { %v3131_v54 = vpop.f32.mrf.mxu1 }
 0xc3f   :  { %v3140_v55 = vadd.f32 %v3131_v54, %v2962_v38  ;;  %v6989_v38 = vld [vmem:[%s15858_s5 + $0x18] sm:$0xff]  ;;  %v12190_v54 = vld [vmem:[%s15830_s10 + $0x28] sm:$0xff]  }
 0xc40   :  { %v11815_v56 = vunpack.c.h.bf16 %v12190_v54 }
 0xc4c   :  { %v13248_v57 = vpop.f32.mrf.mxu1 }
 0xc4d   :  { %13249 = vmatprep.subr.mxu0 %v13248_v57 }
 0xc4e   :  { %v3225_v59 = vpop.f32.mrf.mxu1  ;;  %13250 = vmatpush3.msra.mxu0 %v13248_v57 }
 0xc4f   :  { %13251 = vmatprep.subr.mxu0 %v3225_v59 }
 0xc50   :  { %13252 = vmatpush3.msra.mxu0 %v3225_v59  ;;  %v11793_v59 = vld [vmem:[%s15830_s10] sm:$0xff]  }
 0xc51   :  { %13254 = vmatmul.mubr.msk.f32.vlgmr.msra.gmra.mxu0 %vm2267_vm2, %v10638_v60  ;;  %13256 = vmatprep.subr.mxu0 %v11775_v58  ;;  %v12189_v60 = vld [vmem:[%s15830_s10 + $0x20] sm:$0xff]   ;;  %v11795_v61 = vunpack.c.h.bf16 %v11793_v59 }
 0xc52   :  { %13257 = vmatpush3.msra.mxu0 %v11775_v58  ;;  %13272 = vmatprep.mubr.msk.f32.mxu0 %vm2088_vm1, %v14619_v30  ;;  %v11814_v58 = vunpack.c.l.bf16 %v12190_v54  ;;  %v11810_v23 = vunpack.c.l.bf16 %v12189_v60 }
 0xc53   :  { %13258 = vmatprep.subr.mxu0 %v11774_v62 }
 0xc54   :  { %13259 = vmatpush3.msra.mxu0 %v11774_v62  ;;  %v11811_v62 = vunpack.c.h.bf16 %v12189_v60 }
 0xc55   :  { %13260 = vmatprep.subr.mxu0 %v11771_v35 }
 0xc56   :  { %13261 = vmatpush3.msra.mxu0 %v11771_v35  ;;  %v11794_v35 = vunpack.c.l.bf16 %v11793_v59 }
 0xc57   :  { %13262 = vmatprep.subr.mxu0 %v11770_v20 }
 0xc58   :  { %13263 = vmatpush3.msra.mxu0 %v11770_v20  ;;  %v3681_v20 = vpop.permute.xlu1 %3680 }
 0xc59   :  { %13264 = vmatprep.subr.mxu0 %v11767_v17 }
 0xc5a   :  { %13265 = vmatpush3.msra.mxu0 %v11767_v17 }
 0xc5b   :  { %13266 = vmatprep.subr.mxu0 %v11766_v63 }
 0xc5c   :  { %13267 = vmatpush3.msra.mxu0 %v11766_v63  ;;  %v3686_v63 = vpop.permute.xlu1 %3685 }
 0xc5d   :  { %13268 = vmatprep.subr.mxu0 %v11763_v0 }
 0xc5e   :  { %13269 = vmatpush3.msra.mxu0 %v11763_v0 }
 0xc5f   :  { %13270 = vmatprep.subr.mxu0 %v11762_v1 }
 0xc60   :  { %13271 = vmatpush3.msra.mxu0 %v11762_v1  ;;  %v2071_v1 = vld [vmem:[%s15831_s1 + $0x8] sm:$0xff] }
 0xc61   :  { %13273 = vmatmul.mubr.msk.f32.vlgmr.msra.gmra.mxu0 %vm2088_vm1, %v14624_v27 }
 0xc62   :  { %13305 = vmatprep.mubr.msk.f32.mxu0 %vm2267_vm2, %v10665_v19 }
 0xd11   :  { %v13255_v3 = vpop.f32.mrf.mxu0 }
 0xd12   :  { %v14796_v4 = vadd.f32 %v13255_v3, %v3141_v53  ;;  %v12186_v53 = vld [vmem:[%s15830_s10 + $0x8] sm:$0xff]  }
 0xd13   :  { %v3309_v5 = vpop.f32.mrf.mxu0  ;;  %v11798_v57 = vunpack.c.l.bf16 %v12186_v53 }
 0xd14   :  { %v14798_v6 = vadd.f32 %v3309_v5, %v3140_v55  ;;  %v11799_v55 = vunpack.c.h.bf16 %v12186_v53  ;;  %v12197_v53 = vld [vmem:[%s15830_s10 + $0x60] sm:$0xff]  }
 0xd21   :  { %v13274_v8 = vpop.f32.mrf.mxu0 }
 0xd22   :  { %13275 = vmatprep.subr.mxu1 %v13274_v8 }
 0xd23   :  { %v3403_v10 = vpop.f32.mrf.mxu0  ;;  %13276 = vmatpush3.msra.mxu1 %v13274_v8 }
 0xd24   :  { %13277 = vmatprep.subr.mxu1 %v3403_v10 }
 0xd25   :  { %13278 = vmatpush3.msra.mxu1 %v3403_v10  ;;  %v10681_v10 = vld [vmem:[%s15832_s9 + $0x10] sm:$0xff] }
 0xd26   :  { %13280 = vmatmul.mubr.msk.f32.vlgmr.msra.gmra.mxu1 %vm2267_vm2, %v10652_v11  ;;  %13282 = vmatprep.subr.mxu1 %v11791_v9 }
 0xd27   :  { %13283 = vmatpush3.msra.mxu1 %v11791_v9  ;;  %13298 = vmatprep.mubr.msk.f32.mxu1 %vm2088_vm1, %v14619_v30  ;;  %v11778_v30 = vunpack.c.l.bf16 %v12182_v25 }
 0xd28   :  { %13284 = vmatprep.subr.mxu1 %v11790_v14 }
 0xd29   :  { %13285 = vmatpush3.msra.mxu1 %v11790_v14 }
 0xd2a   :  { %13286 = vmatprep.subr.mxu1 %v11787_v21 }
 0xd2b   :  { %13287 = vmatpush3.msra.mxu1 %v11787_v21  ;;  %v10682_v21 = vld [vmem:[%s15832_s9 + $0x18] sm:$0xff] }
 0xd2c   :  { %13288 = vmatprep.subr.mxu1 %v11786_v33 }
 0xd2d   :  { %13289 = vmatpush3.msra.mxu1 %v11786_v33  ;;  %v3791_v33 = vld [vmem:[%s15832_s9] sm:$0xff] }
 0xd2e   :  { %13290 = vmatprep.subr.mxu1 %v11783_v24 }
 0xd2f   :  { %13291 = vmatpush3.msra.mxu1 %v11783_v24  ;;  %v11839_v24 = vunpack.c.h.bf16 %v12196_v12 }
 0xd30   :  { %13292 = vmatprep.subr.mxu1 %v11782_v28 }
 0xd31   :  { %13293 = vmatpush3.msra.mxu1 %v11782_v28  ;;  %v3792_v28 = vld [vmem:[%s15832_s9 + $0x8] sm:$0xff] }
 0xd32   :  { %13294 = vmatprep.subr.mxu1 %v11779_v29 }
 0xd33   :  { %13295 = vmatpush3.msra.mxu1 %v11779_v29  ;;  %v12195_v29 = vld [vmem:[%s15830_s10 + $0x50] sm:$0xff]  }
 0xd34   :  { %13296 = vmatprep.subr.mxu1 %v11778_v30  ;;  %v11835_v19 = vunpack.c.h.bf16 %v12195_v29  ;;  %v11834_v32 = vunpack.c.l.bf16 %v12195_v29  ;;  %v12207_v29 = vld [vmem:[%s15830_s10 + $0xb0] sm:$0xff]  }
 0xd35   :  { %13297 = vmatpush3.msra.mxu1 %v11778_v30  ;;  %v11838_v30 = vunpack.c.l.bf16 %v12196_v12  ;;  %v12208_v12 = vld [vmem:[%s15830_s10 + $0xb8] sm:$0xff]  }
 0xd36   :  { %13299 = vmatmul.mubr.msk.f32.vlgmr.msra.gmra.mxu1 %vm2088_vm1, %v14624_v27  ;;  %v5297_v27 = vld [vmem:[%s15857_s24 + $0x8] sm:$0xff]  ;;  %13327 = vmatprep.subr.mxu1 %v11823_v37 }
 0xd37   :  { %5305 = vperm.xlu1 %13887, %v5297_v27   ;;  %13328 = vmatpush3.msra.mxu1 %v11823_v37  ;;  %v11831_v27 = vunpack.c.h.bf16 %v12194_v16  ;;  %v11827_v37 = vunpack.c.h.bf16 %v12193_v36 }
 0xd38   :  { %13329 = vmatprep.subr.mxu1 %v11822_v26 }
 0xd39   :  { %13330 = vmatpush3.msra.mxu1 %v11822_v26  ;;  %v11826_v26 = vunpack.c.l.bf16 %v12193_v36  ;;  %v12205_v36 = vld [vmem:[%s15830_s10 + $0xa0] sm:$0xff]  }
 0xd3a   :  { %13331 = vmatprep.subr.mxu1 %v11819_v50 }
 0xd3b   :  { %6997 = vperm.xlu1 %13887, %v6987_v22   ;;  %13332 = vmatpush3.msra.mxu1 %v11819_v50  ;;  %v11830_v22 = vunpack.c.l.bf16 %v12194_v16  ;;  %v12198_v50 = vld [vmem:[%s15830_s10 + $0x68] sm:$0xff]  }
 0xd3c   :  { %13333 = vmatprep.subr.mxu1 %v11818_v52  ;;  %v11846_v54 = vunpack.c.l.bf16 %v12198_v50  ;;  %v12206_v16 = vld [vmem:[%s15830_s10 + $0xa8] sm:$0xff]  }
 0xd3d   :  { %13334 = vmatpush3.msra.mxu1 %v11818_v52  ;;  %v11847_v52 = vunpack.c.h.bf16 %v12198_v50 }
 0xd3e   :  { %13335 = vmatprep.subr.mxu1 %v11815_v56 }
 0xd3f   :  { %7007 = vperm.xlu1 %13887, %v6989_v38   ;;  %13336 = vmatpush3.msra.mxu1 %v11815_v56  ;;  %v10697_v38 = vld [vmem:[%s15832_s9 + $0x20] sm:$0xff]  ;;  %v11842_v56 = vunpack.c.l.bf16 %v12197_v53 }
 0xd40   :  { %13337 = vmatprep.subr.mxu1 %v11814_v58 }
 0xd41   :  { %13338 = vmatpush3.msra.mxu1 %v11814_v58 }
 0xd42   :  { %13339 = vmatprep.subr.mxu1 %v11811_v62 }
 0xd43   :  { %8622 = vperm.xlu1 %13887, %v8614_v39   ;;  %13340 = vmatpush3.msra.mxu1 %v11811_v62  ;;  %v12204_v62 = vld [vmem:[%s15830_s10 + $0x98] sm:$0xff]  }
 0xd44   :  { %13341 = vmatprep.subr.mxu1 %v11810_v23 }
 0xd45   :  { %13342 = vmatpush3.msra.mxu1 %v11810_v23  ;;  %v11871_v23 = vunpack.c.h.bf16 %v12204_v62 }
 0xde6   :  { %v13281_v40 = vpop.f32.mrf.mxu1 }
 0xde7   :  { %v14846_v15 = vadd.f32 %v13281_v40, %v14796_v4  ;;  %v2070_v4 = vld [vmem:[%s15831_s1] sm:$0xff] }
 0xde8   :  { %v3487_v41 = vpop.f32.mrf.mxu1 }
 0xde9   :  { %v14849_v42 = vadd.f32 %v3487_v41, %v14798_v6 }
 0xdf6   :  { %v13300_v44 = vpop.f32.mrf.mxu1 }
 0xdf7   :  { %13301 = vmatprep.subr.mxu0 %v13300_v44 }
 0xdf8   :  { %v3581_v46 = vpop.f32.mrf.mxu1  ;;  %13302 = vmatpush3.msra.mxu0 %v13300_v44  ;;  %v12200_v44 = vld [vmem:[%s15830_s10 + $0x78] sm:$0xff]  }
 0xdf9   :  { %13303 = vmatprep.subr.mxu0 %v3581_v46  ;;  %v11854_v31 = vunpack.c.l.bf16 %v12200_v44 }
 0xdfa   :  { %13304 = vmatpush3.msra.mxu0 %v3581_v46  ;;  %v11855_v46 = vunpack.c.h.bf16 %v12200_v44 }
 0xdfb   :  { %13306 = vmatmul.mubr.msk.f32.vlgmr.msra.gmra.mxu0 %vm2267_vm2, %v10666_v34  ;;  %13308 = vmatprep.subr.mxu0 %v11807_v45 }
 0xdfc   :  { %13309 = vmatpush3.msra.mxu0 %v11807_v45 }
 0xdfd   :  { %13310 = vmatprep.subr.mxu0 %v11806_v47 }
 0xdfe   :  { %13311 = vmatpush3.msra.mxu0 %v11806_v47  ;;  %v10698_v47 = vld [vmem:[%s15832_s9 + $0x28] sm:$0xff] }
 0xdff   :  { %13312 = vmatprep.subr.mxu0 %v11803_v49 }
 0xe00   :  { %13313 = vmatpush3.msra.mxu0 %v11803_v49  ;;  %v11851_v49 = vunpack.c.h.bf16 %v12199_v48 }
 0xe01   :  { %13314 = vmatprep.subr.mxu0 %v11802_v51 }
 0xe02   :  { %13315 = vmatpush3.msra.mxu0 %v11802_v51  ;;  %v11850_v51 = vunpack.c.l.bf16 %v12199_v48 }
 0xe03   :  { %13316 = vmatprep.subr.mxu0 %v11799_v55 }
 0xe04   :  { %13317 = vmatpush3.msra.mxu0 %v11799_v55  ;;  %v11843_v55 = vunpack.c.h.bf16 %v12197_v53 }
 0xe05   :  { %13318 = vmatprep.subr.mxu0 %v11798_v57 }
 0xe06   :  { %13319 = vmatpush3.msra.mxu0 %v11798_v57  ;;  %v10711_v57 = vld [vmem:[%s15832_s9 + $0x30] sm:$0xff] }
 0xe07   :  { %13320 = vmatprep.subr.mxu0 %v11795_v61 }
 0xe08   :  { %13321 = vmatpush3.msra.mxu0 %v11795_v61 }
 0xe09   :  { %13322 = vmatprep.subr.mxu0 %v11794_v35 }
 0xe0a   :  { %13323 = vmatpush3.msra.mxu0 %v11794_v35 }
 0xebb   :  { %v13307_v17 = vpop.f32.mrf.mxu0 }
 0xebc   :  { %v3675_v18 = vadd.f32 %v13307_v17, %v14846_v15  ;;  %v10712_v17 = vld [vmem:[%s15832_s9 + $0x38] sm:$0xff] }
 0xebd   :  { %v3665_v0 = vpop.f32.mrf.mxu0 }
 0xebe   :  { %v3689_v2 = vadd.f32 %v3686_v63, %v3675_v18  ;;  %v3674_v3 = vadd.f32 %v3665_v0, %v14849_v42  ;;  %v12203_v18 = vld [vmem:[%s15830_s10 + $0x90] sm:$0xff]   ;;  %v11870_v63 = vunpack.c.l.bf16 %v12204_v62 }
 0xebf   :  { %v11867_v0 = vunpack.c.h.bf16 %v12203_v18 }
 0xec0   :  { %v3688_v5 = vadd.f32 %v3681_v20, %v3674_v3  ;;  %v3691_v6 = vadd.f32 %v3689_v2, %v2071_v1  ;;  %v12202_v1 = vld [vmem:[%s15830_s10 + $0x88] sm:$0xff]   ;;  %v11866_v2 = vunpack.c.l.bf16 %v12203_v18 }
 0xec1   :  { %v11863_v3 = vunpack.c.h.bf16 %v12202_v1 }
 0xec2   :  { %v3690_v7 = vadd.f32 %v3688_v5, %v2070_v4  ;;  %v14886_v9 = vmax.f32 %v3691_v6, 0.0  ;;  %v12201_v4 = vld [vmem:[%s15830_s10 + $0x80] sm:$0xff]   ;;  %v11862_v5 = vunpack.c.l.bf16 %v12202_v1 }
 0xec3   :  { %v11859_v6 = vunpack.c.h.bf16 %v12201_v4 }
 0xec4   :  { %v14884_v8 = vmax.f32 %v3690_v7, 0.0  ;;  %v11858_v7 = vunpack.c.l.bf16 %v12201_v4 }
 0xec6   :  { %13324 = vmatprep.mubr.msk.f32.mxu0 %vm2088_vm1, %v14884_v8  ;;  %13343 = vmatprep.mubr.msk.f32.mxu1 %vm2088_vm1, %v14884_v8 }
 0xec7   :  { %13325 = vmatmul.mubr.msk.f32.vlgmr.msra.gmra.mxu0 %vm2088_vm1, %v14886_v9  ;;  %13344 = vmatmul.mubr.msk.f32.vlgmr.msra.gmra.mxu1 %vm2088_vm1, %v14886_v9 }
 0xec8   :  { %13350 = vmatprep.mubr.msk.f32.mxu0 %vm2267_vm2, %v10681_v10  ;;  %13383 = vmatprep.mubr.msk.f32.mxu1 %vm2267_vm2, %v10697_v38  ;;  %v10725_v10 = vld [vmem:[%s15832_s9 + $0x40] sm:$0xff]  ;;  %v10739_v38 = vld [vmem:[%s15832_s9 + $0x50] sm:$0xff] }
 0xf87   :  { %v13345_v11 = vpop.f32.mrf.mxu1  ;;  %v13326_v13 = vpop.f32.mrf.mxu0 }
 0xf88   :  { %13346 = vmatprep.subr.mxu0 %v13345_v11 }
 0xf89   :  { %v3876_v14 = vpop.f32.mrf.mxu1  ;;  %13347 = vmatpush3.msra.mxu0 %v13345_v11  ;;  %v3782_v25 = vpop.f32.mrf.mxu0 }
 0xf8a   :  { %13348 = vmatprep.subr.mxu0 %v3876_v14 }
 0xf8b   :  { %13349 = vmatpush3.msra.mxu0 %v3876_v14 }
 0xf8c   :  { %13351 = vmatmul.mubr.msk.f32.vlgmr.msra.gmra.mxu0 %vm2267_vm2, %v10682_v21  ;;  %13353 = vmatprep.subr.mxu0 %v13326_v13 }
 0xf8d   :  { %13354 = vmatpush3.msra.mxu0 %v13326_v13  ;;  %13357 = vmatprep.mubr.msk.f32.mxu0 %vm2267_vm2, %v3791_v33 }
 0xf8e   :  { %13355 = vmatprep.subr.mxu0 %v3782_v25 }
 0xf8f   :  { %13356 = vmatpush3.msra.mxu0 %v3782_v25 }
 0xf90   :  { %13358 = vmatmul.mubr.msk.f32.vlgmr.msra.gmra.mxu0 %vm2267_vm2, %v3792_v28  ;;  %13360 = vmatprep.subr.mxu0 %v11839_v24  ;;  %v10726_v28 = vld [vmem:[%s15832_s9 + $0x48] sm:$0xff] }
 0xf91   :  { %13361 = vmatpush3.msra.mxu0 %v11839_v24  ;;  %13376 = vmatprep.mubr.msk.f32.mxu0 %vm2088_vm1, %v14884_v8  ;;  %v11887_v24 = vunpack.c.h.bf16 %v12208_v12 }
 0xf92   :  { %13362 = vmatprep.subr.mxu0 %v11838_v30 }
 0xf93   :  { %13363 = vmatpush3.msra.mxu0 %v11838_v30  ;;  %v11886_v30 = vunpack.c.l.bf16 %v12208_v12 }
 0xf94   :  { %13364 = vmatprep.subr.mxu0 %v11835_v19 }
 0xf95   :  { %13365 = vmatpush3.msra.mxu0 %v11835_v19  ;;  %v11883_v19 = vunpack.c.h.bf16 %v12207_v29 }
 0xf96   :  { %13366 = vmatprep.subr.mxu0 %v11834_v32 }
 0xf97   :  { %13367 = vmatpush3.msra.mxu0 %v11834_v32  ;;  %v11882_v32 = vunpack.c.l.bf16 %v12207_v29 }
 0xf98   :  { %13368 = vmatprep.subr.mxu0 %v11831_v27 }
 0xf99   :  { %13369 = vmatpush3.msra.mxu0 %v11831_v27  ;;  %v11879_v27 = vunpack.c.h.bf16 %v12206_v16 }
 0xf9a   :  { %13370 = vmatprep.subr.mxu0 %v11830_v22 }
 0xf9b   :  { %13371 = vmatpush3.msra.mxu0 %v11830_v22  ;;  %v11878_v22 = vunpack.c.l.bf16 %v12206_v16 }
 0xf9c   :  { %13372 = vmatprep.subr.mxu0 %v11827_v37 }
 0xf9d   :  { %13373 = vmatpush3.msra.mxu0 %v11827_v37  ;;  %v11875_v37 = vunpack.c.h.bf16 %v12205_v36 }
 0xf9e   :  { %13374 = vmatprep.subr.mxu0 %v11826_v26 }
 0xf9f   :  { %13375 = vmatpush3.msra.mxu0 %v11826_v26  ;;  %v11874_v26 = vunpack.c.l.bf16 %v12205_v36 }
 0xfa0   :  { %13377 = vmatmul.mubr.msk.f32.vlgmr.msra.gmra.mxu0 %vm2088_vm1, %v14886_v9 }
 0xfa1   :  { %13409 = vmatprep.mubr.msk.f32.mxu0 %vm2267_vm2, %v10711_v57 }
0x104c   :  { %v13352_v39 = vpop.f32.mrf.mxu0 }
0x104e   :  { %v3960_v40 = vpop.f32.mrf.mxu0 }
0x1050   :  { %v13359_v15 = vpop.f32.mrf.mxu0 }
0x1051   :  { %v4047_v41 = vadd.f32 %v13359_v15, %v13352_v39 }
0x1052   :  { %v4041_v42 = vpop.f32.mrf.mxu0 }
0x1053   :  { %v4042_v43 = vadd.f32 %v4041_v42, %v3960_v40  ;;  %v12212_v42 = vld [vmem:[%s15830_s10 + $0xd8] sm:$0xff]  }
0x1054   :  { %v11903_v44 = vunpack.c.h.bf16 %v12212_v42 }
0x1060   :  { %v13378_v45 = vpop.f32.mrf.mxu0 }
0x1061   :  { %13379 = vmatprep.subr.mxu1 %v13378_v45 }
0x1062   :  { %v4133_v34 = vpop.f32.mrf.mxu0  ;;  %13380 = vmatpush3.msra.mxu1 %v13378_v45 }
0x1063   :  { %13381 = vmatprep.subr.mxu1 %v4133_v34 }
0x1064   :  { %13382 = vmatpush3.msra.mxu1 %v4133_v34  ;;  %v12211_v34 = vld [vmem:[%s15830_s10 + $0xd0] sm:$0xff]  }
0x1065   :  { %13384 = vmatmul.mubr.msk.f32.vlgmr.msra.gmra.mxu1 %vm2267_vm2, %v10698_v47  ;;  %13386 = vmatprep.subr.mxu1 %v11855_v46  ;;  %v11902_v47 = vunpack.c.l.bf16 %v12212_v42  ;;  %v11899_v48 = vunpack.c.h.bf16 %v12211_v34 }
0x1066   :  { %13387 = vmatpush3.msra.mxu1 %v11855_v46  ;;  %13402 = vmatprep.mubr.msk.f32.mxu1 %vm2088_vm1, %v14884_v8  ;;  %v10740_v46 = vld [vmem:[%s15832_s9 + $0x58] sm:$0xff] }
0x1067   :  { %13388 = vmatprep.subr.mxu1 %v11854_v31 }
0x1068   :  { %13389 = vmatpush3.msra.mxu1 %v11854_v31  ;;  %v12210_v31 = vld [vmem:[%s15830_s10 + $0xc8] sm:$0xff]  }
0x1069   :  { %13390 = vmatprep.subr.mxu1 %v11851_v49  ;;  %v11895_v50 = vunpack.c.h.bf16 %v12210_v31 }
0x106a   :  { %13391 = vmatpush3.msra.mxu1 %v11851_v49  ;;  %v11898_v49 = vunpack.c.l.bf16 %v12211_v34 }
0x106b   :  { %13392 = vmatprep.subr.mxu1 %v11850_v51 }
0x106c   :  { %13393 = vmatpush3.msra.mxu1 %v11850_v51  ;;  %v12209_v51 = vld [vmem:[%s15830_s10 + $0xc0] sm:$0xff]  }
0x106d   :  { %13394 = vmatprep.subr.mxu1 %v11847_v52  ;;  %v11891_v53 = vunpack.c.h.bf16 %v12209_v51 }
0x106e   :  { %13395 = vmatpush3.msra.mxu1 %v11847_v52  ;;  %v11894_v52 = vunpack.c.l.bf16 %v12210_v31 }
0x106f   :  { %13396 = vmatprep.subr.mxu1 %v11846_v54 }
0x1070   :  { %13397 = vmatpush3.msra.mxu1 %v11846_v54  ;;  %v11890_v54 = vunpack.c.l.bf16 %v12209_v51 }
0x1071   :  { %13398 = vmatprep.subr.mxu1 %v11843_v55 }
0x1072   :  { %13399 = vmatpush3.msra.mxu1 %v11843_v55  ;;  %v10753_v55 = vld [vmem:[%s15832_s9 + $0x60] sm:$0xff] }
0x1073   :  { %13400 = vmatprep.subr.mxu1 %v11842_v56 }
0x1074   :  { %13401 = vmatpush3.msra.mxu1 %v11842_v56 }
0x1075   :  { %13403 = vmatmul.mubr.msk.f32.vlgmr.msra.gmra.mxu1 %vm2088_vm1, %v14886_v9 }
0x1076   :  { %13435 = vmatprep.mubr.msk.f32.mxu1 %vm2267_vm2, %v10725_v10 }
0x1125   :  { %v13385_v58 = vpop.f32.mrf.mxu1 }
0x1126   :  { %v4227_v59 = vadd.f32 %v13385_v58, %v4047_v41 }
0x1127   :  { %v4217_v60 = vpop.f32.mrf.mxu1 }
0x1128   :  { %v4226_v61 = vadd.f32 %v4217_v60, %v4042_v43  ;;  %v12216_v60 = vld [vmem:[%s15830_s10 + $0xf8] sm:$0xff]  }
0x1129   :  { %v11919_v62 = vunpack.c.h.bf16 %v12216_v60 }
0x1135   :  { %v13404_v35 = vpop.f32.mrf.mxu1 }
0x1136   :  { %13405 = vmatprep.subr.mxu0 %v13404_v35 }
0x1137   :  { %v4311_v20 = vpop.f32.mrf.mxu1  ;;  %13406 = vmatpush3.msra.mxu0 %v13404_v35 }
0x1138   :  { %13407 = vmatprep.subr.mxu0 %v4311_v20 }
0x1139   :  { %13408 = vmatpush3.msra.mxu0 %v4311_v20  ;;  %v12215_v20 = vld [vmem:[%s15830_s10 + $0xf0] sm:$0xff]  }
0x113a   :  { %13410 = vmatmul.mubr.msk.f32.vlgmr.msra.gmra.mxu0 %vm2267_vm2, %v10712_v17  ;;  %13412 = vmatprep.subr.mxu0 %v11871_v23  ;;  %v11918_v17 = vunpack.c.l.bf16 %v12216_v60  ;;  %v11915_v18 = vunpack.c.h.bf16 %v12215_v20  ;;  %v5403_v60 = vld [vmem:[%s15834_s12 + $0x10] sm:$0xff] }
0x113b   :  { %13413 = vmatpush3.msra.mxu0 %v11871_v23  ;;  %13428 = vmatprep.mubr.msk.f32.mxu0 %vm2088_vm1, %v14884_v8  ;;  %v10754_v23 = vld [vmem:[%s15832_s9 + $0x68] sm:$0xff] }
0x113c   :  { %13414 = vmatprep.subr.mxu0 %v11870_v63 }
0x113d   :  { %13415 = vmatpush3.msra.mxu0 %v11870_v63  ;;  %v12214_v63 = vld [vmem:[%s15830_s10 + $0xe8] sm:$0xff]  }
0x113e   :  { %13416 = vmatprep.subr.mxu0 %v11867_v0  ;;  %v11911_v1 = vunpack.c.h.bf16 %v12214_v63 }
0x113f   :  { %13417 = vmatpush3.msra.mxu0 %v11867_v0  ;;  %v11914_v0 = vunpack.c.l.bf16 %v12215_v20  ;;  %v5404_v20 = vld [vmem:[%s15834_s12 + $0x18] sm:$0xff] }
0x1140   :  { %13418 = vmatprep.subr.mxu0 %v11866_v2 }
0x1141   :  { %13419 = vmatpush3.msra.mxu0 %v11866_v2  ;;  %v12213_v2 = vld [vmem:[%s15830_s10 + $0xe0] sm:$0xff]  }
0x1142   :  { %13420 = vmatprep.subr.mxu0 %v11863_v3  ;;  %v11907_v4 = vunpack.c.h.bf16 %v12213_v2 }
0x1143   :  { %13421 = vmatpush3.msra.mxu0 %v11863_v3  ;;  %v11910_v3 = vunpack.c.l.bf16 %v12214_v63 }
0x1144   :  { %13422 = vmatprep.subr.mxu0 %v11862_v5 }
0x1145   :  { %13423 = vmatpush3.msra.mxu0 %v11862_v5  ;;  %v11906_v5 = vunpack.c.l.bf16 %v12213_v2 }
0x1146   :  { %13424 = vmatprep.subr.mxu0 %v11859_v6 }
0x1147   :  { %13425 = vmatpush3.msra.mxu0 %v11859_v6  ;;  %v10767_v6 = vld [vmem:[%s15832_s9 + $0x70] sm:$0xff] }
0x1148   :  { %13426 = vmatprep.subr.mxu0 %v11858_v7 }
0x1149   :  { %13427 = vmatpush3.msra.mxu0 %v11858_v7 }
0x114a   :  { %13429 = vmatmul.mubr.msk.f32.vlgmr.msra.gmra.mxu0 %vm2088_vm1, %v14886_v9 }
0x114b   :  { %13461 = vmatprep.mubr.msk.f32.mxu0 %vm2267_vm2, %v10739_v38 }
0x11fa   :  { %v13411_v11 = vpop.f32.mrf.mxu0 }
0x11fb   :  { %v4405_v13 = vadd.f32 %v13411_v11, %v4227_v59 }
0x11fc   :  { %v4395_v14 = vpop.f32.mrf.mxu0 }
0x11fd   :  { %v4404_v21 = vadd.f32 %v4395_v14, %v4226_v61  ;;  %v12220_v14 = vld [vmem:[%s15830_s10 + $0x118] sm:$0xff]  }
0x11fe   :  { %v11935_v12 = vunpack.c.h.bf16 %v12220_v14 }
0x120a   :  { %v13430_v33 = vpop.f32.mrf.mxu0 }
0x120b   :  { %13431 = vmatprep.subr.mxu1 %v13430_v33 }
0x120c   :  { %v4489_v25 = vpop.f32.mrf.mxu0  ;;  %13432 = vmatpush3.msra.mxu1 %v13430_v33 }
0x120d   :  { %13433 = vmatprep.subr.mxu1 %v4489_v25 }
0x120e   :  { %13434 = vmatpush3.msra.mxu1 %v4489_v25  ;;  %v12219_v25 = vld [vmem:[%s15830_s10 + $0x110] sm:$0xff]  }
0x120f   :  { %13436 = vmatmul.mubr.msk.f32.vlgmr.msra.gmra.mxu1 %vm2267_vm2, %v10726_v28  ;;  %13438 = vmatprep.subr.mxu1 %v11887_v24  ;;  %v11934_v28 = vunpack.c.l.bf16 %v12220_v14  ;;  %v11931_v29 = vunpack.c.h.bf16 %v12219_v25 }
0x1210   :  { %13439 = vmatpush3.msra.mxu1 %v11887_v24  ;;  %13454 = vmatprep.mubr.msk.f32.mxu1 %vm2088_vm1, %v14884_v8  ;;  %v10768_v24 = vld [vmem:[%s15832_s9 + $0x78] sm:$0xff] }
0x1211   :  { %13440 = vmatprep.subr.mxu1 %v11886_v30 }
0x1212   :  { %13441 = vmatpush3.msra.mxu1 %v11886_v30  ;;  %v12218_v30 = vld [vmem:[%s15830_s10 + $0x108] sm:$0xff]  }
0x1213   :  { %13442 = vmatprep.subr.mxu1 %v11883_v19  ;;  %v11927_v16 = vunpack.c.h.bf16 %v12218_v30 }
0x1214   :  { %13443 = vmatpush3.msra.mxu1 %v11883_v19  ;;  %v11930_v19 = vunpack.c.l.bf16 %v12219_v25 }
0x1215   :  { %13444 = vmatprep.subr.mxu1 %v11882_v32 }
0x1216   :  { %13445 = vmatpush3.msra.mxu1 %v11882_v32  ;;  %v12217_v32 = vld [vmem:[%s15830_s10 + $0x100] sm:$0xff]  }
0x1217   :  { %13446 = vmatprep.subr.mxu1 %v11879_v27  ;;  %v11923_v36 = vunpack.c.h.bf16 %v12217_v32 }
0x1218   :  { %13447 = vmatpush3.msra.mxu1 %v11879_v27  ;;  %v11926_v27 = vunpack.c.l.bf16 %v12218_v30  ;;  %v10808_v30 = vld [vmem:[%s15834_s12 + $0x48] sm:$0xff] }
0x1219   :  { %13448 = vmatprep.subr.mxu1 %v11878_v22 }
0x121a   :  { %13449 = vmatpush3.msra.mxu1 %v11878_v22  ;;  %v10781_v22 = vld [vmem:[%s15832_s9 + $0x80] sm:$0xff] }
0x121b   :  { %13450 = vmatprep.subr.mxu1 %v11875_v37 }
0x121c   :  { %13451 = vmatpush3.msra.mxu1 %v11875_v37 }
0x121d   :  { %13452 = vmatprep.subr.mxu1 %v11874_v26 }
0x121e   :  { %13453 = vmatpush3.msra.mxu1 %v11874_v26 }
0x121f   :  { %13455 = vmatmul.mubr.msk.f32.vlgmr.msra.gmra.mxu1 %vm2088_vm1, %v14886_v9 }
0x1220   :  { %13487 = vmatprep.mubr.msk.f32.mxu1 %vm2267_vm2, %v10753_v55  ;;  %v10791_v55 = vld [vmem:[%s15834_s12 + $0x20] sm:$0xff] }
0x12cf   :  { %v13437_v39 = vpop.f32.mrf.mxu1 }
0x12d0   :  { %v4583_v40 = vadd.f32 %v13437_v39, %v4405_v13 }
0x12d1   :  { %v4573_v15 = vpop.f32.mrf.mxu1 }
0x12d2   :  { %v4582_v41 = vadd.f32 %v4573_v15, %v4404_v21 }
0x12df   :  { %v13456_v43 = vpop.f32.mrf.mxu1 }
0x12e0   :  { %13457 = vmatprep.subr.mxu0 %v13456_v43 }
0x12e1   :  { %v4667_v45 = vpop.f32.mrf.mxu1  ;;  %13458 = vmatpush3.msra.mxu0 %v13456_v43 }
0x12e2   :  { %13459 = vmatprep.subr.mxu0 %v4667_v45 }
0x12e3   :  { %13460 = vmatpush3.msra.mxu0 %v4667_v45 }
0x12e4   :  { %13462 = vmatmul.mubr.msk.f32.vlgmr.msra.gmra.mxu0 %vm2267_vm2, %v10740_v46  ;;  %13464 = vmatprep.subr.mxu0 %v11903_v44 }
0x12e5   :  { %13465 = vmatpush3.msra.mxu0 %v11903_v44  ;;  %13480 = vmatprep.mubr.msk.f32.mxu0 %vm2088_vm1, %v14884_v8  ;;  %v12221_v44 = vld [vmem:[%s15833_s13 + $0x8] sm:$0xff]  }
0x12e6   :  { %13466 = vmatprep.subr.mxu0 %v11902_v47  ;;  %v11943_v45 = vunpack.c.h.bf16 %v12221_v44 }
0x12e7   :  { %13467 = vmatpush3.msra.mxu0 %v11902_v47 }
0x12e8   :  { %13468 = vmatprep.subr.mxu0 %v11899_v48 }
0x12e9   :  { %13469 = vmatpush3.msra.mxu0 %v11899_v48  ;;  %v5306_v48 = vpop.permute.xlu1 %5305 }
0x12ea   :  { %13470 = vmatprep.subr.mxu0 %v11898_v49 }
0x12eb   :  { %13471 = vmatpush3.msra.mxu0 %v11898_v49  ;;  %v5301_v49 = vpop.permute.xlu0 %5300 }
0x12ec   :  { %13472 = vmatprep.subr.mxu0 %v11895_v50 }
0x12ed   :  { %13473 = vmatpush3.msra.mxu0 %v11895_v50 }
0x12ee   :  { %13474 = vmatprep.subr.mxu0 %v11894_v52 }
0x12ef   :  { %13475 = vmatpush3.msra.mxu0 %v11894_v52 }
0x12f0   :  { %13476 = vmatprep.subr.mxu0 %v11891_v53 }
0x12f1   :  { %13477 = vmatpush3.msra.mxu0 %v11891_v53 }
0x12f2   :  { %13478 = vmatprep.subr.mxu0 %v11890_v54 }
0x12f3   :  { %13479 = vmatpush3.msra.mxu0 %v11890_v54  ;;  %v11942_v54 = vunpack.c.l.bf16 %v12221_v44 }
0x12f4   :  { %13481 = vmatmul.mubr.msk.f32.vlgmr.msra.gmra.mxu0 %vm2088_vm1, %v14886_v9 }
0x12f5   :  { %13513 = vmatprep.mubr.msk.f32.mxu0 %vm2267_vm2, %v10767_v6 }
0x13a4   :  { %v13463_v56 = vpop.f32.mrf.mxu0 }
0x13a5   :  { %v4761_v57 = vadd.f32 %v13463_v56, %v4583_v40  ;;  %v5401_v56 = vld [vmem:[%s15834_s12] sm:$0xff] }
0x13a6   :  { %v4751_v58 = vpop.f32.mrf.mxu0 }
0x13a7   :  { %v4760_v59 = vadd.f32 %v4751_v58, %v4582_v41  ;;  %v10782_v41 = vld [vmem:[%s15832_s9 + $0x88] sm:$0xff] }
0x13b4   :  { %v13482_v61 = vpop.f32.mrf.mxu0 }
0x13b5   :  { %13483 = vmatprep.subr.mxu1 %v13482_v61 }
0x13b6   :  { %v4845_v35 = vpop.f32.mrf.mxu0  ;;  %13484 = vmatpush3.msra.mxu1 %v13482_v61  ;;  %v12222_v61 = vld [vmem:[%s15833_s13 + $0x10] sm:$0xff]  }
0x13b7   :  { %13485 = vmatprep.subr.mxu1 %v4845_v35  ;;  %v11946_v63 = vunpack.c.l.bf16 %v12222_v61 }
0x13b8   :  { %13486 = vmatpush3.msra.mxu1 %v4845_v35 }
0x13b9   :  { %13488 = vmatmul.mubr.msk.f32.vlgmr.msra.gmra.mxu1 %vm2267_vm2, %v10754_v23  ;;  %13490 = vmatprep.subr.mxu1 %v11919_v62  ;;  %v10792_v23 = vld [vmem:[%s15834_s12 + $0x28] sm:$0xff] }
0x13ba   :  { %13491 = vmatpush3.msra.mxu1 %v11919_v62  ;;  %13506 = vmatprep.mubr.msk.f32.mxu1 %vm2088_vm1, %v14884_v8 }
0x13bb   :  { %13492 = vmatprep.subr.mxu1 %v11918_v17 }
0x13bc   :  { %13493 = vmatpush3.msra.mxu1 %v11918_v17  ;;  %v11947_v17 = vunpack.c.h.bf16 %v12222_v61  ;;  %v10832_v61 = vld [vmem:[%s15834_s12 + $0x88] sm:$0xff] }
0x13bd   :  { %13494 = vmatprep.subr.mxu1 %v11915_v18 }
0x13be   :  { %13495 = vmatpush3.msra.mxu1 %v11915_v18  ;;  %v10793_v18 = vld [vmem:[%s15834_s12 + $0x30] sm:$0xff] }
0x13bf   :  { %13496 = vmatprep.subr.mxu1 %v11914_v0 }
0x13c0   :  { %13497 = vmatpush3.msra.mxu1 %v11914_v0  ;;  %v12223_v0 = vld [vmem:[%s15833_s13 + $0x18] sm:$0xff]  }
0x13c1   :  { %13498 = vmatprep.subr.mxu1 %v11911_v1  ;;  %v11951_v2 = vunpack.c.h.bf16 %v12223_v0 }
0x13c2   :  { %13499 = vmatpush3.msra.mxu1 %v11911_v1  ;;  %v10794_v1 = vld [vmem:[%s15834_s12 + $0x38] sm:$0xff] }
0x13c3   :  { %13500 = vmatprep.subr.mxu1 %v11910_v3 }
0x13c4   :  { %13501 = vmatpush3.msra.mxu1 %v11910_v3  ;;  %v11950_v3 = vunpack.c.l.bf16 %v12223_v0  ;;  %v10844_v0 = vld [vmem:[%s15834_s12 + $0xa8] sm:$0xff] }
0x13c5   :  { %13502 = vmatprep.subr.mxu1 %v11907_v4 }
0x13c6   :  { %13503 = vmatpush3.msra.mxu1 %v11907_v4  ;;  %v10807_v4 = vld [vmem:[%s15834_s12 + $0x40] sm:$0xff] }
0x13c7   :  { %13504 = vmatprep.subr.mxu1 %v11906_v5 }
0x13c8   :  { %13505 = vmatpush3.msra.mxu1 %v11906_v5  ;;  %v10819_v5 = vld [vmem:[%s15834_s12 + $0x60] sm:$0xff] }
0x13c9   :  { %13507 = vmatmul.mubr.msk.f32.vlgmr.msra.gmra.mxu1 %vm2088_vm1, %v14886_v9 }
0x13ca   :  { %13539 = vmatprep.mubr.msk.f32.mxu1 %vm2267_vm2, %v10781_v22  ;;  %v10820_v22 = vld [vmem:[%s15834_s12 + $0x68] sm:$0xff] }
0x1479   :  { %v13489_v7 = vpop.f32.mrf.mxu1 }
0x147a   :  { %v4939_v10 = vadd.f32 %v13489_v7, %v4761_v57 }
0x147b   :  { %v4929_v11 = vpop.f32.mrf.mxu1 }
0x147c   :  { %v4938_v13 = vadd.f32 %v4929_v11, %v4760_v59  ;;  %v5402_v59 = vld [vmem:[%s15834_s12 + $0x8] sm:$0xff] }
0x1489   :  { %v13508_v21 = vpop.f32.mrf.mxu1 }
0x148a   :  { %13509 = vmatprep.subr.mxu0 %v13508_v21 }
0x148b   :  { %v5023_v33 = vpop.f32.mrf.mxu1  ;;  %13510 = vmatpush3.msra.mxu0 %v13508_v21 }
0x148c   :  { %13511 = vmatprep.subr.mxu0 %v5023_v33 }
0x148d   :  { %13512 = vmatpush3.msra.mxu0 %v5023_v33 }
0x148e   :  { %13514 = vmatmul.mubr.msk.f32.vlgmr.msra.gmra.mxu0 %vm2267_vm2, %v10768_v24  ;;  %13516 = vmatprep.subr.mxu0 %v11935_v12 }
0x148f   :  { %13517 = vmatpush3.msra.mxu0 %v11935_v12  ;;  %13532 = vmatprep.mubr.msk.f32.mxu0 %vm2088_vm1, %v14884_v8  ;;  %v11922_v8 = vunpack.c.l.bf16 %v12217_v32 }
0x1490   :  { %13518 = vmatprep.subr.mxu0 %v11934_v28 }
0x1491   :  { %13519 = vmatpush3.msra.mxu0 %v11934_v28  ;;  %v12224_v28 = vld [vmem:[%s15833_s13 + $0x20] sm:$0xff]  }
0x1492   :  { %13520 = vmatprep.subr.mxu0 %v11931_v29 }
0x1493   :  { %13521 = vmatpush3.msra.mxu0 %v11931_v29 }
0x1494   :  { %13522 = vmatprep.subr.mxu0 %v11930_v19 }
0x1495   :  { %13523 = vmatpush3.msra.mxu0 %v11930_v19  ;;  %v10809_v19 = vld [vmem:[%s15834_s12 + $0x50] sm:$0xff] }
0x1496   :  { %13524 = vmatprep.subr.mxu0 %v11927_v16 }
0x1497   :  { %13525 = vmatpush3.msra.mxu0 %v11927_v16  ;;  %v11955_v16 = vunpack.c.h.bf16 %v12224_v28 }
0x1498   :  { %13526 = vmatprep.subr.mxu0 %v11926_v27 }
0x1499   :  { %13527 = vmatpush3.msra.mxu0 %v11926_v27  ;;  %v12225_v27 = vld [vmem:[%s15833_s13 + $0x28] sm:$0xff]  }
0x149a   :  { %13528 = vmatprep.subr.mxu0 %v11923_v36 }
0x149b   :  { %13529 = vmatpush3.msra.mxu0 %v11923_v36 }
0x149c   :  { %13530 = vmatprep.subr.mxu0 %v11922_v8 }
0x149d   :  { %13531 = vmatpush3.msra.mxu0 %v11922_v8  ;;  %v10810_v8 = vld [vmem:[%s15834_s12 + $0x58] sm:$0xff] }
0x149e   :  { %13533 = vmatmul.mubr.msk.f32.vlgmr.msra.gmra.mxu0 %vm2088_vm1, %v14886_v9  ;;  %v11937_v9 = vld [vmem:[%s15833_s13] sm:$0xff]  }
0x149f   :  { %v11939_v42 = vunpack.c.h.bf16 %v11937_v9  ;;  %v11938_v43 = vunpack.c.l.bf16 %v11937_v9  ;;  %13570 = vmatprep.mubr.msk.f32.mxu0 %vm2267_vm2, %v5401_v56 }
0x154e   :  { %v13515_v37 = vpop.f32.mrf.mxu0 }
0x154f   :  { %v5117_v26 = vadd.f32 %v13515_v37, %v4939_v10  ;;  %v11954_v37 = vunpack.c.l.bf16 %v12224_v28 }
0x1550   :  { %v5107_v38 = vpop.f32.mrf.mxu0 }
0x1551   :  { %v5116_v39 = vadd.f32 %v5107_v38, %v4938_v13  ;;  %v11959_v38 = vunpack.c.h.bf16 %v12225_v27 }
0x155e   :  { %v13534_v40 = vpop.f32.mrf.mxu0 }
0x155f   :  { %13535 = vmatprep.subr.mxu1 %v13534_v40 }
0x1560   :  { %v5201_v15 = vpop.f32.mrf.mxu0  ;;  %13536 = vmatpush3.msra.mxu1 %v13534_v40  ;;  %v11958_v40 = vunpack.c.l.bf16 %v12225_v27 }
0x1561   :  { %13537 = vmatprep.subr.mxu1 %v5201_v15 }
0x1562   :  { %13538 = vmatpush3.msra.mxu1 %v5201_v15  ;;  %v10831_v15 = vld [vmem:[%s15834_s12 + $0x80] sm:$0xff] }
0x1563   :  { %13540 = vmatmul.mubr.msk.f32.vlgmr.msra.gmra.mxu1 %vm2267_vm2, %v10782_v41  ;;  %13542 = vmatprep.subr.mxu1 %v11939_v42  ;;  %v10843_v41 = vld [vmem:[%s15834_s12 + $0xa0] sm:$0xff] }
0x1564   :  { %13543 = vmatpush3.msra.mxu1 %v11939_v42 }
0x1565   :  { %13544 = vmatprep.subr.mxu1 %v11938_v43 }
0x1566   :  { %13545 = vmatpush3.msra.mxu1 %v11938_v43 }
0x1567   :  { %13549 = vmatprep.subr.mxu1 %v11943_v45 }
0x1623   :  { %v13541_v46 = vpop.f32.mrf.mxu1 }
0x1624   :  { %v5295_v34 = vadd.f32 %v13541_v46, %v5117_v26  ;;  %v10821_v26 = vld [vmem:[%s15834_s12 + $0x70] sm:$0xff] }
0x1625   :  { %v5285_v47 = vpop.f32.mrf.mxu1 }
0x1626   :  { %v5294_v31 = vadd.f32 %v5285_v47, %v5116_v39  ;;  %v5309_v50 = vadd.f32 %v5306_v48, %v5295_v34  ;;  %v10822_v39 = vld [vmem:[%s15834_s12 + $0x78] sm:$0xff] }
0x1628   :  { %v5308_v51 = vadd.f32 %v5301_v49, %v5294_v31  ;;  %v15088_v53 = vmax.f32 %v5309_v50, 0.0 }
0x162a   :  { %v15086_v52 = vmax.f32 %v5308_v51, 0.0 }
0x162c   :  { %13546 = vmatprep.mubr.msk.f32.mxu1 %vm2267_vm2, %v15086_v52 }
0x162d   :  { %13547 = vmatmul.mubr.msk.f32.vlgmr.msra.gmra.mxu1 %vm2267_vm2, %v15088_v53 }
0x162e   :  { %13550 = vmatpush3.msra.mxu1 %v11943_v45  ;;  %13553 = vmatprep.mubr.msk.f32.mxu1 %vm2267_vm2, %v15086_v52 }
0x162f   :  { %13551 = vmatprep.subr.mxu1 %v11942_v54 }
0x1630   :  { %13552 = vmatpush3.msra.mxu1 %v11942_v54 }
0x1631   :  { %13554 = vmatmul.mubr.msk.f32.vlgmr.msra.gmra.mxu1 %vm2267_vm2, %v15088_v53 }
0x1632   :  { %13560 = vmatprep.mubr.msk.f32.mxu1 %vm2267_vm2, %v10791_v55 }
0x16ed   :  { %v13548_v57 = vpop.f32.mrf.mxu1 }
0x16ee   :  { %13566 = vmatprep.subr.mxu0 %v13548_v57 }
0x16ef   :  { %v5392_v58 = vpop.f32.mrf.mxu1  ;;  %13567 = vmatpush3.msra.mxu0 %v13548_v57  ;;  %v12226_v57 = vld [vmem:[%s15833_s13 + $0x30] sm:$0xff]  }
0x16f0   :  { %13568 = vmatprep.subr.mxu0 %v5392_v58 }
0x16f1   :  { %v13555_v62 = vpop.f32.mrf.mxu1  ;;  %13569 = vmatpush3.msra.mxu0 %v5392_v58 }
0x16f2   :  { %13556 = vmatprep.subr.mxu1 %v13555_v62  ;;  %13571 = vmatmul.mubr.msk.f32.vlgmr.msra.gmra.mxu0 %vm2267_vm2, %v5402_v59 }
0x16f3   :  { %v5476_v35 = vpop.f32.mrf.mxu1  ;;  %13557 = vmatpush3.msra.mxu1 %v13555_v62  ;;  %13573 = vmatprep.mubr.msk.f32.mxu0 %vm2267_vm2, %v5403_v60 }
0x16f4   :  { %13558 = vmatprep.subr.mxu1 %v5476_v35 }
0x16f5   :  { %13559 = vmatpush3.msra.mxu1 %v5476_v35  ;;  %v10833_v35 = vld [vmem:[%s15834_s12 + $0x90] sm:$0xff] }
0x16f6   :  { %13561 = vmatmul.mubr.msk.f32.vlgmr.msra.gmra.mxu1 %vm2267_vm2, %v10792_v23  ;;  %13574 = vmatmul.mubr.msk.f32.gmra.mxu0 %vm2267_vm2, %v5404_v20  ;;  %v11963_v23 = vunpack.c.h.bf16 %v12226_v57 }
0x16f7   :  { %13563 = vmatprep.mubr.msk.f32.mxu1 %vm2267_vm2, %v10793_v18  ;;  %13576 = vmatprep.subr.mxu1 %v11947_v17 }
0x16f8   :  { %13577 = vmatpush3.msra.mxu1 %v11947_v17  ;;  %13587 = vmatprep.mubr.msk.f32.mxu0 %vm2267_vm2, %v10807_v4  ;;  %v12227_v17 = vld [vmem:[%s15833_s13 + $0x38] sm:$0xff]  }
0x16f9   :  { %13578 = vmatprep.subr.mxu1 %v11946_v63  ;;  %v10846_v4 = vld [vmem:[%s15834_s12 + $0xb8] sm:$0xff] }
0x16fa   :  { %13564 = vmatmul.mubr.msk.f32.gmra.mxu1 %vm2267_vm2, %v10794_v1  ;;  %v11962_v1 = vunpack.c.l.bf16 %v12226_v57  ;;  %v12229_v57 = vld [vmem:[%s15835_s16 + $0x8] sm:$0xff]  }
0x16fb   :  { %13580 = vmatprep.mubr.msk.f32.mxu1 %vm2267_vm2, %v15086_v52  ;;  %13579 = vmatpush3.msra.mxu1 %v11946_v63  ;;  %v10834_v63 = vld [vmem:[%s15834_s12 + $0x98] sm:$0xff] }
0x16fc   :  { %13593 = vmatprep.subr.mxu1 %v11951_v2 }
0x16fe   :  { %13581 = vmatmul.mubr.msk.f32.vlgmr.msra.gmra.mxu1 %vm2267_vm2, %v15088_v53 }
0x16ff   :  { %13594 = vmatpush3.msra.mxu1 %v11951_v2  ;;  %13597 = vmatprep.mubr.msk.f32.mxu1 %vm2267_vm2, %v15086_v52  ;;  %v10845_v2 = vld [vmem:[%s15834_s12 + $0xb0] sm:$0xff] }
0x1700   :  { %13595 = vmatprep.subr.mxu1 %v11950_v3 }
0x1701   :  { %13596 = vmatpush3.msra.mxu1 %v11950_v3  ;;  %v11967_v3 = vunpack.c.h.bf16 %v12227_v17 }
0x1702   :  { %13598 = vmatmul.mubr.msk.f32.vlgmr.msra.gmra.mxu1 %vm2267_vm2, %v15088_v53 }
0x1703   :  { %13604 = vmatprep.mubr.msk.f32.mxu1 %vm2267_vm2, %v10819_v5  ;;  %v11966_v5 = vunpack.c.l.bf16 %v12227_v17  ;;  %v6998_v17 = vpop.permute.xlu1 %6997 }
0x17b2   :  { %v13572_v6 = vpop.f32.mrf.mxu0 }
0x17b4   :  { %v5665_v7 = vpop.f32.mrf.mxu0 }
0x17b6   :  { %v13562_v10 = vpop.f32.mrf.mxu1  ;;  %v13575_v14 = vpop.f32.mrf.mxu0 }
0x17b7   :  { %v5671_v11 = vadd.f32 %v13572_v6, %v13562_v10  ;;  %v10855_v6 = vld [vmem:[%s15834_s12 + $0xc0] sm:$0xff] }
0x17b8   :  { %v5568_v13 = vpop.f32.mrf.mxu1  ;;  %v5675_v9 = vpop.f32.mrf.mxu0 }
0x17b9   :  { %v5666_v21 = vadd.f32 %v5665_v7, %v5568_v13  ;;  %v10867_v7 = vld [vmem:[%s15834_s12 + $0xe0] sm:$0xff] }
0x17ba   :  { %v13565_v12 = vpop.f32.mrf.mxu1 }
0x17bb   :  { %v5681_v33 = vadd.f32 %v13575_v14, %v13565_v12 }
0x17bc   :  { %v5578_v24 = vpop.f32.mrf.mxu1 }
0x17bd   :  { %v5676_v47 = vadd.f32 %v5675_v9, %v5578_v24 }
0x17be   :  { %v13582_v25 = vpop.f32.mrf.mxu1 }
0x17bf   :  { %13583 = vmatprep.subr.mxu0 %v13582_v25 }
0x17c0   :  { %v5755_v29 = vpop.f32.mrf.mxu1  ;;  %13584 = vmatpush3.msra.mxu0 %v13582_v25 }
0x17c1   :  { %13585 = vmatprep.subr.mxu0 %v5755_v29 }
0x17c2   :  { %13586 = vmatpush3.msra.mxu0 %v5755_v29  ;;  %v13599_v32 = vpop.f32.mrf.mxu1 }
0x17c3   :  { %13588 = vmatmul.mubr.msk.f32.vlgmr.msra.gmra.mxu0 %vm2267_vm2, %v10808_v30  ;;  %13600 = vmatprep.subr.mxu1 %v13599_v32 }
0x17c4   :  { %v5941_v36 = vpop.f32.mrf.mxu1  ;;  %13601 = vmatpush3.msra.mxu1 %v13599_v32  ;;  %13590 = vmatprep.mubr.msk.f32.mxu0 %vm2267_vm2, %v10809_v19  ;;  %v12228_v32 = vld [vmem:[%s15833_s13 + $0x40] sm:$0xff]  }
0x17c5   :  { %13602 = vmatprep.subr.mxu1 %v5941_v36  ;;  %13610 = vmatprep.subr.mxu0 %v11955_v16  ;;  %v11970_v9 = vunpack.c.l.bf16 %v12228_v32 }
0x17c6   :  { %13603 = vmatpush3.msra.mxu1 %v5941_v36  ;;  %13611 = vmatpush3.msra.mxu0 %v11955_v16 }
0x17c7   :  { %13591 = vmatmul.mubr.msk.f32.gmra.mxu0 %vm2267_vm2, %v10810_v8  ;;  %13605 = vmatmul.mubr.msk.f32.vlgmr.msra.gmra.mxu1 %vm2267_vm2, %v10820_v22  ;;  %v10856_v22 = vld [vmem:[%s15834_s12 + $0xc8] sm:$0xff] }
0x17c8   :  { %13614 = vmatprep.mubr.msk.f32.mxu0 %vm2267_vm2, %v15086_v52  ;;  %13612 = vmatprep.subr.mxu0 %v11954_v37 }
0x17c9   :  { %13607 = vmatprep.mubr.msk.f32.mxu1 %vm2267_vm2, %v10821_v26  ;;  %13613 = vmatpush3.msra.mxu0 %v11954_v37  ;;  %v10857_v26 = vld [vmem:[%s15834_s12 + $0xd0] sm:$0xff] }
0x17ca   :  { %13627 = vmatprep.subr.mxu1 %v11959_v38 }
0x17cb   :  { %13608 = vmatmul.mubr.msk.f32.gmra.mxu1 %vm2267_vm2, %v10822_v39  ;;  %13615 = vmatmul.mubr.msk.f32.vlgmr.msra.gmra.mxu0 %vm2267_vm2, %v15088_v53 }
0x17cc   :  { %13628 = vmatpush3.msra.mxu1 %v11959_v38  ;;  %13631 = vmatprep.mubr.msk.f32.mxu1 %vm2267_vm2, %v15086_v52  ;;  %v11971_v38 = vunpack.c.h.bf16 %v12228_v32 }
0x17cd   :  { %13629 = vmatprep.subr.mxu1 %v11958_v40  ;;  %13621 = vmatprep.mubr.msk.f32.mxu0 %vm2267_vm2, %v10831_v15  ;;  %v10858_v15 = vld [vmem:[%s15834_s12 + $0xd8] sm:$0xff] }
0x17ce   :  { %13630 = vmatpush3.msra.mxu1 %v11958_v40 }
0x17cf   :  { %13632 = vmatmul.mubr.msk.f32.vlgmr.msra.gmra.mxu1 %vm2267_vm2, %v15088_v53 }
0x17d0   :  { %13638 = vmatprep.mubr.msk.f32.mxu1 %vm2267_vm2, %v10843_v41  ;;  %v10868_v41 = vld [vmem:[%s15834_s12 + $0xe8] sm:$0xff] }
0x1883   :  { %v13589_v42 = vpop.f32.mrf.mxu0 }
0x1884   :  { %v5867_v43 = vadd.f32 %v13589_v42, %v5671_v11  ;;  %v10869_v42 = vld [vmem:[%s15834_s12 + $0xf0] sm:$0xff] }
0x1885   :  { %v5847_v44 = vpop.f32.mrf.mxu0 }
0x1886   :  { %v5866_v45 = vadd.f32 %v5847_v44, %v5666_v21  ;;  %v10879_v44 = vld [vmem:[%s15834_s12 + $0x100] sm:$0xff] }
0x1887   :  { %v13592_v46 = vpop.f32.mrf.mxu0  ;;  %v13606_v34 = vpop.f32.mrf.mxu1 }
0x1888   :  { %v5869_v48 = vadd.f32 %v13592_v46, %v5681_v33  ;;  %v6053_v31 = vadd.f32 %v13606_v34, %v5867_v43  ;;  %v10870_v43 = vld [vmem:[%s15834_s12 + $0xf8] sm:$0xff] }
0x1889   :  { %v5857_v49 = vpop.f32.mrf.mxu0  ;;  %v6033_v50 = vpop.f32.mrf.mxu1 }
0x188a   :  { %v5868_v51 = vadd.f32 %v5857_v49, %v5676_v47  ;;  %v6052_v54 = vadd.f32 %v6033_v50, %v5866_v45 }
0x188b   :  { %v13609_v55 = vpop.f32.mrf.mxu1  ;;  %v13616_v56 = vpop.f32.mrf.mxu0 }
0x188c   :  { %v6055_v58 = vadd.f32 %v13609_v55, %v5869_v48  ;;  %13617 = vmatprep.subr.mxu0 %v13616_v56  ;;  %v10882_v55 = vld [vmem:[%s15834_s12 + $0x118] sm:$0xff] }
0x188d   :  { %v6043_v59 = vpop.f32.mrf.mxu1  ;;  %v6127_v60 = vpop.f32.mrf.mxu0  ;;  %13618 = vmatpush3.msra.mxu0 %v13616_v56  ;;  %v11973_v56 = vld [vmem:[%s15835_s16] sm:$0xff]  }
0x188e   :  { %v6054_v62 = vadd.f32 %v6043_v59, %v5868_v51  ;;  %13619 = vmatprep.subr.mxu0 %v6127_v60  ;;  %v11979_v59 = vunpack.c.h.bf16 %v12229_v57 }
0x188f   :  { %13620 = vmatpush3.msra.mxu0 %v6127_v60  ;;  %v13633_v20 = vpop.f32.mrf.mxu1  ;;  %v11974_v60 = vunpack.c.l.bf16 %v11973_v56 }
0x1890   :  { %13622 = vmatmul.mubr.msk.f32.vlgmr.msra.gmra.mxu0 %vm2267_vm2, %v10832_v61  ;;  %13634 = vmatprep.subr.mxu1 %v13633_v20  ;;  %v11978_v61 = vunpack.c.l.bf16 %v12229_v57 }
0x1891   :  { %v6313_v18 = vpop.f32.mrf.mxu1  ;;  %13635 = vmatpush3.msra.mxu1 %v13633_v20  ;;  %13624 = vmatprep.mubr.msk.f32.mxu0 %vm2267_vm2, %v10833_v35 }
0x1892   :  { %13636 = vmatprep.subr.mxu1 %v6313_v18  ;;  %13644 = vmatprep.subr.mxu0 %v11963_v23 }
0x1893   :  { %13637 = vmatpush3.msra.mxu1 %v6313_v18  ;;  %13645 = vmatpush3.msra.mxu0 %v11963_v23 }
0x1894   :  { %13625 = vmatmul.mubr.msk.f32.gmra.mxu0 %vm2267_vm2, %v10834_v63  ;;  %13639 = vmatmul.mubr.msk.f32.vlgmr.msra.gmra.mxu1 %vm2267_vm2, %v10844_v0  ;;  %v6993_v63 = vpop.permute.xlu0 %6992 }
0x1895   :  { %13648 = vmatprep.mubr.msk.f32.mxu0 %vm2267_vm2, %v15086_v52  ;;  %13646 = vmatprep.subr.mxu0 %v11962_v1 }
0x1896   :  { %13641 = vmatprep.mubr.msk.f32.mxu1 %vm2267_vm2, %v10845_v2  ;;  %13647 = vmatpush3.msra.mxu0 %v11962_v1 }
0x1897   :  { %13661 = vmatprep.subr.mxu1 %v11967_v3 }
0x1898   :  { %13642 = vmatmul.mubr.msk.f32.gmra.mxu1 %vm2267_vm2, %v10846_v4  ;;  %13649 = vmatmul.mubr.msk.f32.vlgmr.msra.gmra.mxu0 %vm2267_vm2, %v15088_v53 }
0x1899   :  { %13662 = vmatpush3.msra.mxu1 %v11967_v3  ;;  %13665 = vmatprep.mubr.msk.f32.mxu1 %vm2267_vm2, %v15086_v52 }
0x189a   :  { %13663 = vmatprep.subr.mxu1 %v11966_v5  ;;  %13655 = vmatprep.mubr.msk.f32.mxu0 %vm2267_vm2, %v10855_v6 }
0x189b   :  { %13664 = vmatpush3.msra.mxu1 %v11966_v5  ;;  %v5313_v5 = vld [vmem:[%s15836_s2 + $0x8] sm:$0xff] }
0x189c   :  { %13666 = vmatmul.mubr.msk.f32.vlgmr.msra.gmra.mxu1 %vm2267_vm2, %v15088_v53 }
0x189d   :  { %13672 = vmatprep.mubr.msk.f32.mxu1 %vm2267_vm2, %v10867_v7 }
0x1950   :  { %v13623_v10 = vpop.f32.mrf.mxu0 }
0x1951   :  { %v6239_v11 = vadd.f32 %v13623_v10, %v6053_v31  ;;  %v5312_v10 = vld [vmem:[%s15836_s2] sm:$0xff] }
0x1952   :  { %v6219_v13 = vpop.f32.mrf.mxu0 }
0x1953   :  { %v6238_v14 = vadd.f32 %v6219_v13, %v6052_v54  ;;  %v10881_v54 = vld [vmem:[%s15834_s12 + $0x110] sm:$0xff] }
0x1954   :  { %v13626_v21 = vpop.f32.mrf.mxu0  ;;  %v13640_v12 = vpop.f32.mrf.mxu1 }
0x1955   :  { %v6241_v33 = vadd.f32 %v13626_v21, %v6055_v58  ;;  %v6425_v24 = vadd.f32 %v13640_v12, %v6239_v11  ;;  %v11975_v58 = vunpack.c.h.bf16 %v11973_v56  ;;  %v7008_v12 = vpop.permute.xlu1 %7007 }
0x1956   :  { %v6229_v25 = vpop.f32.mrf.mxu0  ;;  %v6405_v28 = vpop.f32.mrf.mxu1 }
0x1957   :  { %v6240_v29 = vadd.f32 %v6229_v25, %v6054_v62  ;;  %v6424_v30 = vadd.f32 %v6405_v28, %v6238_v14  ;;  %v5315_v28 = vld [vmem:[%s15836_s2 + $0x18] sm:$0xff] }
0x1958   :  { %v13643_v19 = vpop.f32.mrf.mxu1  ;;  %v13650_v16 = vpop.f32.mrf.mxu0 }
0x1959   :  { %v6427_v27 = vadd.f32 %v13643_v19, %v6241_v33  ;;  %13651 = vmatprep.subr.mxu0 %v13650_v16  ;;  %v7003_v19 = vpop.permute.xlu0 %7002 }
0x195a   :  { %v6415_v36 = vpop.f32.mrf.mxu1  ;;  %v6499_v8 = vpop.f32.mrf.mxu0  ;;  %13652 = vmatpush3.msra.mxu0 %v13650_v16  ;;  %v5314_v16 = vld [vmem:[%s15836_s2 + $0x10] sm:$0xff] }
0x195b   :  { %v6426_v37 = vadd.f32 %v6415_v36, %v6240_v29  ;;  %13653 = vmatprep.subr.mxu0 %v6499_v8 }
0x195c   :  { %13654 = vmatpush3.msra.mxu0 %v6499_v8  ;;  %v13667_v39 = vpop.f32.mrf.mxu1 }
0x195d   :  { %13656 = vmatmul.mubr.msk.f32.vlgmr.msra.gmra.mxu0 %vm2267_vm2, %v10856_v22  ;;  %13668 = vmatprep.subr.mxu1 %v13667_v39 }
0x195e   :  { %v6685_v40 = vpop.f32.mrf.mxu1  ;;  %13669 = vmatpush3.msra.mxu1 %v13667_v39  ;;  %13658 = vmatprep.mubr.msk.f32.mxu0 %vm2267_vm2, %v10857_v26  ;;  %v7123_v39 = vld [vmem:[%s15837_s15] sm:$0xff] }
0x195f   :  { %13670 = vmatprep.subr.mxu1 %v6685_v40  ;;  %13678 = vmatprep.subr.mxu0 %v11971_v38 }
0x1960   :  { %13671 = vmatpush3.msra.mxu1 %v6685_v40  ;;  %13679 = vmatpush3.msra.mxu0 %v11971_v38  ;;  %v10897_v38 = vld [vmem:[%s15837_s15 + $0x10] sm:$0xff] }
0x1961   :  { %13659 = vmatmul.mubr.msk.f32.gmra.mxu0 %vm2267_vm2, %v10858_v15  ;;  %13673 = vmatmul.mubr.msk.f32.vlgmr.msra.gmra.mxu1 %vm2267_vm2, %v10868_v41 }
0x1962   :  { %13682 = vmatprep.mubr.msk.f32.mxu0 %vm2267_vm2, %v15086_v52  ;;  %13680 = vmatprep.subr.mxu0 %v11970_v9 }
0x1963   :  { %13675 = vmatprep.mubr.msk.f32.mxu1 %vm2267_vm2, %v10869_v42  ;;  %13681 = vmatpush3.msra.mxu0 %v11970_v9 }
0x1964   :  { %13695 = vmatprep.subr.mxu1 %v11975_v58 }
0x1965   :  { %13676 = vmatmul.mubr.msk.f32.gmra.mxu1 %vm2267_vm2, %v10870_v43  ;;  %13683 = vmatmul.mubr.msk.f32.vlgmr.msra.gmra.mxu0 %vm2267_vm2, %v15088_v53  ;;  %v10880_v53 = vld [vmem:[%s15834_s12 + $0x108] sm:$0xff] }
0x1966   :  { %13689 = vmatprep.mubr.msk.f32.mxu0 %vm2267_vm2, %v10879_v44  ;;  %13696 = vmatpush3.msra.mxu1 %v11975_v58 }
0x1967   :  { %13697 = vmatprep.subr.mxu1 %v11974_v60 }
0x1968   :  { %13698 = vmatpush3.msra.mxu1 %v11974_v60 }
0x1a1d   :  { %v13657_v52 = vpop.f32.mrf.mxu0 }
0x1a1e   :  { %v6611_v45 = vadd.f32 %v13657_v52, %v6425_v24 }
0x1a1f   :  { %v6591_v46 = vpop.f32.mrf.mxu0 }
0x1a20   :  { %v6610_v34 = vadd.f32 %v6591_v46, %v6424_v30  ;;  %v12231_v46 = vld [vmem:[%s15835_s16 + $0x18] sm:$0xff]  }
0x1a21   :  { %v13660_v47 = vpop.f32.mrf.mxu0  ;;  %v13674_v62 = vpop.f32.mrf.mxu1 }
0x1a22   :  { %v6613_v48 = vadd.f32 %v13660_v47, %v6427_v27  ;;  %v6797_v20 = vadd.f32 %v13674_v62, %v6611_v45  ;;  %v12230_v45 = vld [vmem:[%s15835_s16 + $0x10] sm:$0xff]   ;;  %v7124_v47 = vld [vmem:[%s15837_s15 + $0x8] sm:$0xff] }
0x1a23   :  { %v6601_v31 = vpop.f32.mrf.mxu0  ;;  %v6777_v35 = vpop.f32.mrf.mxu1 }
0x1a24   :  { %v6612_v49 = vadd.f32 %v6601_v31, %v6426_v37  ;;  %v6796_v0 = vadd.f32 %v6777_v35, %v6610_v34  ;;  %v10898_v34 = vld [vmem:[%s15837_s15 + $0x18] sm:$0xff]  ;;  %v11987_v31 = vunpack.c.h.bf16 %v12231_v46 }
0x1a25   :  { %v13684_v50 = vpop.f32.mrf.mxu0  ;;  %v13677_v23 = vpop.f32.mrf.mxu1 }
0x1a26   :  { %13685 = vmatprep.subr.mxu0 %v13684_v50  ;;  %v6799_v4 = vadd.f32 %v13677_v23, %v6613_v48  ;;  %v11983_v48 = vunpack.c.h.bf16 %v12230_v45 }
0x1a27   :  { %v6871_v51 = vpop.f32.mrf.mxu0  ;;  %13686 = vmatpush3.msra.mxu0 %v13684_v50  ;;  %v6787_v2 = vpop.f32.mrf.mxu1  ;;  %v11986_v50 = vunpack.c.l.bf16 %v12231_v46 }
0x1a28   :  { %13687 = vmatprep.subr.mxu0 %v6871_v51  ;;  %v6798_v13 = vadd.f32 %v6787_v2, %v6612_v49  ;;  %v11982_v49 = vunpack.c.l.bf16 %v12230_v45  ;;  %v10920_v2 = vld [vmem:[%s15837_s15 + $0x38] sm:$0xff] }
0x1a29   :  { %13688 = vmatpush3.msra.mxu0 %v6871_v51  ;;  %v10909_v51 = vld [vmem:[%s15837_s15 + $0x20] sm:$0xff] }
0x1a2a   :  { %13690 = vmatmul.mubr.msk.f32.vlgmr.msra.gmra.mxu0 %vm2267_vm2, %v10880_v53  ;;  %13705 = vmatprep.subr.mxu0 %v11979_v59  ;;  %v10919_v53 = vld [vmem:[%s15837_s15 + $0x30] sm:$0xff] }
0x1a2b   :  { %13692 = vmatprep.mubr.msk.f32.mxu0 %vm2267_vm2, %v10881_v54  ;;  %13706 = vmatpush3.msra.mxu0 %v11979_v59 }
0x1a2c   :  { %13707 = vmatprep.subr.mxu0 %v11978_v61 }
0x1a2d   :  { %13708 = vmatpush3.msra.mxu0 %v11978_v61 }
0x1a2e   :  { %13693 = vmatmul.mubr.msk.f32.gmra.mxu0 %vm2267_vm2, %v10882_v55 }
0x1aea   :  { %v13691_v18 = vpop.f32.mrf.mxu0 }
0x1aeb   :  { %v6983_v1 = vadd.f32 %v13691_v18, %v6797_v20 }
0x1aec   :  { %v6963_v3 = vpop.f32.mrf.mxu0 }
0x1aed   :  { %v7011_v6 = vadd.f32 %v6998_v17, %v6983_v1  ;;  %v6982_v7 = vadd.f32 %v6963_v3, %v6796_v0  ;;  %v12233_v0 = vld [vmem:[%s15835_s16 + $0x28] sm:$0xff]  }
0x1aee   :  { %v13694_v11 = vpop.f32.mrf.mxu0  ;;  %v10910_v1 = vld [vmem:[%s15837_s15 + $0x28] sm:$0xff] }
0x1aef   :  { %v7010_v14 = vadd.f32 %v6993_v63, %v6982_v7  ;;  %v6985_v21 = vadd.f32 %v13694_v11, %v6799_v4  ;;  %v7015_v33 = vadd.f32 %v7011_v6, %v5313_v5  ;;  %v12232_v63 = vld [vmem:[%s15835_s16 + $0x20] sm:$0xff]   ;;  %v11995_v4 = vunpack.c.h.bf16 %v12233_v0 }
0x1af0   :  { %v6973_v24 = vpop.f32.mrf.mxu0  ;;  %v11991_v3 = vunpack.c.h.bf16 %v12232_v63  ;;  %v11990_v5 = vunpack.c.l.bf16 %v12232_v63  ;;  %v11994_v6 = vunpack.c.l.bf16 %v12233_v0  ;;  %v10929_v7 = vld [vmem:[%s15837_s15 + $0x40] sm:$0xff] }
0x1af1   :  { %v7014_v25 = vadd.f32 %v7010_v14, %v5312_v10  ;;  %v7013_v29 = vadd.f32 %v7008_v12, %v6985_v21  ;;  %v6984_v30 = vadd.f32 %v6973_v24, %v6798_v13  ;;  %v15311_v36 = vmax.f32 %v7015_v33, 0.0  ;;  %v10939_v10 = vld [vmem:[%s15837_s15 + $0x50] sm:$0xff] }
0x1af3   :  { %v15309_v32 = vmax.f32 %v7014_v25, 0.0  ;;  %v7012_v27 = vadd.f32 %v7003_v19, %v6984_v30  ;;  %v7017_v8 = vadd.f32 %v7013_v29, %v5315_v28 }
0x1af5   :  { %v7016_v22 = vadd.f32 %v7012_v27, %v5314_v16  ;;  %13699 = vmatprep.mubr.msk.f32.mxu1 %vm2267_vm2, %v15309_v32  ;;  %13709 = vmatprep.mubr.msk.f32.mxu0 %vm2267_vm2, %v15309_v32  ;;  %v15323_v26 = vmax.f32 %v7017_v8, 0.0 }
0x1af6   :  { %13700 = vmatmul.mubr.msk.f32.vlgmr.msra.gmra.mxu1 %vm2267_vm2, %v15311_v36  ;;  %13710 = vmatmul.mubr.msk.f32.vlgmr.msra.gmra.mxu0 %vm2267_vm2, %v15311_v36 }
0x1af7   :  { %v15321_v37 = vmax.f32 %v7016_v22, 0.0 }
0x1af9   :  { %13702 = vmatprep.mubr.msk.f32.mxu1 %vm2267_vm2, %v15321_v37  ;;  %13712 = vmatprep.mubr.msk.f32.mxu0 %vm2267_vm2, %v15321_v37 }
0x1afa   :  { %13703 = vmatmul.mubr.msk.f32.gmra.mxu1 %vm2267_vm2, %v15323_v26  ;;  %13713 = vmatmul.mubr.msk.f32.gmra.mxu0 %vm2267_vm2, %v15323_v26 }
0x1afb   :  { %13723 = vmatprep.mubr.msk.f32.mxu1 %vm7218_vm3, %v10897_v38  ;;  %13734 = vmatprep.mubr.msk.f32.mxu0 %vm7218_vm3, %v7123_v39  ;;  %v12234_v38 = vld [vmem:[%s15835_s16 + $0x30] sm:$0xff]   ;;  %v12235_v39 = vld [vmem:[%s15835_s16 + $0x38] sm:$0xff]  }
0x1bb6   :  { %v13701_v40 = vpop.f32.mrf.mxu1  ;;  %v13711_v15 = vpop.f32.mrf.mxu0 }
0x1bb8   :  { %v7104_v41 = vpop.f32.mrf.mxu1  ;;  %v7196_v9 = vpop.f32.mrf.mxu0 }
0x1bba   :  { %v13704_v42 = vpop.f32.mrf.mxu1  ;;  %v13714_v43 = vpop.f32.mrf.mxu0 }
0x1bbb   :  { %13715 = vmatprep.subr.mxu1 %v13714_v43  ;;  %13726 = vmatprep.subr.mxu0 %v13704_v42 }
0x1bbc   :  { %v7114_v44 = vpop.f32.mrf.mxu1  ;;  %v7206_v52 = vpop.f32.mrf.mxu0  ;;  %13716 = vmatpush3.msra.mxu1 %v13714_v43  ;;  %13727 = vmatpush3.msra.mxu0 %v13704_v42  ;;  %v11998_v42 = vunpack.c.l.bf16 %v12234_v38  ;;  %v12002_v43 = vunpack.c.l.bf16 %v12235_v39 }
0x1bbd   :  { %13717 = vmatprep.subr.mxu1 %v7206_v52  ;;  %13728 = vmatprep.subr.mxu0 %v7114_v44 }
0x1bbe   :  { %13718 = vmatpush3.msra.mxu1 %v7206_v52  ;;  %13729 = vmatpush3.msra.mxu0 %v7114_v44  ;;  %v10949_v44 = vld [vmem:[%s15837_s15 + $0x60] sm:$0xff]  ;;  %v10959_v52 = vld [vmem:[%s15837_s15 + $0x70] sm:$0xff] }
0x1bbf   :  { %13719 = vmatprep.subr.mxu1 %v13711_v15  ;;  %13730 = vmatprep.subr.mxu0 %v13701_v40 }
0x1bc0   :  { %13720 = vmatpush3.msra.mxu1 %v13711_v15  ;;  %13731 = vmatpush3.msra.mxu0 %v13701_v40  ;;  %v10930_v40 = vld [vmem:[%s15837_s15 + $0x48] sm:$0xff]  ;;  %v10940_v15 = vld [vmem:[%s15837_s15 + $0x58] sm:$0xff] }
0x1bc1   :  { %13721 = vmatprep.subr.mxu1 %v7196_v9  ;;  %13732 = vmatprep.subr.mxu0 %v7104_v41 }
0x1bc2   :  { %13722 = vmatpush3.msra.mxu1 %v7196_v9  ;;  %13733 = vmatpush3.msra.mxu0 %v7104_v41  ;;  %v11999_v41 = vunpack.c.h.bf16 %v12234_v38  ;;  %v12003_v9 = vunpack.c.h.bf16 %v12235_v39  ;;  %v10978_v39 = vld [vmem:[%s15838_s19 + $0x58] sm:$0xff] }
0x1bc3   :  { %13724 = vmatmul.mubr.msk.f32.vlgmr.msra.gmra.mxu1 %vm7218_vm3, %v10898_v34  ;;  %13735 = vmatmul.mubr.msk.f32.vlgmr.msra.gmra.mxu0 %vm7218_vm3, %v7124_v47 }
0x1bc4   :  { %13737 = vmatprep.subr.mxu1 %v11983_v48  ;;  %13758 = vmatprep.subr.mxu0 %v11987_v31 }
0x1bc5   :  { %13738 = vmatpush3.msra.mxu1 %v11983_v48  ;;  %13741 = vmatprep.mubr.msk.f32.mxu1 %vm2267_vm2, %v15309_v32 }
0x1bc6   :  { %13759 = vmatpush3.msra.mxu0 %v11987_v31  ;;  %13762 = vmatprep.mubr.msk.f32.mxu0 %vm2267_vm2, %v15309_v32 }
0x1bc7   :  { %13739 = vmatprep.subr.mxu1 %v11982_v49  ;;  %13760 = vmatprep.subr.mxu0 %v11986_v50 }
0x1bc8   :  { %13740 = vmatpush3.msra.mxu1 %v11982_v49  ;;  %13761 = vmatpush3.msra.mxu0 %v11986_v50 }
0x1bc9   :  { %13742 = vmatmul.mubr.msk.f32.vlgmr.msra.gmra.mxu1 %vm2267_vm2, %v15311_v36  ;;  %13763 = vmatmul.mubr.msk.f32.vlgmr.msra.gmra.mxu0 %vm2267_vm2, %v15311_v36 }
0x1bca   :  { %13744 = vmatprep.mubr.msk.f32.mxu1 %vm2267_vm2, %v15321_v37  ;;  %13765 = vmatprep.mubr.msk.f32.mxu0 %vm2267_vm2, %v15321_v37 }
0x1bcd   :  { %13745 = vmatmul.mubr.msk.f32.gmra.mxu1 %vm2267_vm2, %v15323_v26  ;;  %13766 = vmatmul.mubr.msk.f32.gmra.mxu0 %vm2267_vm2, %v15323_v26 }
0x1bce   :  { %13755 = vmatprep.mubr.msk.f32.mxu1 %vm7218_vm3, %v10909_v51  ;;  %13776 = vmatprep.mubr.msk.f32.mxu0 %vm7218_vm3, %v10919_v53 }
0x1c83   :  { %v13725_v54 = vpop.f32.mrf.mxu1  ;;  %v13736_v55 = vpop.f32.mrf.mxu0 }
0x1c84   :  { %v7378_v56 = vadd.f32 %v13736_v55, %v13725_v54 }
0x1c85   :  { %v7291_v57 = vpop.f32.mrf.mxu1  ;;  %v7372_v58 = vpop.f32.mrf.mxu0 }
0x1c86   :  { %v7373_v59 = vadd.f32 %v7372_v58, %v7291_v57 }
0x1c89   :  { %v13743_v60 = vpop.f32.mrf.mxu1  ;;  %v13764_v61 = vpop.f32.mrf.mxu0 }
0x1c8b   :  { %v7452_v62 = vpop.f32.mrf.mxu1  ;;  %v7628_v35 = vpop.f32.mrf.mxu0 }
0x1c8d   :  { %v13746_v23 = vpop.f32.mrf.mxu1  ;;  %v13767_v20 = vpop.f32.mrf.mxu0 }
0x1c8e   :  { %13747 = vmatprep.subr.mxu1 %v13746_v23  ;;  %13768 = vmatprep.subr.mxu0 %v13767_v20 }
0x1c8f   :  { %v7462_v17 = vpop.f32.mrf.mxu1  ;;  %13748 = vmatpush3.msra.mxu1 %v13746_v23  ;;  %v7638_v18 = vpop.f32.mrf.mxu0  ;;  %13769 = vmatpush3.msra.mxu0 %v13767_v20  ;;  %v10960_v23 = vld [vmem:[%s15837_s15 + $0x78] sm:$0xff]  ;;  %v10969_v20 = vld [vmem:[%s15837_s15 + $0x80] sm:$0xff] }
0x1c90   :  { %13749 = vmatprep.subr.mxu1 %v7462_v17  ;;  %13770 = vmatprep.subr.mxu0 %v7638_v18 }
0x1c91   :  { %13750 = vmatpush3.msra.mxu1 %v7462_v17  ;;  %13771 = vmatpush3.msra.mxu0 %v7638_v18 }
0x1c92   :  { %13751 = vmatprep.subr.mxu1 %v13743_v60  ;;  %13772 = vmatprep.subr.mxu0 %v13764_v61 }
0x1c93   :  { %13752 = vmatpush3.msra.mxu1 %v13743_v60  ;;  %13773 = vmatpush3.msra.mxu0 %v13764_v61  ;;  %v12236_v60 = vld [vmem:[%s15835_s16 + $0x40] sm:$0xff]  }
0x1c94   :  { %13753 = vmatprep.subr.mxu1 %v7452_v62  ;;  %13774 = vmatprep.subr.mxu0 %v7628_v35  ;;  %v12007_v61 = vunpack.c.h.bf16 %v12236_v60 }
0x1c95   :  { %13754 = vmatpush3.msra.mxu1 %v7452_v62  ;;  %13775 = vmatpush3.msra.mxu0 %v7628_v35  ;;  %v10950_v62 = vld [vmem:[%s15837_s15 + $0x68] sm:$0xff]  ;;  %v12006_v35 = vunpack.c.l.bf16 %v12236_v60 }
0x1c96   :  { %13756 = vmatmul.mubr.msk.f32.vlgmr.msra.gmra.mxu1 %vm7218_vm3, %v10910_v1  ;;  %13777 = vmatmul.mubr.msk.f32.vlgmr.msra.gmra.mxu0 %vm7218_vm3, %v10920_v2  ;;  %v8633_v2 = vld [vmem:[%s15838_s19 + $0x20] sm:$0xff] }
0x1c97   :  { %13779 = vmatprep.subr.mxu1 %v11991_v3  ;;  %13800 = vmatprep.subr.mxu0 %v11995_v4 }
0x1c98   :  { %13780 = vmatpush3.msra.mxu1 %v11991_v3  ;;  %13783 = vmatprep.mubr.msk.f32.mxu1 %vm2267_vm2, %v15309_v32  ;;  %v8645_v3 = vunpack.c.l.bf16 %v8633_v2 }
0x1c99   :  { %13801 = vmatpush3.msra.mxu0 %v11995_v4  ;;  %13804 = vmatprep.mubr.msk.f32.mxu0 %vm2267_vm2, %v15309_v32  ;;  %v8646_v4 = vunpack.c.h.bf16 %v8633_v2  ;;  %v10993_v2 = vld [vmem:[%s15838_s19 + $0xa8] sm:$0xff] }
0x1c9a   :  { %13781 = vmatprep.subr.mxu1 %v11990_v5  ;;  %13802 = vmatprep.subr.mxu0 %v11994_v6 }
0x1c9b   :  { %13782 = vmatpush3.msra.mxu1 %v11990_v5  ;;  %13803 = vmatpush3.msra.mxu0 %v11994_v6 }
0x1c9c   :  { %13784 = vmatmul.mubr.msk.f32.vlgmr.msra.gmra.mxu1 %vm2267_vm2, %v15311_v36  ;;  %13805 = vmatmul.mubr.msk.f32.vlgmr.msra.gmra.mxu0 %vm2267_vm2, %v15311_v36 }
0x1c9d   :  { %13786 = vmatprep.mubr.msk.f32.mxu1 %vm2267_vm2, %v15321_v37  ;;  %13807 = vmatprep.mubr.msk.f32.mxu0 %vm2267_vm2, %v15321_v37 }
0x1ca0   :  { %13787 = vmatmul.mubr.msk.f32.gmra.mxu1 %vm2267_vm2, %v15323_v26  ;;  %13808 = vmatmul.mubr.msk.f32.gmra.mxu0 %vm2267_vm2, %v15323_v26 }
0x1ca1   :  { %13797 = vmatprep.mubr.msk.f32.mxu1 %vm7218_vm3, %v10929_v7  ;;  %13818 = vmatprep.mubr.msk.f32.mxu0 %vm7218_vm3, %v10939_v10 }
0x1d56   :  { %v13757_v11 = vpop.f32.mrf.mxu1  ;;  %v13778_v13 = vpop.f32.mrf.mxu0 }
0x1d57   :  { %v7556_v14 = vadd.f32 %v13757_v11, %v7378_v56 }
0x1d58   :  { %v7546_v21 = vpop.f32.mrf.mxu1  ;;  %v7722_v12 = vpop.f32.mrf.mxu0 }
0x1d59   :  { %v7732_v33 = vadd.f32 %v13778_v13, %v7556_v14  ;;  %v7555_v24 = vadd.f32 %v7546_v21, %v7373_v59 }
0x1d5b   :  { %v7731_v25 = vadd.f32 %v7722_v12, %v7555_v24  ;;  %v10982_v12 = vld [vmem:[%s15838_s19 + $0x78] sm:$0xff] }
0x1d5c   :  { %v13785_v28 = vpop.f32.mrf.mxu1  ;;  %v13806_v29 = vpop.f32.mrf.mxu0  ;;  %v8761_v24 = vunpack.c.h.bf16 %v10982_v12 }
0x1d5e   :  { %v7804_v30 = vpop.f32.mrf.mxu1  ;;  %v7980_v19 = vpop.f32.mrf.mxu0 }
0x1d60   :  { %v13788_v16 = vpop.f32.mrf.mxu1  ;;  %v13809_v27 = vpop.f32.mrf.mxu0 }
0x1d61   :  { %13789 = vmatprep.subr.mxu1 %v13788_v16  ;;  %13810 = vmatprep.subr.mxu0 %v13809_v27 }
0x1d62   :  { %v7814_v8 = vpop.f32.mrf.mxu1  ;;  %13790 = vmatpush3.msra.mxu1 %v13788_v16  ;;  %v7990_v22 = vpop.f32.mrf.mxu0  ;;  %13811 = vmatpush3.msra.mxu0 %v13809_v27  ;;  %v10979_v16 = vld [vmem:[%s15838_s19 + $0x60] sm:$0xff] }
0x1d63   :  { %13791 = vmatprep.subr.mxu1 %v7814_v8  ;;  %13812 = vmatprep.subr.mxu0 %v7990_v22  ;;  %v8754_v38 = vunpack.c.l.bf16 %v10979_v16 }
0x1d64   :  { %13792 = vmatpush3.msra.mxu1 %v7814_v8  ;;  %13813 = vmatpush3.msra.mxu0 %v7990_v22  ;;  %v8755_v22 = vunpack.c.h.bf16 %v10979_v16 }
0x1d65   :  { %13793 = vmatprep.subr.mxu1 %v13785_v28  ;;  %13814 = vmatprep.subr.mxu0 %v13806_v29 }
0x1d66   :  { %13794 = vmatpush3.msra.mxu1 %v13785_v28  ;;  %13815 = vmatpush3.msra.mxu0 %v13806_v29  ;;  %v8760_v28 = vunpack.c.l.bf16 %v10982_v12  ;;  %v10980_v29 = vld [vmem:[%s15838_s19 + $0x68] sm:$0xff] }
0x1d67   :  { %13795 = vmatprep.subr.mxu1 %v7804_v30  ;;  %13816 = vmatprep.subr.mxu0 %v7980_v19  ;;  %v8757_v27 = vunpack.c.h.bf16 %v10980_v29  ;;  %v8756_v8 = vunpack.c.l.bf16 %v10980_v29 }
0x1d68   :  { %13796 = vmatpush3.msra.mxu1 %v7804_v30  ;;  %13817 = vmatpush3.msra.mxu0 %v7980_v19 }
0x1d69   :  { %13798 = vmatmul.mubr.msk.f32.vlgmr.msra.gmra.mxu1 %vm7218_vm3, %v10930_v40  ;;  %13819 = vmatmul.mubr.msk.f32.vlgmr.msra.gmra.mxu0 %vm7218_vm3, %v10940_v15  ;;  %v8753_v40 = vunpack.c.h.bf16 %v10978_v39  ;;  %v8632_v15 = vld [vmem:[%s15838_s19 + $0x18] sm:$0xff] }
0x1d6a   :  { %13821 = vmatprep.subr.mxu1 %v11999_v41  ;;  %13842 = vmatprep.subr.mxu0 %v12003_v9 }
0x1d6b   :  { %13822 = vmatpush3.msra.mxu1 %v11999_v41  ;;  %13825 = vmatprep.mubr.msk.f32.mxu1 %vm2267_vm2, %v15309_v32  ;;  %v8752_v41 = vunpack.c.l.bf16 %v10978_v39 }
0x1d6c   :  { %13843 = vmatpush3.msra.mxu0 %v12003_v9  ;;  %13846 = vmatprep.mubr.msk.f32.mxu0 %vm2267_vm2, %v15309_v32  ;;  %v8644_v9 = vunpack.c.h.bf16 %v8632_v15 }
0x1d6d   :  { %13823 = vmatprep.subr.mxu1 %v11998_v42  ;;  %13844 = vmatprep.subr.mxu0 %v12002_v43 }
0x1d6e   :  { %13824 = vmatpush3.msra.mxu1 %v11998_v42  ;;  %13845 = vmatpush3.msra.mxu0 %v12002_v43  ;;  %v10977_v42 = vld [vmem:[%s15838_s19 + $0x50] sm:$0xff]  ;;  %v8643_v43 = vunpack.c.l.bf16 %v8632_v15 }
0x1d6f   :  { %13826 = vmatmul.mubr.msk.f32.vlgmr.msra.gmra.mxu1 %vm2267_vm2, %v15311_v36  ;;  %13847 = vmatmul.mubr.msk.f32.vlgmr.msra.gmra.mxu0 %vm2267_vm2, %v15311_v36 }
0x1d70   :  { %13828 = vmatprep.mubr.msk.f32.mxu1 %vm2267_vm2, %v15321_v37  ;;  %13849 = vmatprep.mubr.msk.f32.mxu0 %vm2267_vm2, %v15321_v37 }
0x1d73   :  { %13829 = vmatmul.mubr.msk.f32.gmra.mxu1 %vm2267_vm2, %v15323_v26  ;;  %13850 = vmatmul.mubr.msk.f32.gmra.mxu0 %vm2267_vm2, %v15323_v26 }
0x1d74   :  { %13839 = vmatprep.mubr.msk.f32.mxu1 %vm7218_vm3, %v10949_v44  ;;  %13860 = vmatprep.mubr.msk.f32.mxu0 %vm7218_vm3, %v10959_v52  ;;  %v8751_v44 = vunpack.c.h.bf16 %v10977_v42  ;;  %v8631_v52 = vld [vmem:[%s15838_s19 + $0x10] sm:$0xff] }
0x1e29   :  { %v13799_v45 = vpop.f32.mrf.mxu1  ;;  %v13820_v46 = vpop.f32.mrf.mxu0 }
0x1e2a   :  { %v7908_v34 = vadd.f32 %v13799_v45, %v7732_v33  ;;  %v10981_v33 = vld [vmem:[%s15838_s19 + $0x70] sm:$0xff]  ;;  %v8750_v45 = vunpack.c.l.bf16 %v10977_v42 }
0x1e2b   :  { %v7898_v47 = vpop.f32.mrf.mxu1  ;;  %v8074_v48 = vpop.f32.mrf.mxu0  ;;  %v8759_v30 = vunpack.c.h.bf16 %v10981_v33  ;;  %v8758_v19 = vunpack.c.l.bf16 %v10981_v33  ;;  %v10990_v33 = vld [vmem:[%s15838_s19 + $0x90] sm:$0xff] }
0x1e2c   :  { %v15455_v31 = vadd.f32 %v13820_v46, %v7908_v34  ;;  %v7907_v49 = vadd.f32 %v7898_v47, %v7731_v25  ;;  %v10970_v25 = vld [vmem:[%s15837_s15 + $0x88] sm:$0xff]  ;;  %v8642_v46 = vunpack.c.h.bf16 %v8631_v52  ;;  %v8641_v47 = vunpack.c.l.bf16 %v8631_v52  ;;  %v8736_v52 = vld [vmem:[%s15839_s18] sm:$0xff] }
0x1e2d   :  { %v10976_v34 = vld [vmem:[%s15838_s19 + $0x48] sm:$0xff]  ;;  %v9003_v29 = vunpack.c.h.bf16 %v10990_v33 }
0x1e2e   :  { %v15457_v50 = vadd.f32 %v8074_v48, %v7907_v49  ;;  %v8749_v48 = vunpack.c.h.bf16 %v10976_v34  ;;  %v8748_v49 = vunpack.c.l.bf16 %v10976_v34 }
0x1e2f   :  { %v13827_v51 = vpop.f32.mrf.mxu1  ;;  %v13848_v53 = vpop.f32.mrf.mxu0 }
0x1e31   :  { %v8156_v54 = vpop.f32.mrf.mxu1  ;;  %v8332_v55 = vpop.f32.mrf.mxu0 }
0x1e33   :  { %v13830_v56 = vpop.f32.mrf.mxu1  ;;  %v13851_v57 = vpop.f32.mrf.mxu0 }
0x1e34   :  { %13831 = vmatprep.subr.mxu1 %v13830_v56  ;;  %13852 = vmatprep.subr.mxu0 %v13851_v57 }
0x1e35   :  { %v8166_v58 = vpop.f32.mrf.mxu1  ;;  %13832 = vmatpush3.msra.mxu1 %v13830_v56  ;;  %v8342_v59 = vpop.f32.mrf.mxu0  ;;  %13853 = vmatpush3.msra.mxu0 %v13851_v57 }
0x1e36   :  { %13833 = vmatprep.subr.mxu1 %v8166_v58  ;;  %13854 = vmatprep.subr.mxu0 %v8342_v59 }
0x1e37   :  { %13834 = vmatpush3.msra.mxu1 %v8166_v58  ;;  %13855 = vmatpush3.msra.mxu0 %v8342_v59  ;;  %v10995_v58 = vld [vmem:[%s15838_s19 + $0xb8] sm:$0xff] }
0x1e38   :  { %13835 = vmatprep.subr.mxu1 %v13827_v51  ;;  %13856 = vmatprep.subr.mxu0 %v13848_v53  ;;  %v9013_v60 = vunpack.c.h.bf16 %v10995_v58 }
0x1e39   :  { %13836 = vmatpush3.msra.mxu1 %v13827_v51  ;;  %13857 = vmatpush3.msra.mxu0 %v13848_v53  ;;  %v10975_v51 = vld [vmem:[%s15838_s19 + $0x40] sm:$0xff] }
0x1e3a   :  { %13837 = vmatprep.subr.mxu1 %v8156_v54  ;;  %13858 = vmatprep.subr.mxu0 %v8332_v55  ;;  %v8746_v56 = vunpack.c.l.bf16 %v10975_v51 }
0x1e3b   :  { %13838 = vmatpush3.msra.mxu1 %v8156_v54  ;;  %13859 = vmatpush3.msra.mxu0 %v8332_v55  ;;  %v8747_v54 = vunpack.c.h.bf16 %v10975_v51  ;;  %v8629_v55 = vld [vmem:[%s15838_s19] sm:$0xff] }
0x1e3c   :  { %13840 = vmatmul.mubr.msk.f32.vlgmr.msra.gmra.mxu1 %vm7218_vm3, %v10950_v62  ;;  %13863 = vmatprep.subr.mxu1 %v12007_v61  ;;  %v8638_v57 = vunpack.c.h.bf16 %v8629_v55  ;;  %v8637_v59 = vunpack.c.l.bf16 %v8629_v55 }
0x1e3d   :  { %13864 = vmatpush3.msra.mxu1 %v12007_v61  ;;  %13867 = vmatprep.mubr.msk.f32.mxu1 %vm2267_vm2, %v15309_v32  ;;  %v8636_v32 = vld [vmem:[%s15838_s19 + $0x38] sm:$0xff]  ;;  %v13891_v61 = vmov 0.0  }
0x1e3e   :  { %13861 = vmatmul.mubr.msk.f32.vlgmr.msra.gmra.mxu0 %vm7218_vm3, %v10960_v23  ;;  %13865 = vmatprep.subr.mxu1 %v12006_v35  ;;  %v8651_v17 = vunpack.c.l.bf16 %v8636_v32  ;;  %v8652_v18 = vunpack.c.h.bf16 %v8636_v32 }
0x1e3f   :  { %13866 = vmatpush3.msra.mxu1 %v12006_v35  ;;  %8723 = vmatprep.mubr.f32.mxu0 %v13891_v61 }
0x1e40   :  { %13868 = vmatmul.mubr.msk.f32.vlgmr.msra.gmra.mxu1 %vm2267_vm2, %v15311_v36  ;;  %v8635_v36 = vld [vmem:[%s15838_s19 + $0x30] sm:$0xff]  ;;  %8675 = vmatprep.subr.mxu0 %v8652_v18 }
0x1e41   :  { %13870 = vmatprep.mubr.msk.f32.mxu1 %vm2267_vm2, %v15321_v37  ;;  %v8649_v37 = vunpack.c.l.bf16 %v8635_v36  ;;  %v8650_v63 = vunpack.c.h.bf16 %v8635_v36  ;;  %8676 = vmatpush1.msra.mxu0 %v8651_v17 }
0x1e43   :  { %8677 = vmatprep.subr.mxu0 %v8650_v63  ;;  %v10994_v63 = vld [vmem:[%s15838_s19 + $0xb0] sm:$0xff] }
0x1e44   :  { %13871 = vmatmul.mubr.msk.f32.gmra.mxu1 %vm2267_vm2, %v15323_v26  ;;  %v8634_v26 = vld [vmem:[%s15838_s19 + $0x28] sm:$0xff]  ;;  %8678 = vmatpush1.msra.mxu0 %v8649_v37  ;;  %v8618_v37 = vpop.permute.xlu0 %8617 }
0x1e45   :  { %13881 = vmatprep.mubr.msk.f32.mxu1 %vm7218_vm3, %v10969_v20  ;;  %v8647_v0 = vunpack.c.l.bf16 %v8634_v26  ;;  %v8648_v1 = vunpack.c.h.bf16 %v8634_v26 }
0x1e47   :  { %8679 = vmatprep.subr.mxu0 %v8648_v1  ;;  %v9012_v1 = vunpack.c.l.bf16 %v10995_v58 }
0x1e48   :  { %8680 = vmatpush1.msra.mxu0 %v8647_v0  ;;  %v8623_v0 = vpop.permute.xlu1 %8622 }
0x1e49   :  { %8681 = vmatprep.subr.mxu0 %v8646_v4 }
0x1e4a   :  { %8682 = vmatpush1.msra.mxu0 %v8645_v3 }
0x1e4b   :  { %8683 = vmatprep.subr.mxu0 %v8644_v9 }
0x1e4c   :  { %8684 = vmatpush1.msra.mxu0 %v8643_v43  ;;  %v10985_v43 = vld [vmem:[%s15839_s18 + $0x8] sm:$0xff] }
0x1e4d   :  { %8685 = vmatprep.subr.mxu0 %v8642_v46 }
0x1e4e   :  { %8686 = vmatpush1.msra.mxu0 %v8641_v47  ;;  %v11007_v47 = vld [vmem:[%s15838_s19 + $0xf8] sm:$0xff] }
0x1e4f   :  { %v9192_v51 = vunpack.c.l.bf16 %v11007_v47 }
0x1efc   :  { %v13841_v5 = vpop.f32.mrf.mxu1 }
0x1efd   :  { %v15495_v6 = vadd.f32 %v13841_v5, %v15455_v31  ;;  %v8630_v31 = vld [vmem:[%s15838_s19 + $0x8] sm:$0xff]  ;;  %v9011_v5 = vunpack.c.h.bf16 %v10994_v63 }
0x1efe   :  { %v8250_v7 = vpop.f32.mrf.mxu1  ;;  %v8639_v53 = vunpack.c.l.bf16 %v8630_v31  ;;  %v13862_v62 = vpop.f32.mrf.mxu0 }
0x1eff   :  { %v15498_v10 = vadd.f32 %v8250_v7, %v15457_v50  ;;  %v8640_v50 = vunpack.c.h.bf16 %v8630_v31  ;;  %v8436_v20 = vadd.f32 %v13862_v62, %v15495_v6  ;;  %v9010_v6 = vunpack.c.l.bf16 %v10994_v63  ;;  %v11006_v31 = vld [vmem:[%s15838_s19 + $0xf0] sm:$0xff] }
0x1f00   :  { %v13869_v11 = vpop.f32.mrf.mxu1  ;;  %v8426_v35 = vpop.f32.mrf.mxu0  ;;  %v9009_v7 = vunpack.c.h.bf16 %v10993_v2  ;;  %v9190_v55 = vunpack.c.l.bf16 %v11006_v31 }
0x1f01   :  { %8687 = vmatprep.subr.mxu0 %v8640_v50  ;;  %v8435_v32 = vadd.f32 %v8426_v35, %v15498_v10  ;;  %v10992_v10 = vld [vmem:[%s15838_s19 + $0xa0] sm:$0xff]  ;;  %v10998_v50 = vld [vmem:[%s15839_s18 + $0x10] sm:$0xff] }
0x1f02   :  { %v8508_v13 = vpop.f32.mrf.mxu1  ;;  %8688 = vmatpush1.msra.mxu0 %v8639_v53  ;;  %v9006_v12 = vunpack.c.l.bf16 %v10992_v10  ;;  %v11005_v53 = vld [vmem:[%s15838_s19 + $0xe8] sm:$0xff]  ;;  %v11002_v35 = vld [vmem:[%s15838_s19 + $0xd0] sm:$0xff] }
0x1f03   :  { %8689 = vmatprep.subr.mxu0 %v8638_v57  ;;  %v9189_v57 = vunpack.c.h.bf16 %v11005_v53  ;;  %v9188_v58 = vunpack.c.l.bf16 %v11005_v53 }
0x1f04   :  { %v13872_v14 = vpop.f32.mrf.mxu1  ;;  %8690 = vmatpush1.msra.mxu0 %v8637_v59  ;;  %v11003_v59 = vld [vmem:[%s15838_s19 + $0xd8] sm:$0xff] }
0x1f05   :  { %13873 = vmatprep.subr.mxu1 %v13872_v14 }
0x1f06   :  { %v8518_v21 = vpop.f32.mrf.mxu1  ;;  %13874 = vmatpush3.msra.mxu1 %v13872_v14  ;;  %v10991_v14 = vld [vmem:[%s15838_s19 + $0x98] sm:$0xff] }
0x1f07   :  { %13875 = vmatprep.subr.mxu1 %v8518_v21 }
0x1f08   :  { %13876 = vmatpush3.msra.mxu1 %v8518_v21  ;;  %v9007_v21 = vunpack.c.h.bf16 %v10992_v10 }
0x1f09   :  { %13877 = vmatprep.subr.mxu1 %v13869_v11 }
0x1f0a   :  { %13878 = vmatpush3.msra.mxu1 %v13869_v11 }
0x1f0b   :  { %13879 = vmatprep.subr.mxu1 %v8508_v13 }
0x1f0c   :  { %13880 = vmatpush3.msra.mxu1 %v8508_v13  ;;  %v9008_v13 = vunpack.c.l.bf16 %v10993_v2 }
0x1f0d   :  { %13882 = vmatmul.mubr.msk.f32.vlgmr.msra.gmra.mxu1 %vm7218_vm3, %v10970_v25  ;;  %8778 = vmatprep.subr.mxu1 %v8761_v24  ;;  %v9005_v24 = vunpack.c.h.bf16 %v10991_v14  ;;  %v9004_v25 = vunpack.c.l.bf16 %v10991_v14 }
0x1f0e   :  { %8779 = vmatpush1.msra.mxu1 %v8760_v28  ;;  %8826 = vmatprep.mubr.f32.mxu1 %v13891_v61  ;;  %v10989_v28 = vld [vmem:[%s15838_s19 + $0x88] sm:$0xff] }
0x1f0f   :  { %8780 = vmatprep.subr.mxu1 %v8759_v30  ;;  %v9002_v30 = vunpack.c.l.bf16 %v10990_v33  ;;  %v9001_v16 = vunpack.c.h.bf16 %v10989_v28 }
0x1f10   :  { %8781 = vmatpush1.msra.mxu1 %v8758_v19  ;;  %v10988_v19 = vld [vmem:[%s15838_s19 + $0x80] sm:$0xff] }
0x1f11   :  { %8782 = vmatprep.subr.mxu1 %v8757_v27  ;;  %v9000_v27 = vunpack.c.l.bf16 %v10989_v28 }
0x1f12   :  { %8783 = vmatpush1.msra.mxu1 %v8756_v8  ;;  %v8999_v8 = vunpack.c.h.bf16 %v10988_v19 }
0x1f13   :  { %8784 = vmatprep.subr.mxu1 %v8755_v22  ;;  %v8998_v22 = vunpack.c.l.bf16 %v10988_v19  ;;  %v11010_v19 = vld [vmem:[%s15839_s18 + $0x18] sm:$0xff] }
0x1f14   :  { %8785 = vmatpush1.msra.mxu1 %v8754_v38 }
0x1f15   :  { %8786 = vmatprep.subr.mxu1 %v8753_v40 }
0x1f16   :  { %8787 = vmatpush1.msra.mxu1 %v8752_v41 }
0x1f17   :  { %8788 = vmatprep.subr.mxu1 %v8751_v44 }
0x1f18   :  { %8789 = vmatpush1.msra.mxu1 %v8750_v45 }
0x1f19   :  { %8790 = vmatprep.subr.mxu1 %v8749_v48 }
0x1f1a   :  { %8791 = vmatpush1.msra.mxu1 %v8748_v49  ;;  %v9193_v49 = vunpack.c.h.bf16 %v11007_v47 }
0x1f1b   :  { %8792 = vmatprep.subr.mxu1 %v8747_v54  ;;  %v9191_v54 = vunpack.c.h.bf16 %v11006_v31 }
0x1f1c   :  { %8793 = vmatpush1.msra.mxu1 %v8746_v56  ;;  %v11004_v56 = vld [vmem:[%s15838_s19 + $0xe0] sm:$0xff] }
0x1f1d   :  { %9030 = vmatprep.subr.mxu1 %v9013_v60  ;;  %v9187_v60 = vunpack.c.h.bf16 %v11004_v56  ;;  %v9186_v62 = vunpack.c.l.bf16 %v11004_v56 }
0x1fcd   :  { %v13883_v23 = vpop.f32.mrf.mxu1 }
0x1fce   :  { %v8612_v18 = vadd.f32 %v13883_v23, %v8436_v20  ;;  %v9185_v23 = vunpack.c.h.bf16 %v11003_v59  ;;  %v9184_v20 = vunpack.c.l.bf16 %v11003_v59 }
0x1fcf   :  { %v8602_v17 = vpop.f32.mrf.mxu1 }
0x1fd0   :  { %v8611_v36 = vadd.f32 %v8602_v17, %v8435_v32  ;;  %v8626_v3 = vadd.f32 %v8623_v0, %v8612_v18  ;;  %v11001_v32 = vld [vmem:[%s15838_s19 + $0xc8] sm:$0xff]  ;;  %v9183_v17 = vunpack.c.h.bf16 %v11002_v35  ;;  %v9182_v18 = vunpack.c.l.bf16 %v11002_v35  ;;  %v11022_v35 = vld [vmem:[%s15839_s18 + $0x20] sm:$0xff] }
0x1fd1   :  { %v9180_v63 = vunpack.c.l.bf16 %v11001_v32 }
0x1fd2   :  { %v8625_v26 = vadd.f32 %v8618_v37, %v8611_v36  ;;  %v15563_v11 = vmax.f32 %v8626_v3, 0.0  ;;  %v11000_v36 = vld [vmem:[%s15838_s19 + $0xc0] sm:$0xff]  ;;  %v9181_v37 = vunpack.c.h.bf16 %v11001_v32 }
0x1fd3   :  { %v9178_v0 = vunpack.c.l.bf16 %v11000_v36 }
0x1fd4   :  { %v15553_v4 = vmax.f32 %v8625_v26, 0.0  ;;  %v9179_v26 = vunpack.c.h.bf16 %v11000_v36 }
0x1fd6   :  { %10973 = vmatmul.mubr.msk.f32.vlgmr.msra.gmra.mxu0 %vm2088_vm1, %v15553_v4  ;;  %10983 = vmatmul.mubr.msk.f32.vlgmr.msra.gmra.mxu1 %vm2088_vm1, %v15553_v4 }
0x1fd7   :  { %9031 = vmatpush1.msra.mxu1 %v9012_v1  ;;  %8729 = vmatprep.mubr.f32.mxu0 %v13891_v61 }
0x1fd8   :  { %9032 = vmatprep.subr.mxu1 %v9011_v5  ;;  %8832 = vmatprep.mubr.f32.mxu1 %v13891_v61 }
0x1fd9   :  { %9033 = vmatpush1.msra.mxu1 %v9010_v6 }
0x1fda   :  { %9034 = vmatprep.subr.mxu1 %v9009_v7  ;;  %10974 = vmatmul.mubr.msk.f32.gmra.mxu0 %vm2088_vm1, %v15563_v11 }
0x1fdb   :  { %10984 = vmatmul.mubr.msk.f32.gmra.mxu1 %vm2088_vm1, %v15563_v11  ;;  %8908 = vmatprep.mubr.f32.mxu0 %v13891_v61 }
0x1fdc   :  { %9035 = vmatpush1.msra.mxu1 %v9008_v13  ;;  %9078 = vmatprep.mubr.f32.mxu1 %v13891_v61 }
0x1fdd   :  { %9036 = vmatprep.subr.mxu1 %v9007_v21 }
0x1fde   :  { %9037 = vmatpush1.msra.mxu1 %v9006_v12 }
0x1fdf   :  { %9038 = vmatprep.subr.mxu1 %v9005_v24 }
0x1fe0   :  { %9039 = vmatpush1.msra.mxu1 %v9004_v25  ;;  %v11019_v25 = vld [vmem:[%s15838_s19 + $0x138] sm:$0xff] }
0x1fe1   :  { %9040 = vmatprep.subr.mxu1 %v9003_v29  ;;  %v11018_v29 = vld [vmem:[%s15838_s19 + $0x130] sm:$0xff] }
0x1fe2   :  { %9041 = vmatpush1.msra.mxu1 %v9002_v30  ;;  %v9373_v30 = vunpack.c.h.bf16 %v11019_v25 }
0x1fe3   :  { %9042 = vmatprep.subr.mxu1 %v9001_v16  ;;  %v9372_v16 = vunpack.c.l.bf16 %v11019_v25 }
0x1fe4   :  { %9043 = vmatpush1.msra.mxu1 %v9000_v27  ;;  %v11017_v27 = vld [vmem:[%s15838_s19 + $0x128] sm:$0xff] }
0x1fe5   :  { %9044 = vmatprep.subr.mxu1 %v8999_v8  ;;  %v9371_v8 = vunpack.c.h.bf16 %v11018_v29 }
0x1fe6   :  { %9045 = vmatpush1.msra.mxu1 %v8998_v22  ;;  %v9370_v22 = vunpack.c.l.bf16 %v11018_v29 }
0x1fe7   :  { %10996 = vmatmul.mubr.msk.f32.vlgmr.msra.gmra.mxu1 %vm2088_vm1, %v15553_v4 }
0x1fe8   :  { %9084 = vmatprep.mubr.f32.mxu1 %v13891_v61 }
0x1feb   :  { %10997 = vmatmul.mubr.msk.f32.gmra.mxu1 %vm2088_vm1, %v15563_v11 }
0x1fec   :  { %9340 = vmatprep.mubr.f32.mxu1 %v13891_v61 }
0x2096   :  { %v8725_v38 = vpop.f32.mrf.mxu0  ;;  %v8828_v39 = vpop.f32.mrf.mxu1 }
0x2098   :  { %v8830_v40 = vpop.f32.mrf.mxu1  ;;  %v8727_v15 = vpop.f32.mrf.mxu0 }
0x209a   :  { %v8731_v9 = vpop.f32.mrf.mxu0 }
0x209b   :  { %v8834_v41 = vpop.f32.mrf.mxu1 }
0x209c   :  { %v8733_v44 = vpop.f32.mrf.mxu0 }
0x209d   :  { %v8836_v42 = vpop.f32.mrf.mxu1 }
0x209e   :  { %8872 = vmatprep.subr.mxu0 %v8836_v42  ;;  %v11014_v42 = vld [vmem:[%s15838_s19 + $0x110] sm:$0xff] }
0x209f   :  { %8873 = vmatpush1.msra.mxu0 %v8834_v41 }
0x20a0   :  { %8874 = vmatprep.subr.mxu0 %v8830_v40  ;;  %v9368_v40 = vunpack.c.l.bf16 %v11017_v27 }
0x20a1   :  { %8875 = vmatpush1.msra.mxu0 %v8828_v39  ;;  %v9369_v39 = vunpack.c.h.bf16 %v11017_v27 }
0x20a2   :  { %8946 = vmatprep.subr.mxu0 %v8733_v44  ;;  %10986 = vmatmul.mubr.msk.f32.vlgmr.msra.gmra.mxu0 %vm2267_vm2, %v10985_v43 }
0x20a3   :  { %8947 = vmatpush1.msra.mxu0 %v8731_v9  ;;  %8982 = vmatprep.mubr.f32.mxu0 %v13891_v61 }
0x20a4   :  { %8948 = vmatprep.subr.mxu0 %v8727_v15  ;;  %v11015_v15 = vld [vmem:[%s15838_s19 + $0x118] sm:$0xff] }
0x20a5   :  { %8949 = vmatpush1.msra.mxu0 %v8725_v38  ;;  %v11016_v38 = vld [vmem:[%s15838_s19 + $0x120] sm:$0xff]  ;;  %v9365_v43 = vunpack.c.h.bf16 %v11015_v15  ;;  %v9364_v44 = vunpack.c.l.bf16 %v11015_v15 }
0x20a6   :  { %10987 = vmatmul.mubr.msk.f32.vlgmr.msra.gmra.mxu0 %vm2267_vm2, %v8736_v52  ;;  %v9367_v41 = vunpack.c.h.bf16 %v11016_v38  ;;  %v9366_v9 = vunpack.c.l.bf16 %v11016_v38  ;;  %v11013_v52 = vld [vmem:[%s15838_s19 + $0x108] sm:$0xff] }
0x20a7   :  { %v9080_v45 = vpop.f32.mrf.mxu1  ;;  %9160 = vmatprep.mubr.f32.mxu0 %v13891_v61  ;;  %v9361_v47 = vunpack.c.h.bf16 %v11013_v52  ;;  %v11034_v38 = vld [vmem:[%s15839_s18 + $0x28] sm:$0xff] }
0x20a9   :  { %v9082_v46 = vpop.f32.mrf.mxu1 }
0x20ab   :  { %v9086_v34 = vpop.f32.mrf.mxu1 }
0x20ad   :  { %v9088_v48 = vpop.f32.mrf.mxu1 }
0x20ae   :  { %9124 = vmatprep.subr.mxu0 %v9088_v48  ;;  %v9360_v48 = vunpack.c.l.bf16 %v11013_v52 }
0x20af   :  { %9125 = vmatpush1.msra.mxu0 %v9086_v34  ;;  %v11012_v34 = vld [vmem:[%s15838_s19 + $0x100] sm:$0xff] }
0x20b0   :  { %9126 = vmatprep.subr.mxu0 %v9082_v46  ;;  %v9362_v46 = vunpack.c.l.bf16 %v11014_v42  ;;  %v9359_v31 = vunpack.c.h.bf16 %v11012_v34 }
0x20b1   :  { %9127 = vmatpush1.msra.mxu0 %v9080_v45  ;;  %v9363_v45 = vunpack.c.h.bf16 %v11014_v42 }
0x20b2   :  { %10999 = vmatmul.mubr.msk.f32.vlgmr.msra.gmra.mxu0 %vm2267_vm2, %v10998_v50  ;;  %9210 = vmatprep.subr.mxu0 %v9193_v49  ;;  %v9358_v49 = vunpack.c.l.bf16 %v11012_v34 }
0x20b3   :  { %9211 = vmatpush1.msra.mxu0 %v9192_v51  ;;  %9258 = vmatprep.mubr.f32.mxu0 %v13891_v61 }
0x20b4   :  { %9212 = vmatprep.subr.mxu0 %v9191_v54 }
0x20b5   :  { %9213 = vmatpush1.msra.mxu0 %v9190_v55 }
0x20b6   :  { %9214 = vmatprep.subr.mxu0 %v9189_v57 }
0x20b7   :  { %9215 = vmatpush1.msra.mxu0 %v9188_v58  ;;  %v11031_v58 = vld [vmem:[%s15838_s19 + $0x178] sm:$0xff] }
0x20b8   :  { %9216 = vmatprep.subr.mxu0 %v9187_v60  ;;  %v11030_v60 = vld [vmem:[%s15838_s19 + $0x170] sm:$0xff] }
0x20b9   :  { %9217 = vmatpush1.msra.mxu0 %v9186_v62  ;;  %v9553_v62 = vunpack.c.h.bf16 %v11031_v58  ;;  %v9551_v32 = vunpack.c.h.bf16 %v11030_v60 }
0x20ba   :  { %9218 = vmatprep.subr.mxu0 %v9185_v23  ;;  %v9552_v23 = vunpack.c.l.bf16 %v11031_v58 }
0x20bb   :  { %9219 = vmatpush1.msra.mxu0 %v9184_v20  ;;  %v11029_v20 = vld [vmem:[%s15838_s19 + $0x168] sm:$0xff] }
0x20bc   :  { %9220 = vmatprep.subr.mxu0 %v9183_v17  ;;  %v9550_v17 = vunpack.c.l.bf16 %v11030_v60  ;;  %v9549_v36 = vunpack.c.h.bf16 %v11029_v20 }
0x20bd   :  { %9221 = vmatpush1.msra.mxu0 %v9182_v18  ;;  %v11028_v18 = vld [vmem:[%s15838_s19 + $0x160] sm:$0xff] }
0x20be   :  { %9222 = vmatprep.subr.mxu0 %v9181_v37  ;;  %v9548_v37 = vunpack.c.l.bf16 %v11029_v20 }
0x20bf   :  { %9223 = vmatpush1.msra.mxu0 %v9180_v63  ;;  %v11027_v63 = vld [vmem:[%s15838_s19 + $0x158] sm:$0xff] }
0x20c0   :  { %9224 = vmatprep.subr.mxu0 %v9179_v26  ;;  %v9547_v26 = vunpack.c.h.bf16 %v11028_v18 }
0x20c1   :  { %9225 = vmatpush1.msra.mxu0 %v9178_v0  ;;  %v9546_v0 = vunpack.c.l.bf16 %v11028_v18  ;;  %v11046_v18 = vld [vmem:[%s15839_s18 + $0x30] sm:$0xff] }
0x20c2   :  { %11008 = vmatmul.mubr.msk.f32.vlgmr.msra.gmra.mxu0 %vm2088_vm1, %v15553_v4 }
0x20c3   :  { %9264 = vmatprep.mubr.f32.mxu0 %v13891_v61 }
0x20c6   :  { %11009 = vmatmul.mubr.msk.f32.gmra.mxu0 %vm2088_vm1, %v15563_v11 }
0x20c7   :  { %9520 = vmatprep.mubr.f32.mxu0 %v13891_v61 }
0x2162   :  { %v8910_v1 = vpop.f32.mrf.mxu0 }
0x2164   :  { %v8912_v2 = vpop.f32.mrf.mxu0 }
0x2166   :  { %v8984_v3 = vpop.f32.mrf.mxu0 }
0x2167   :  { %v8985_v5 = vadd.f32 %v8984_v3, %v8910_v1  ;;  %v11026_v1 = vld [vmem:[%s15838_s19 + $0x150] sm:$0xff]  ;;  %v9544_v3 = vunpack.c.l.bf16 %v11027_v63 }
0x2168   :  { %v8986_v6 = vpop.f32.mrf.mxu0 }
0x2169   :  { %v8987_v7 = vadd.f32 %v8986_v6, %v8912_v2  ;;  %v9545_v2 = vunpack.c.h.bf16 %v11027_v63  ;;  %v9543_v6 = vunpack.c.h.bf16 %v11026_v1 }
0x2172   :  { %v9162_v10 = vpop.f32.mrf.mxu0 }
0x2173   :  { %v9167_v13 = vadd.f32 %v9162_v10, %v8985_v5  ;;  %v11025_v5 = vld [vmem:[%s15838_s19 + $0x148] sm:$0xff]  ;;  %v11024_v10 = vld [vmem:[%s15838_s19 + $0x140] sm:$0xff] }
0x2174   :  { %v9164_v14 = vpop.f32.mrf.mxu0 }
0x2175   :  { %v9168_v21 = vadd.f32 %v9164_v14, %v8987_v7  ;;  %v9542_v7 = vunpack.c.l.bf16 %v11026_v1  ;;  %v9540_v14 = vunpack.c.l.bf16 %v11025_v5 }
0x2182   :  { %v9260_v12 = vpop.f32.mrf.mxu0 }
0x2184   :  { %v9262_v33 = vpop.f32.mrf.mxu0 }
0x2186   :  { %v9266_v24 = vpop.f32.mrf.mxu0 }
0x2188   :  { %v9268_v28 = vpop.f32.mrf.mxu0 }
0x2189   :  { %9304 = vmatprep.subr.mxu1 %v9268_v28 }
0x218a   :  { %9305 = vmatpush1.msra.mxu1 %v9266_v24 }
0x218b   :  { %9306 = vmatprep.subr.mxu1 %v9262_v33 }
0x218c   :  { %9307 = vmatpush1.msra.mxu1 %v9260_v12  ;;  %v9538_v12 = vunpack.c.l.bf16 %v11024_v10 }
0x218d   :  { %11011 = vmatmul.mubr.msk.f32.vlgmr.msra.gmra.mxu1 %vm2267_vm2, %v11010_v19  ;;  %9390 = vmatprep.subr.mxu1 %v9373_v30 }
0x218e   :  { %9391 = vmatpush1.msra.mxu1 %v9372_v16  ;;  %9438 = vmatprep.mubr.f32.mxu1 %v13891_v61  ;;  %v11043_v16 = vld [vmem:[%s15838_s19 + $0x1b8] sm:$0xff] }
0x218f   :  { %9392 = vmatprep.subr.mxu1 %v9371_v8  ;;  %v11042_v8 = vld [vmem:[%s15838_s19 + $0x1b0] sm:$0xff] }
0x2190   :  { %9393 = vmatpush1.msra.mxu1 %v9370_v22  ;;  %v9733_v22 = vunpack.c.h.bf16 %v11043_v16  ;;  %v9731_v15 = vunpack.c.h.bf16 %v11042_v8 }
0x2191   :  { %9394 = vmatprep.subr.mxu1 %v9369_v39  ;;  %v9732_v39 = vunpack.c.l.bf16 %v11043_v16 }
0x2192   :  { %9395 = vmatpush1.msra.mxu1 %v9368_v40  ;;  %v11041_v40 = vld [vmem:[%s15838_s19 + $0x1a8] sm:$0xff] }
0x2193   :  { %9396 = vmatprep.subr.mxu1 %v9367_v41  ;;  %v9730_v41 = vunpack.c.l.bf16 %v11042_v8  ;;  %v9729_v42 = vunpack.c.h.bf16 %v11041_v40 }
0x2194   :  { %9397 = vmatpush1.msra.mxu1 %v9366_v9  ;;  %v11040_v9 = vld [vmem:[%s15838_s19 + $0x1a0] sm:$0xff] }
0x2195   :  { %9398 = vmatprep.subr.mxu1 %v9365_v43  ;;  %v9728_v43 = vunpack.c.l.bf16 %v11041_v40  ;;  %v9727_v52 = vunpack.c.h.bf16 %v11040_v9 }
0x2196   :  { %9399 = vmatpush1.msra.mxu1 %v9364_v44  ;;  %v11039_v44 = vld [vmem:[%s15838_s19 + $0x198] sm:$0xff] }
0x2197   :  { %9400 = vmatprep.subr.mxu1 %v9363_v45  ;;  %v9726_v45 = vunpack.c.l.bf16 %v11040_v9  ;;  %v9725_v34 = vunpack.c.h.bf16 %v11039_v44  ;;  %v11058_v9 = vld [vmem:[%s15839_s18 + $0x38] sm:$0xff] }
0x2198   :  { %9401 = vmatpush1.msra.mxu1 %v9362_v46  ;;  %v11038_v46 = vld [vmem:[%s15838_s19 + $0x190] sm:$0xff] }
0x2199   :  { %9402 = vmatprep.subr.mxu1 %v9361_v47  ;;  %v9724_v47 = vunpack.c.l.bf16 %v11039_v44 }
0x219a   :  { %9403 = vmatpush1.msra.mxu1 %v9360_v48  ;;  %v11037_v48 = vld [vmem:[%s15838_s19 + $0x188] sm:$0xff] }
0x219b   :  { %9404 = vmatprep.subr.mxu1 %v9359_v31  ;;  %v9723_v31 = vunpack.c.h.bf16 %v11038_v46 }
0x219c   :  { %9405 = vmatpush1.msra.mxu1 %v9358_v49  ;;  %v9722_v49 = vunpack.c.l.bf16 %v11038_v46 }
0x219d   :  { %11020 = vmatmul.mubr.msk.f32.vlgmr.msra.gmra.mxu1 %vm2088_vm1, %v15553_v4 }
0x219e   :  { %9444 = vmatprep.mubr.f32.mxu1 %v13891_v61 }
0x21a1   :  { %11021 = vmatmul.mubr.msk.f32.gmra.mxu1 %vm2088_vm1, %v15563_v11 }
0x21a2   :  { %9700 = vmatprep.mubr.f32.mxu1 %v13891_v61 }
0x224d   :  { %v9342_v50 = vpop.f32.mrf.mxu1 }
0x224e   :  { %v9347_v51 = vadd.f32 %v9342_v50, %v9167_v13  ;;  %v9541_v13 = vunpack.c.h.bf16 %v11025_v5  ;;  %v11036_v50 = vld [vmem:[%s15838_s19 + $0x180] sm:$0xff] }
0x224f   :  { %v9344_v53 = vpop.f32.mrf.mxu1 }
0x2250   :  { %v9348_v54 = vadd.f32 %v9344_v53, %v9168_v21  ;;  %v9539_v21 = vunpack.c.h.bf16 %v11024_v10  ;;  %v9720_v53 = vunpack.c.l.bf16 %v11037_v48 }
0x225d   :  { %v9440_v55 = vpop.f32.mrf.mxu1 }
0x225f   :  { %v9442_v56 = vpop.f32.mrf.mxu1 }
0x2261   :  { %v9446_v57 = vpop.f32.mrf.mxu1 }
0x2263   :  { %v9448_v59 = vpop.f32.mrf.mxu1 }
0x2264   :  { %9484 = vmatprep.subr.mxu0 %v9448_v59 }
0x2265   :  { %9485 = vmatpush1.msra.mxu0 %v9446_v57 }
0x2266   :  { %9486 = vmatprep.subr.mxu0 %v9442_v56 }
0x2267   :  { %9487 = vmatpush1.msra.mxu0 %v9440_v55  ;;  %v9718_v55 = vunpack.c.l.bf16 %v11036_v50 }
0x2268   :  { %11023 = vmatmul.mubr.msk.f32.vlgmr.msra.gmra.mxu0 %vm2267_vm2, %v11022_v35  ;;  %9570 = vmatprep.subr.mxu0 %v9553_v62 }
0x2269   :  { %9571 = vmatpush1.msra.mxu0 %v9552_v23  ;;  %9618 = vmatprep.mubr.f32.mxu0 %v13891_v61  ;;  %v11055_v23 = vld [vmem:[%s15838_s19 + $0x1f8] sm:$0xff] }
0x226a   :  { %9572 = vmatprep.subr.mxu0 %v9551_v32  ;;  %v11054_v32 = vld [vmem:[%s15838_s19 + $0x1f0] sm:$0xff] }
0x226b   :  { %9573 = vmatpush1.msra.mxu0 %v9550_v17  ;;  %v9913_v17 = vunpack.c.h.bf16 %v11055_v23  ;;  %v9911_v63 = vunpack.c.h.bf16 %v11054_v32 }
0x226c   :  { %9574 = vmatprep.subr.mxu0 %v9549_v36  ;;  %v9912_v36 = vunpack.c.l.bf16 %v11055_v23 }
0x226d   :  { %9575 = vmatpush1.msra.mxu0 %v9548_v37  ;;  %v11053_v37 = vld [vmem:[%s15838_s19 + $0x1e8] sm:$0xff] }
0x226e   :  { %9576 = vmatprep.subr.mxu0 %v9547_v26  ;;  %v9910_v26 = vunpack.c.l.bf16 %v11054_v32  ;;  %v9909_v1 = vunpack.c.h.bf16 %v11053_v37 }
0x226f   :  { %9577 = vmatpush1.msra.mxu0 %v9546_v0  ;;  %v11052_v0 = vld [vmem:[%s15838_s19 + $0x1e0] sm:$0xff] }
0x2270   :  { %9578 = vmatprep.subr.mxu0 %v9545_v2  ;;  %v9908_v2 = vunpack.c.l.bf16 %v11053_v37  ;;  %v9907_v5 = vunpack.c.h.bf16 %v11052_v0  ;;  %v11070_v37 = vld [vmem:[%s15839_s18 + $0x40] sm:$0xff] }
0x2271   :  { %9579 = vmatpush1.msra.mxu0 %v9544_v3  ;;  %v11051_v3 = vld [vmem:[%s15838_s19 + $0x1d8] sm:$0xff] }
0x2272   :  { %9580 = vmatprep.subr.mxu0 %v9543_v6  ;;  %v9906_v6 = vunpack.c.l.bf16 %v11052_v0  ;;  %v9905_v10 = vunpack.c.h.bf16 %v11051_v3 }
0x2273   :  { %9581 = vmatpush1.msra.mxu0 %v9542_v7  ;;  %v11050_v7 = vld [vmem:[%s15838_s19 + $0x1d0] sm:$0xff] }
0x2274   :  { %9582 = vmatprep.subr.mxu0 %v9541_v13  ;;  %v9904_v13 = vunpack.c.l.bf16 %v11051_v3 }
0x2275   :  { %9583 = vmatpush1.msra.mxu0 %v9540_v14  ;;  %v11049_v14 = vld [vmem:[%s15838_s19 + $0x1c8] sm:$0xff] }
0x2276   :  { %9584 = vmatprep.subr.mxu0 %v9539_v21  ;;  %v9903_v21 = vunpack.c.h.bf16 %v11050_v7 }
0x2277   :  { %9585 = vmatpush1.msra.mxu0 %v9538_v12  ;;  %v9902_v12 = vunpack.c.l.bf16 %v11050_v7 }
0x2278   :  { %11032 = vmatmul.mubr.msk.f32.vlgmr.msra.gmra.mxu0 %vm2088_vm1, %v15553_v4 }
0x2279   :  { %9624 = vmatprep.mubr.f32.mxu0 %v13891_v61 }
0x227c   :  { %11033 = vmatmul.mubr.msk.f32.gmra.mxu0 %vm2088_vm1, %v15563_v11 }
0x227d   :  { %9880 = vmatprep.mubr.f32.mxu0 %v13891_v61 }
0x2328   :  { %v9522_v33 = vpop.f32.mrf.mxu0 }
0x2329   :  { %v9527_v24 = vadd.f32 %v9522_v33, %v9347_v51  ;;  %v9721_v51 = vunpack.c.h.bf16 %v11037_v48  ;;  %v11048_v33 = vld [vmem:[%s15838_s19 + $0x1c0] sm:$0xff] }
0x232a   :  { %v9524_v25 = vpop.f32.mrf.mxu0 }
0x232b   :  { %v9528_v28 = vadd.f32 %v9524_v25, %v9348_v54  ;;  %v9719_v54 = vunpack.c.h.bf16 %v11036_v50  ;;  %v9900_v25 = vunpack.c.l.bf16 %v11049_v14 }
0x2338   :  { %v9620_v29 = vpop.f32.mrf.mxu0 }
0x233a   :  { %v9622_v30 = vpop.f32.mrf.mxu0 }
0x233c   :  { %v9626_v19 = vpop.f32.mrf.mxu0 }
0x233e   :  { %v9628_v27 = vpop.f32.mrf.mxu0 }
0x233f   :  { %9664 = vmatprep.subr.mxu1 %v9628_v27 }
0x2340   :  { %9665 = vmatpush1.msra.mxu1 %v9626_v19 }
0x2341   :  { %9666 = vmatprep.subr.mxu1 %v9622_v30 }
0x2342   :  { %9667 = vmatpush1.msra.mxu1 %v9620_v29  ;;  %v9898_v29 = vunpack.c.l.bf16 %v11048_v33 }
0x2343   :  { %11035 = vmatmul.mubr.msk.f32.vlgmr.msra.gmra.mxu1 %vm2267_vm2, %v11034_v38  ;;  %9750 = vmatprep.subr.mxu1 %v9733_v22 }
0x2344   :  { %9751 = vmatpush1.msra.mxu1 %v9732_v39  ;;  %9798 = vmatprep.mubr.f32.mxu1 %v13891_v61  ;;  %v11067_v39 = vld [vmem:[%s15838_s19 + $0x238] sm:$0xff] }
0x2345   :  { %9752 = vmatprep.subr.mxu1 %v9731_v15  ;;  %v11066_v15 = vld [vmem:[%s15838_s19 + $0x230] sm:$0xff] }
0x2346   :  { %9753 = vmatpush1.msra.mxu1 %v9730_v41  ;;  %v10093_v41 = vunpack.c.h.bf16 %v11067_v39  ;;  %v10091_v44 = vunpack.c.h.bf16 %v11066_v15 }
0x2347   :  { %9754 = vmatprep.subr.mxu1 %v9729_v42  ;;  %v10092_v42 = vunpack.c.l.bf16 %v11067_v39 }
0x2348   :  { %9755 = vmatpush1.msra.mxu1 %v9728_v43  ;;  %v11065_v43 = vld [vmem:[%s15838_s19 + $0x228] sm:$0xff] }
0x2349   :  { %9756 = vmatprep.subr.mxu1 %v9727_v52  ;;  %v10090_v52 = vunpack.c.l.bf16 %v11066_v15  ;;  %v10089_v46 = vunpack.c.h.bf16 %v11065_v43 }
0x234a   :  { %9757 = vmatpush1.msra.mxu1 %v9726_v45  ;;  %v11064_v45 = vld [vmem:[%s15838_s19 + $0x220] sm:$0xff] }
0x234b   :  { %9758 = vmatprep.subr.mxu1 %v9725_v34  ;;  %v10088_v34 = vunpack.c.l.bf16 %v11065_v43  ;;  %v10087_v48 = vunpack.c.h.bf16 %v11064_v45 }
0x234c   :  { %9759 = vmatpush1.msra.mxu1 %v9724_v47  ;;  %v11063_v47 = vld [vmem:[%s15838_s19 + $0x218] sm:$0xff] }
0x234d   :  { %9760 = vmatprep.subr.mxu1 %v9723_v31  ;;  %v10086_v31 = vunpack.c.l.bf16 %v11064_v45  ;;  %v10085_v50 = vunpack.c.h.bf16 %v11063_v47 }
0x234e   :  { %9761 = vmatpush1.msra.mxu1 %v9722_v49  ;;  %v11062_v49 = vld [vmem:[%s15838_s19 + $0x210] sm:$0xff] }
0x234f   :  { %9762 = vmatprep.subr.mxu1 %v9721_v51  ;;  %v10084_v51 = vunpack.c.l.bf16 %v11063_v47 }
0x2350   :  { %9763 = vmatpush1.msra.mxu1 %v9720_v53  ;;  %v11061_v53 = vld [vmem:[%s15838_s19 + $0x208] sm:$0xff] }
0x2351   :  { %9764 = vmatprep.subr.mxu1 %v9719_v54  ;;  %v10083_v54 = vunpack.c.h.bf16 %v11062_v49 }
0x2352   :  { %9765 = vmatpush1.msra.mxu1 %v9718_v55  ;;  %v10082_v55 = vunpack.c.l.bf16 %v11062_v49 }
0x2353   :  { %11044 = vmatmul.mubr.msk.f32.vlgmr.msra.gmra.mxu1 %vm2088_vm1, %v15553_v4 }
0x2354   :  { %9804 = vmatprep.mubr.f32.mxu1 %v13891_v61 }
0x2357   :  { %11045 = vmatmul.mubr.msk.f32.gmra.mxu1 %vm2088_vm1, %v15563_v11 }
0x2358   :  { %10060 = vmatprep.mubr.f32.mxu1 %v13891_v61 }
0x2403   :  { %v9702_v56 = vpop.f32.mrf.mxu1 }
0x2404   :  { %v9707_v57 = vadd.f32 %v9702_v56, %v9527_v24  ;;  %v9901_v24 = vunpack.c.h.bf16 %v11049_v14  ;;  %v11060_v56 = vld [vmem:[%s15838_s19 + $0x200] sm:$0xff] }
0x2405   :  { %v9704_v58 = vpop.f32.mrf.mxu1 }
0x2406   :  { %v9708_v59 = vadd.f32 %v9704_v58, %v9528_v28  ;;  %v9899_v28 = vunpack.c.h.bf16 %v11048_v33  ;;  %v10080_v58 = vunpack.c.l.bf16 %v11061_v53 }
0x2413   :  { %v9800_v60 = vpop.f32.mrf.mxu1 }
0x2415   :  { %v9802_v62 = vpop.f32.mrf.mxu1 }
0x2417   :  { %v9806_v35 = vpop.f32.mrf.mxu1 }
0x2419   :  { %v9808_v20 = vpop.f32.mrf.mxu1 }
0x241a   :  { %9844 = vmatprep.subr.mxu0 %v9808_v20 }
0x241b   :  { %9845 = vmatpush1.msra.mxu0 %v9806_v35 }
0x241c   :  { %9846 = vmatprep.subr.mxu0 %v9802_v62 }
0x241d   :  { %9847 = vmatpush1.msra.mxu0 %v9800_v60  ;;  %v10078_v60 = vunpack.c.l.bf16 %v11060_v56 }
0x241e   :  { %11047 = vmatmul.mubr.msk.f32.vlgmr.msra.gmra.mxu0 %vm2267_vm2, %v11046_v18  ;;  %9930 = vmatprep.subr.mxu0 %v9913_v17 }
0x241f   :  { %9931 = vmatpush1.msra.mxu0 %v9912_v36  ;;  %9978 = vmatprep.mubr.f32.mxu0 %v13891_v61 }
0x2420   :  { %9932 = vmatprep.subr.mxu0 %v9911_v63 }
0x2421   :  { %9933 = vmatpush1.msra.mxu0 %v9910_v26 }
0x2422   :  { %9934 = vmatprep.subr.mxu0 %v9909_v1 }
0x2423   :  { %9935 = vmatpush1.msra.mxu0 %v9908_v2 }
0x2424   :  { %9936 = vmatprep.subr.mxu0 %v9907_v5 }
0x2425   :  { %9937 = vmatpush1.msra.mxu0 %v9906_v6 }
0x2426   :  { %9938 = vmatprep.subr.mxu0 %v9905_v10 }
0x2427   :  { %9939 = vmatpush1.msra.mxu0 %v9904_v13 }
0x2428   :  { %9940 = vmatprep.subr.mxu0 %v9903_v21 }
0x2429   :  { %9941 = vmatpush1.msra.mxu0 %v9902_v12 }
0x242a   :  { %9942 = vmatprep.subr.mxu0 %v9901_v24 }
0x242b   :  { %9943 = vmatpush1.msra.mxu0 %v9900_v25 }
0x242c   :  { %9944 = vmatprep.subr.mxu0 %v9899_v28 }
0x242d   :  { %9945 = vmatpush1.msra.mxu0 %v9898_v29 }
0x242e   :  { %11056 = vmatmul.mubr.msk.f32.vlgmr.msra.gmra.mxu0 %vm2088_vm1, %v15553_v4 }
0x242f   :  { %9984 = vmatprep.mubr.f32.mxu0 %v13891_v61 }
0x2432   :  { %11057 = vmatmul.mubr.msk.f32.gmra.mxu0 %vm2088_vm1, %v15563_v11 }
0x2433   :  { %10240 = vmatprep.mubr.f32.mxu0 %v13891_v61 }
0x24de   :  { %v9882_v30 = vpop.f32.mrf.mxu0 }
0x24df   :  { %v9887_v19 = vadd.f32 %v9882_v30, %v9707_v57  ;;  %v10081_v57 = vunpack.c.h.bf16 %v11061_v53 }
0x24e0   :  { %v9884_v16 = vpop.f32.mrf.mxu0 }
0x24e1   :  { %v9888_v27 = vadd.f32 %v9884_v16, %v9708_v59  ;;  %v10079_v59 = vunpack.c.h.bf16 %v11060_v56 }
0x24ee   :  { %v9980_v8 = vpop.f32.mrf.mxu0 }
0x24f0   :  { %v9982_v22 = vpop.f32.mrf.mxu0 }
0x24f2   :  { %v9986_v38 = vpop.f32.mrf.mxu0 }
0x24f4   :  { %v9988_v40 = vpop.f32.mrf.mxu0 }
0x24f5   :  { %10024 = vmatprep.subr.mxu1 %v9988_v40 }
0x24f6   :  { %10025 = vmatpush1.msra.mxu1 %v9986_v38 }
0x24f7   :  { %10026 = vmatprep.subr.mxu1 %v9982_v22 }
0x24f8   :  { %10027 = vmatpush1.msra.mxu1 %v9980_v8 }
0x24f9   :  { %11059 = vmatmul.mubr.msk.f32.vlgmr.msra.gmra.mxu1 %vm2267_vm2, %v11058_v9  ;;  %10110 = vmatprep.subr.mxu1 %v10093_v41 }
0x24fa   :  { %10111 = vmatpush1.msra.mxu1 %v10092_v42  ;;  %10158 = vmatprep.mubr.f32.mxu1 %v13891_v61 }
0x24fb   :  { %10112 = vmatprep.subr.mxu1 %v10091_v44 }
0x24fc   :  { %10113 = vmatpush1.msra.mxu1 %v10090_v52 }
0x24fd   :  { %10114 = vmatprep.subr.mxu1 %v10089_v46 }
0x24fe   :  { %10115 = vmatpush1.msra.mxu1 %v10088_v34 }
0x24ff   :  { %10116 = vmatprep.subr.mxu1 %v10087_v48 }
0x2500   :  { %10117 = vmatpush1.msra.mxu1 %v10086_v31 }
0x2501   :  { %10118 = vmatprep.subr.mxu1 %v10085_v50 }
0x2502   :  { %10119 = vmatpush1.msra.mxu1 %v10084_v51 }
0x2503   :  { %10120 = vmatprep.subr.mxu1 %v10083_v54 }
0x2504   :  { %10121 = vmatpush1.msra.mxu1 %v10082_v55 }
0x2505   :  { %10122 = vmatprep.subr.mxu1 %v10081_v57 }
0x2506   :  { %10123 = vmatpush1.msra.mxu1 %v10080_v58 }
0x2507   :  { %10124 = vmatprep.subr.mxu1 %v10079_v59 }
0x2508   :  { %10125 = vmatpush1.msra.mxu1 %v10078_v60 }
0x2509   :  { %11068 = vmatmul.mubr.msk.f32.vlgmr.msra.gmra.mxu1 %vm2088_vm1, %v15553_v4 }
0x250a   :  { %10164 = vmatprep.mubr.f32.mxu1 %v13891_v61 }
0x250d   :  { %11069 = vmatmul.mubr.msk.f32.gmra.mxu1 %vm2088_vm1, %v15563_v11  ;;  %v10253_v11 = vpop.permute.xlu0 %10252 }
0x25b9   :  { %v10062_v62 = vpop.f32.mrf.mxu1 }
0x25ba   :  { %v10067_v35 = vadd.f32 %v10062_v62, %v9887_v19 }
0x25bb   :  { %v10064_v23 = vpop.f32.mrf.mxu1 }
0x25bc   :  { %v10068_v20 = vadd.f32 %v10064_v23, %v9888_v27 }
0x25c9   :  { %v10160_v32 = vpop.f32.mrf.mxu1 }
0x25cb   :  { %v10162_v17 = vpop.f32.mrf.mxu1 }
0x25cd   :  { %v10166_v18 = vpop.f32.mrf.mxu1 }
0x25cf   :  { %v10168_v36 = vpop.f32.mrf.mxu1 }
0x25d0   :  { %10204 = vmatprep.subr.mxu0 %v10168_v36 }
0x25d1   :  { %10205 = vmatpush1.msra.mxu0 %v10166_v18 }
0x25d2   :  { %10206 = vmatprep.subr.mxu0 %v10162_v17 }
0x25d3   :  { %10207 = vmatpush1.msra.mxu0 %v10160_v32 }
0x25d4   :  { %11071 = vmatmul.mubr.msk.f32.vlgmr.msra.gmra.mxu0 %vm2267_vm2, %v11070_v37 }
0x2694   :  { %v10242_v61 = vpop.f32.mrf.mxu0 }
0x2695   :  { %v10247_v4 = vadd.f32 %v10242_v61, %v10067_v35 }
0x2696   :  { %v10244_v63 = vpop.f32.mrf.mxu0 }
0x2697   :  { %v10255_v26 = vadd.f32 %v10253_v11, %v10247_v4  ;;  %v10248_v0 = vadd.f32 %v10244_v63, %v10068_v20 }
0x2699   :  { %10257 = vst [vmem:[%s15840_s21] sm:$0xff] %v10255_v26  ;;  %v10256_v1 = vadd.f32 %v10253_v11, %v10248_v0 }
0x269b   :  { %10258 = vst [vmem:[%s15840_s21 + $0x8] sm:$0xff] %v10256_v1 }

</bundles_post_ra>
